<compile_context>
chip_gen: v6e
topology: v6e:2x2x1
jax: 0.10.0
libtpu: 0.0.40
codegen_flags: <defaults>
</compile_context>

<pallas_src>
import functools

import jax
import jax.numpy as jnp
from jax import lax
from jax.experimental import pallas as pl
from jax.experimental.pallas import tpu as pltpu


def _round_up(x, m):
    return (x + m - 1) // m * m


def _pick_tile(n, candidates=(256, 128)):
    for c in candidates:
        if n % c == 0:
            return c
    return n


@functools.lru_cache(maxsize=None)
def _vmem_limit_bytes():
    # Raise the scoped-VMEM limit above the 16/32 MiB defaults, but stay well
    # inside physical VMEM (64 MiB on v7x, 128 MiB on v5e/v6e).
    cap = 64 * 1024 * 1024
    try:
        info = pltpu.get_tpu_info()
        cap = int(getattr(info, "vmem_capacity_bytes", cap))
    except Exception:
        pass
    return int(min(cap - 16 * 1024 * 1024, 100 * 1024 * 1024))


def _cparams(dims):
    return pltpu.CompilerParams(dimension_semantics=dims,
                                vmem_limit_bytes=_vmem_limit_bytes())


def _bufspec(shape, index_map):
    # Single-buffered spec for grid-invariant operands (weights / biases):
    # default double-buffering would keep two copies of each weight in VMEM.
    try:
        return pl.BlockSpec(shape, index_map, pipeline_mode=pl.Buffered(1))
    except TypeError:  # older BlockSpec signature
        return pl.BlockSpec(shape, index_map)


# --------------------------------------------------------------------------
# Embeddings: patch "conv" + position embeddings (bias folded into pos table)
# --------------------------------------------------------------------------
def _embed_kernel(patch_ref, w_ref, posb_ref, out_ref):
    # patch_ref: (1, TE, Kp) bf16   w_ref: (Kp, E) bf16   posb_ref: (TE, E) f32
    y = jnp.dot(patch_ref[0], w_ref[...], preferred_element_type=jnp.float32)
    out_ref[0] = (y + posb_ref[...]).astype(out_ref.dtype)


def siglip_vision_embeddings(pixel_values, conv_weight, conv_bias, pos_emb,
                             patch_size, *, out_dtype=jnp.float32):
    """pixel_values (B,C,H,W); conv_weight (E,C,P,P); conv_bias (E,);
    pos_emb (N,E). Returns a row-padded (B, Np, E) array (Np = roundup(N,128))."""
    B, C, H, W = pixel_values.shape
    E = conv_weight.shape[0]
    P = patch_size
    Hp, Wp = H // P, W // P
    N = Hp * Wp
    K = C * P * P
    Np = _round_up(N, 128)
    Kp = _round_up(K, 128)

    # TODO(synk): patch extraction still materializes (B, Np, Kp) in HBM; a
    # manual strided-DMA gather inside the kernel (memory_space=pl.ANY +
    # make_async_copy) would remove this extra HBM round trip.
    x = pixel_values.astype(jnp.bfloat16)            # cast first: half the bytes
    x = x.reshape(B, C, Hp, P, Wp, P)
    x = x.transpose(0, 2, 4, 1, 3, 5)                # (B, Hp, Wp, C, P, P)
    patches = x.reshape(B, N, K)
    patches = jnp.pad(patches, ((0, 0), (0, Np - N), (0, Kp - K)))

    w = conv_weight.reshape(E, K).T                  # (K, E), torch flatten order
    w = jnp.pad(w, ((0, Kp - K), (0, 0))).astype(jnp.bfloat16)

    # Fold the conv bias into the position table (one fewer add per element).
    posb = pos_emb.astype(jnp.float32) + conv_bias.astype(jnp.float32)[None, :]
    posb = jnp.pad(posb, ((0, Np - N), (0, 0)))

    TE = _pick_tile(Np)
    return pl.pallas_call(
        _embed_kernel,
        out_shape=jax.ShapeDtypeStruct((B, Np, E), out_dtype),
        grid_spec=pltpu.PrefetchScalarGridSpec(
            num_scalar_prefetch=0,
            grid=(B, Np // TE),
            in_specs=[
                pl.BlockSpec((1, TE, Kp), lambda b, n: (b, n, 0)),
                _bufspec((Kp, E), lambda b, n: (0, 0)),
                pl.BlockSpec((TE, E), lambda b, n: (n, 0)),
            ],
            out_specs=pl.BlockSpec((1, TE, E), lambda b, n: (b, n, 0)),
        ),
        compiler_params=_cparams(("parallel", "parallel")),
    )(patches, w, posb)


# --------------------------------------------------------------------------
# Attention kernel 1: LayerNorm1 + fused QKV projection
# --------------------------------------------------------------------------
def _make_ln_qkv_kernel(eps, E):
    def kernel(x_ref, g_ref, b_ref, w_ref, bias_ref, q_ref, kv_ref):
        x = x_ref[0].astype(jnp.float32)                       # (TR, E)
        mu = jnp.mean(x, axis=-1, keepdims=True)
        var = jnp.mean(jnp.square(x - mu), axis=-1, keepdims=True)
        h = ((x - mu) * lax.rsqrt(var + eps) * g_ref[...]
             + b_ref[...]).astype(jnp.bfloat16)
        y = jnp.dot(h, w_ref[...],
                    preferred_element_type=jnp.float32) + bias_ref[...]
        y = y.astype(jnp.bfloat16)                             # (TR, 3E)
        q_ref[0] = y[:, :E]
        kv_ref[0] = y[:, E:]
    return kernel


def _ln_qkv_proj(x, ln_g, ln_b, wqkv, bqkv, eps):
    B, Np, E = x.shape
    TR = _pick_tile(Np)
    return pl.pallas_call(
        _make_ln_qkv_kernel(eps, E),
        out_shape=(jax.ShapeDtypeStruct((B, Np, E), jnp.bfloat16),
                   jax.ShapeDtypeStruct((B, Np, 2 * E), jnp.bfloat16)),
        grid_spec=pltpu.PrefetchScalarGridSpec(
            num_scalar_prefetch=0,
            grid=(B, Np // TR),
            in_specs=[
                pl.BlockSpec((1, TR, E), lambda b, r: (b, r, 0)),
                _bufspec((1, E), lambda b, r: (0, 0)),
                _bufspec((1, E), lambda b, r: (0, 0)),
                _bufspec((E, 3 * E), lambda b, r: (0, 0)),
                _bufspec((1, 3 * E), lambda b, r: (0, 0)),
            ],
            out_specs=(pl.BlockSpec((1, TR, E), lambda b, r: (b, r, 0)),
                       pl.BlockSpec((1, TR, 2 * E), lambda b, r: (b, r, 0))),
        ),
        compiler_params=_cparams(("parallel", "parallel")),
    )(x, ln_g, ln_b, wqkv, bqkv)


# --------------------------------------------------------------------------
# Attention kernel 2: per-query-tile attention core + out proj + residual
# --------------------------------------------------------------------------
def _make_attn_core_kernel(num_heads, head_dim, n_valid, n_padded):
    E = num_heads * head_dim
    masked = n_valid < n_padded
    # TODO(synk): head_dim=72 under-fills the 256-wide MXU on v6e/v7x; packing
    # two heads per MXU pass would roughly double column utilization.

    def kernel(x_ref, q_ref, kv_ref, wo_ref, bo_ref, out_ref, o_slab):
        q = q_ref[0]                                  # (TQ, E) bf16, pre-scaled
        kv = kv_ref[0]                                # (Np, 2E) bf16
        k = kv[:, :E]
        v = kv[:, E:]
        kT = k.T                                      # one full-width transpose
        if masked:
            key_mask = (lax.broadcasted_iota(jnp.int32, (1, n_padded), 1)
                        < n_valid)
        for h in range(num_heads):
            sl = slice(h * head_dim, (h + 1) * head_dim)
            s = jnp.dot(q[:, sl], kT[sl, :],
                        preferred_element_type=jnp.float32)   # (TQ, Np) f32
            if masked:
                s = jnp.where(key_mask, s, jnp.float32(-1e30))
            s = s - jnp.max(s, axis=-1, keepdims=True)
            p = jnp.exp(s)                                     # f32 softmax
            inv = pl.reciprocal(jnp.sum(p, axis=-1, keepdims=True), approx=True)
            p = (p * inv).astype(jnp.bfloat16)
            o_slab[:, sl] = jnp.dot(p, v[:, sl],
                                    preferred_element_type=jnp.float32)
        attn = jnp.dot(o_slab[...].astype(jnp.bfloat16), wo_ref[...],
                       preferred_element_type=jnp.float32) + bo_ref[...]
        out_ref[0] = (x_ref[0].astype(jnp.float32) + attn).astype(out_ref.dtype)

    return kernel


def attention_block(x, ln_g, ln_b, wq, bq, wk, bk, wv, bv, wo, bo,
                    num_heads, eps, n_valid):
    B, Np, E = x.shape
    head_dim = E // num_heads
    scale = float(head_dim) ** -0.5
    f32 = jnp.float32
    bf16 = jnp.bfloat16

    # Fuse QKV into one (E, 3E) matmul; fold the softmax scale into q columns.
    wqkv = jnp.concatenate([wq.astype(f32) * scale, wk.astype(f32),
                            wv.astype(f32)], axis=1).astype(bf16)
    bqkv = jnp.concatenate([bq.astype(f32) * scale, bk.astype(f32),
                            bv.astype(f32)], axis=1)

    q, kv = _ln_qkv_proj(x, ln_g.astype(f32), ln_b.astype(f32), wqkv, bqkv, eps)

    TQ = _pick_tile(Np)
    kern = _make_attn_core_kernel(num_heads, head_dim, n_valid, Np)
    return pl.pallas_call(
        kern,
        out_shape=jax.ShapeDtypeStruct((B, Np, E), x.dtype),
        grid_spec=pltpu.PrefetchScalarGridSpec(
            num_scalar_prefetch=0,
            grid=(B, Np // TQ),
            in_specs=[
                pl.BlockSpec((1, TQ, E), lambda b, qt: (b, qt, 0)),      # residual
                pl.BlockSpec((1, TQ, E), lambda b, qt: (b, qt, 0)),      # q tile
                pl.BlockSpec((1, Np, 2 * E), lambda b, qt: (b, 0, 0)),   # full K/V
                _bufspec((E, E), lambda b, qt: (0, 0)),
                _bufspec((1, E), lambda b, qt: (0, 0)),
            ],
            out_specs=pl.BlockSpec((1, TQ, E), lambda b, qt: (b, qt, 0)),
            scratch_shapes=[pltpu.VMEM((TQ, E), jnp.float32)],
        ),
        compiler_params=_cparams(("parallel", "parallel")),
    )(x, q, kv, wo.astype(bf16), bo.astype(f32))


# --------------------------------------------------------------------------
# MLP block (LN2 + fc1 + tanh-GELU + fc2 + residual), row-tiled
# --------------------------------------------------------------------------
def _make_mlp_kernel(eps):
    c = 0.7978845608028654  # sqrt(2/pi)

    def kernel(x_ref, g_ref, b_ref, w1_ref, b1_ref, w2_ref, b2_ref, out_ref):
        x = x_ref[0].astype(jnp.float32)                       # (TN, E)
        mu = jnp.mean(x, axis=-1, keepdims=True)
        var = jnp.mean(jnp.square(x - mu), axis=-1, keepdims=True)
        h = ((x - mu) * lax.rsqrt(var + eps) * g_ref[...]
             + b_ref[...]).astype(jnp.bfloat16)
        u = jnp.dot(h, w1_ref[...],
                    preferred_element_type=jnp.float32) + b1_ref[...]
        u = 0.5 * u * (1.0 + jnp.tanh(c * (u + 0.044715 * (u * u * u))))
        y = jnp.dot(u.astype(jnp.bfloat16), w2_ref[...],
                    preferred_element_type=jnp.float32) + b2_ref[...]
        out_ref[0] = (x + y).astype(out_ref.dtype)

    return kernel


def mlp_block(x, ln_g, ln_b, w1, b1, w2, b2, eps):
    B, Np, E = x.shape
    F = w1.shape[1]
    TN = _pick_tile(Np)
    f32, bf16 = jnp.float32, jnp.bfloat16
    return pl.pallas_call(
        _make_mlp_kernel(eps),
        out_shape=jax.ShapeDtypeStruct((B, Np, E), x.dtype),
        grid_spec=pltpu.PrefetchScalarGridSpec(
            num_scalar_prefetch=0,
            grid=(B, Np // TN),
            in_specs=[
                pl.BlockSpec((1, TN, E), lambda b, r: (b, r, 0)),
                _bufspec((1, E), lambda b, r: (0, 0)),
                _bufspec((1, E), lambda b, r: (0, 0)),
                _bufspec((E, F), lambda b, r: (0, 0)),
                _bufspec((1, F), lambda b, r: (0, 0)),
                _bufspec((F, E), lambda b, r: (0, 0)),
                _bufspec((1, E), lambda b, r: (0, 0)),
            ],
            out_specs=pl.BlockSpec((1, TN, E), lambda b, r: (b, r, 0)),
        ),
        compiler_params=_cparams(("parallel", "parallel")),
    )(x, ln_g.astype(f32), ln_b.astype(f32), w1.astype(bf16), b1.astype(f32),
      w2.astype(bf16), b2.astype(f32))


# --------------------------------------------------------------------------
# Final LayerNorm, row-tiled
# --------------------------------------------------------------------------
def _make_ln_kernel(eps):
    def kernel(x_ref, g_ref, b_ref, out_ref):
        x = x_ref[0].astype(jnp.float32)
        mu = jnp.mean(x, axis=-1, keepdims=True)
        var = jnp.mean(jnp.square(x - mu), axis=-1, keepdims=True)
        out_ref[0] = ((x - mu) * lax.rsqrt(var + eps) * g_ref[...]
                      + b_ref[...]).astype(out_ref.dtype)
    return kernel


def layer_norm(x, g, b, eps):
    B, Np, E = x.shape
    TN = _pick_tile(Np)
    return pl.pallas_call(
        _make_ln_kernel(eps),
        out_shape=jax.ShapeDtypeStruct((B, Np, E), x.dtype),
        grid_spec=pltpu.PrefetchScalarGridSpec(
            num_scalar_prefetch=0,
            grid=(B, Np // TN),
            in_specs=[
                pl.BlockSpec((1, TN, E), lambda b, r: (b, r, 0)),
                _bufspec((1, E), lambda b, r: (0, 0)),
                _bufspec((1, E), lambda b, r: (0, 0)),
            ],
            out_specs=pl.BlockSpec((1, TN, E), lambda b, r: (b, r, 0)),
        ),
        compiler_params=_cparams(("parallel", "parallel")),
    )(x, g.astype(jnp.float32), b.astype(jnp.float32))


# --------------------------------------------------------------------------
# Full model forward (SigLIPVisionModel)
# --------------------------------------------------------------------------
def siglip_vision_model(pixel_values, params, *, patch_size, num_heads, eps):
    B, C, H, W = pixel_values.shape
    N = (H // patch_size) * (W // patch_size)

    # Row-padded (B, Np, E) residual stream; padded rows sliced off at the end.
    # TODO(synk): fusing each layer's attention+MLP into one pallas_call (or a
    # bf16 residual stream) would cut inter-kernel HBM traffic further (v5e).
    h = siglip_vision_embeddings(pixel_values, params["conv_w"],
                                 params["conv_b"], params["pos"], patch_size,
                                 out_dtype=jnp.float32)
    for lp in params["layers"]:
        h = attention_block(h, lp["ln1_g"], lp["ln1_b"],
                            lp["wq"], lp["bq"], lp["wk"], lp["bk"],
                            lp["wv"], lp["bv"], lp["wo"], lp["bo"],
                            num_heads, eps, N)
        h = mlp_block(h, lp["ln2_g"], lp["ln2_b"],
                      lp["w1"], lp["b1"], lp["w2"], lp["b2"], eps)
    h = layer_norm(h, params["lnf_g"], params["lnf_b"], eps)
    return h[:, :N, :]


# --------------------------------------------------------------------------
# Pure-JAX f32 reference (mirrors the PyTorch module)
# --------------------------------------------------------------------------
def _ln_ref(x, g, b, eps):
    mu = jnp.mean(x, axis=-1, keepdims=True)
    var = jnp.mean(jnp.square(x - mu), axis=-1, keepdims=True)
    return (x - mu) * lax.rsqrt(var + eps) * g + b


def reference_model(pixel_values, params, patch_size, num_heads, eps):
    out = lax.conv_general_dilated(
        pixel_values.astype(jnp.float32), params["conv_w"],
        (patch_size, patch_size), "VALID",
        dimension_numbers=("NCHW", "OIHW", "NCHW"))
    out = out + params["conv_b"].reshape(1, -1, 1, 1)
    B, E = out.shape[0], out.shape[1]
    h = out.reshape(B, E, -1).transpose(0, 2, 1) + params["pos"][None]
    N = h.shape[1]
    Dh = E // num_heads
    for lp in params["layers"]:
        res = h
        x = _ln_ref(h, lp["ln1_g"], lp["ln1_b"], eps)
        q = x @ lp["wq"] + lp["bq"]
        k = x @ lp["wk"] + lp["bk"]
        v = x @ lp["wv"] + lp["bv"]
        q = q.reshape(B, N, num_heads, Dh).transpose(0, 2, 1, 3)
        k = k.reshape(B, N, num_heads, Dh).transpose(0, 2, 1, 3)
        v = v.reshape(B, N, num_heads, Dh).transpose(0, 2, 1, 3)
        s = jnp.einsum("bhqd,bhkd->bhqk", q, k) * (Dh ** -0.5)
        p = jax.nn.softmax(s, axis=-1)
        o = jnp.einsum("bhqk,bhkd->bhqd", p, v)
        o = o.transpose(0, 2, 1, 3).reshape(B, N, E)
        h = res + (o @ lp["wo"] + lp["bo"])
        res = h
        x = _ln_ref(h, lp["ln2_g"], lp["ln2_b"], eps)
        u = x @ lp["w1"] + lp["b1"]
        u = 0.5 * u * (1.0 + jnp.tanh(0.7978845608028654
                                      * (u + 0.044715 * u ** 3)))
        h = res + (u @ lp["w2"] + lp["b2"])
    return _ln_ref(h, params["lnf_g"], params["lnf_b"], eps)


if __name__ == "__main__":
    # Small config consistent with SigLIPVisionConfig semantics.
    batch = 2
    num_channels = 4
    image_size = 16
    patch_size = 4
    hidden_size = 32
    num_heads = 4
    intermediate_size = 64
    num_layers = 2
    eps = 1e-6
    num_patches = (image_size // patch_size) ** 2   # 16

    key = jax.random.PRNGKey(0)
    keys = iter(jax.random.split(key, 64))

    def nrm(shape, scale=0.05):
        return scale * jax.random.normal(next(keys), shape, jnp.float32)

    pixel_values = jax.random.normal(
        next(keys), (batch, num_channels, image_size, image_size), jnp.float32)

    params = {
        "conv_w": nrm((hidden_size, num_channels, patch_size, patch_size)),
        "conv_b": nrm((hidden_size,)),
        "pos": nrm((num_patches, hidden_size)),
        "lnf_g": 1.0 + nrm((1, hidden_size)),
        "lnf_b": nrm((1, hidden_size)),
        "layers": [],
    }
    for _ in range(num_layers):
        params["layers"].append({
            "ln1_g": 1.0 + nrm((1, hidden_size)),
            "ln1_b": nrm((1, hidden_size)),
            "wq": nrm((hidden_size, hidden_size)),
            "bq": nrm((1, hidden_size)),
            "wk": nrm((hidden_size, hidden_size)),
            "bk": nrm((1, hidden_size)),
            "wv": nrm((hidden_size, hidden_size)),
            "bv": nrm((1, hidden_size)),
            "wo": nrm((hidden_size, hidden_size)),
            "bo": nrm((1, hidden_size)),
            "ln2_g": 1.0 + nrm((1, hidden_size)),
            "ln2_b": nrm((1, hidden_size)),
            "w1": nrm((hidden_size, intermediate_size)),
            "b1": nrm((1, intermediate_size)),
            "w2": nrm((intermediate_size, hidden_size)),
            "b2": nrm((1, hidden_size)),
        })

    fwd = jax.jit(functools.partial(siglip_vision_model,
                                    patch_size=patch_size,
                                    num_heads=num_heads, eps=eps))
    out = jax.block_until_ready(fwd(pixel_values, params))

    ref = reference_model(pixel_values, params, patch_size, num_heads, eps)
    assert out.shape == (batch, num_patches, hidden_size), out.shape
    max_err = float(jnp.max(jnp.abs(out - ref)))
    # bf16 MXU operands / bf16 q,kv storage (f32 accumulation) vs f32 reference.
    assert jnp.allclose(out, ref, atol=2e-2, rtol=2e-2), max_err

    print("KERNEL_OK")
</pallas_src>

<mosaic_0001>
module attributes {stable_mosaic.version = 11 : i64} {
  func.func @_embed_kernel(%arg0: i32, %arg1: i32, %arg2: memref<1x128x128xbf16, #tpu.memory_space<vmem>>, %arg3: memref<128x32xbf16, #tpu.memory_space<vmem>>, %arg4: memref<128x32xf32, #tpu.memory_space<vmem>>, %arg5: memref<1x128x32xf32, #tpu.memory_space<vmem>>) attributes {dimension_semantics = [#tpu.dimension_semantics<parallel>, #tpu.dimension_semantics<parallel>], iteration_bounds = array<i64: 2, 1>, scalar_prefetch = 0 : i64, scratch_operands = 0 : i64, tpu.core_type = #tpu.core_type<tc>, window_params = [{transform_indices = @transform_0, window_bounds = array<i64: 1, 128, 128>}, {pipeline_mode = #tpu.pipeline_mode<synchronous>, transform_indices = @transform_1, window_bounds = array<i64: 128, 32>}, {transform_indices = @transform_2, window_bounds = array<i64: 128, 32>}, {transform_indices = @transform_3, window_bounds = array<i64: 1, 128, 32>}]} {
    %c0 = arith.constant 0 : index
    %c0_0 = arith.constant 0 : index
    %c0_1 = arith.constant 0 : index
    %0 = vector.load %arg2[%c0, %c0_0, %c0_1] : memref<1x128x128xbf16, #tpu.memory_space<vmem>>, vector<1x128x128xbf16>
    %1 = vector.shape_cast %0 : vector<1x128x128xbf16> to vector<128x128xbf16>
    %c0_2 = arith.constant 0 : index
    %c0_3 = arith.constant 0 : index
    %2 = vector.load %arg3[%c0_2, %c0_3] : memref<128x32xbf16, #tpu.memory_space<vmem>>, vector<128x32xbf16>
    %cst = arith.constant dense<0.000000e+00> : vector<128x32xf32>
    %3 = tpu.matmul %1, %2, %cst {dimension_numbers = #tpu.dot_dimension_numbers<[1], [0], [0], [1], [0, 0, 1, 1], [], []>} : vector<128x128xbf16>, vector<128x32xbf16>, vector<128x32xf32> -> vector<128x32xf32>
    %c0_4 = arith.constant 0 : index
    %c0_5 = arith.constant 0 : index
    %4 = vector.load %arg4[%c0_4, %c0_5] : memref<128x32xf32, #tpu.memory_space<vmem>>, vector<128x32xf32>
    %5 = arith.addf %3, %4 : vector<128x32xf32>
    %c0_6 = arith.constant 0 : index
    %c0_7 = arith.constant 0 : index
    %c0_8 = arith.constant 0 : index
    %6 = vector.load %arg5[%c0_6, %c0_7, %c0_8] : memref<1x128x32xf32, #tpu.memory_space<vmem>>, vector<1x128x32xf32>
    %7 = vector.shape_cast %6 : vector<1x128x32xf32> to vector<128x32xf32>
    %8 = vector.shape_cast %5 : vector<128x32xf32> to vector<1x128x32xf32>
    tpu.vector_store %arg5[%c0_6, %c0_7, %c0_8], %8 {strides = array<i32>} : memref<1x128x32xf32, #tpu.memory_space<vmem>>, vector<1x128x32xf32>,
    return
  }
  func.func @transform_0(%arg0: i32, %arg1: i32) -> (i32, i32, i32) {
    %c0_i32 = arith.constant 0 : i32
    %c0_i32_0 = arith.constant 0 : i32
    return %arg0, %arg1, %c0_i32 : i32, i32, i32
  }
  func.func @transform_1(%arg0: i32, %arg1: i32) -> (i32, i32) {
    %c0_i32 = arith.constant 0 : i32
    %c0_i32_0 = arith.constant 0 : i32
    %c0_i32_1 = arith.constant 0 : i32
    return %c0_i32, %c0_i32_0 : i32, i32
  }
  func.func @transform_2(%arg0: i32, %arg1: i32) -> (i32, i32) {
    %c0_i32 = arith.constant 0 : i32
    %c0_i32_0 = arith.constant 0 : i32
    return %arg1, %c0_i32 : i32, i32
  }
  func.func @transform_3(%arg0: i32, %arg1: i32) -> (i32, i32, i32) {
    %c0_i32 = arith.constant 0 : i32
    %c0_i32_0 = arith.constant 0 : i32
    return %arg0, %arg1, %c0_i32 : i32, i32, i32
  }
}

module attributes {stable_mosaic.version = 11 : i64} {
  func.func @kernel(%arg0: i32, %arg1: i32, %arg2: memref<1x128x32xf32, #tpu.memory_space<vmem>>, %arg3: memref<1x32xf32, #tpu.memory_space<vmem>>, %arg4: memref<1x32xf32, #tpu.memory_space<vmem>>, %arg5: memref<32x96xbf16, #tpu.memory_space<vmem>>, %arg6: memref<1x96xf32, #tpu.memory_space<vmem>>, %arg7: memref<1x128x32xbf16, #tpu.memory_space<vmem>>, %arg8: memref<1x128x64xbf16, #tpu.memory_space<vmem>>) attributes {dimension_semantics = [#tpu.dimension_semantics<parallel>, #tpu.dimension_semantics<parallel>], iteration_bounds = array<i64: 2, 1>, scalar_prefetch = 0 : i64, scratch_operands = 0 : i64, tpu.core_type = #tpu.core_type<tc>, window_params = [{transform_indices = @transform_0, window_bounds = array<i64: 1, 128, 32>}, {pipeline_mode = #tpu.pipeline_mode<synchronous>, transform_indices = @transform_1, window_bounds = array<i64: 1, 32>}, {pipeline_mode = #tpu.pipeline_mode<synchronous>, transform_indices = @transform_2, window_bounds = array<i64: 1, 32>}, {pipeline_mode = #tpu.pipeline_mode<synchronous>, transform_indices = @transform_3, window_bounds = array<i64: 32, 96>}, {pipeline_mode = #tpu.pipeline_mode<synchronous>, transform_indices = @transform_4, window_bounds = array<i64: 1, 96>}, {transform_indices = @transform_5, window_bounds = array<i64: 1, 128, 32>}, {transform_indices = @transform_6, window_bounds = array<i64: 1, 128, 64>}]} {
    %c0 = arith.constant 0 : index
    %c0_0 = arith.constant 0 : index
    %c0_1 = arith.constant 0 : index
    %0 = vector.load %arg2[%c0, %c0_0, %c0_1] : memref<1x128x32xf32, #tpu.memory_space<vmem>>, vector<1x128x32xf32>
    %1 = vector.shape_cast %0 : vector<1x128x32xf32> to vector<128x32xf32>
    %cst = arith.constant dense<0.000000e+00> : vector<128xf32>
    %2 = vector.multi_reduction <add>, %1, %cst [1] : vector<128x32xf32> to vector<128xf32>
    %3 = vector.shape_cast %2 : vector<128xf32> to vector<128x1xf32>
    %cst_2 = arith.constant 3.200000e+01 : f32
    %4 = vector.broadcast %cst_2 : f32 to vector<128x1xf32>
    %5 = arith.divf %3, %4 : vector<128x1xf32>
    %6 = vector.broadcast %5 : vector<128x1xf32> to vector<128x32xf32>
    %7 = arith.subf %1, %6 : vector<128x32xf32>
    %8 = arith.mulf %7, %7 : vector<128x32xf32>
    %cst_3 = arith.constant dense<0.000000e+00> : vector<128xf32>
    %9 = vector.multi_reduction <add>, %8, %cst_3 [1] : vector<128x32xf32> to vector<128xf32>
    %10 = vector.shape_cast %9 : vector<128xf32> to vector<128x1xf32>
    %cst_4 = arith.constant 3.200000e+01 : f32
    %11 = vector.broadcast %cst_4 : f32 to vector<128x1xf32>
    %12 = arith.divf %10, %11 : vector<128x1xf32>
    %13 = vector.broadcast %5 : vector<128x1xf32> to vector<128x32xf32>
    %14 = arith.subf %1, %13 : vector<128x32xf32>
    %cst_5 = arith.constant 9.99999997E-7 : f32
    %15 = vector.broadcast %cst_5 : f32 to vector<128x1xf32>
    %16 = arith.addf %12, %15 : vector<128x1xf32>
    %17 = math.rsqrt %16 : vector<128x1xf32>
    %18 = vector.broadcast %17 : vector<128x1xf32> to vector<128x32xf32>
    %19 = arith.mulf %14, %18 : vector<128x32xf32>
    %c0_6 = arith.constant 0 : index
    %c0_7 = arith.constant 0 : index
    %20 = vector.load %arg3[%c0_6, %c0_7] : memref<1x32xf32, #tpu.memory_space<vmem>>, vector<1x32xf32>
    %21 = vector.broadcast %20 : vector<1x32xf32> to vector<128x32xf32>
    %22 = arith.mulf %19, %21 : vector<128x32xf32>
    %c0_8 = arith.constant 0 : index
    %c0_9 = arith.constant 0 : index
    %23 = vector.load %arg4[%c0_8, %c0_9] : memref<1x32xf32, #tpu.memory_space<vmem>>, vector<1x32xf32>
    %24 = vector.broadcast %23 : vector<1x32xf32> to vector<128x32xf32>
    %25 = arith.addf %22, %24 : vector<128x32xf32>
    %26 = arith.truncf %25 : vector<128x32xf32> to vector<128x32xbf16>
    %c0_10 = arith.constant 0 : index
    %c0_11 = arith.constant 0 : index
    %27 = vector.load %arg5[%c0_10, %c0_11] : memref<32x96xbf16, #tpu.memory_space<vmem>>, vector<32x96xbf16>
    %cst_12 = arith.constant dense<0.000000e+00> : vector<128x96xf32>
    %28 = tpu.matmul %26, %27, %cst_12 {dimension_numbers = #tpu.dot_dimension_numbers<[1], [0], [0], [1], [0, 0, 1, 1], [], []>} : vector<128x32xbf16>, vector<32x96xbf16>, vector<128x96xf32> -> vector<128x96xf32>
    %c0_13 = arith.constant 0 : index
    %c0_14 = arith.constant 0 : index
    %29 = vector.load %arg6[%c0_13, %c0_14] : memref<1x96xf32, #tpu.memory_space<vmem>>, vector<1x96xf32>
    %30 = vector.broadcast %29 : vector<1x96xf32> to vector<128x96xf32>
    %31 = arith.addf %28, %30 : vector<128x96xf32>
    %32 = arith.truncf %31 : vector<128x96xf32> to vector<128x96xbf16>
    %33 = vector.extract_strided_slice %32 {offsets = [0, 0], sizes = [128, 32], strides = [1, 1]} : vector<128x96xbf16> to vector<128x32xbf16>
    %c0_15 = arith.constant 0 : index
    %c0_16 = arith.constant 0 : index
    %c0_17 = arith.constant 0 : index
    %34 = vector.load %arg7[%c0_15, %c0_16, %c0_17] : memref<1x128x32xbf16, #tpu.memory_space<vmem>>, vector<1x128x32xbf16>
    %35 = vector.shape_cast %34 : vector<1x128x32xbf16> to vector<128x32xbf16>
    %36 = vector.shape_cast %33 : vector<128x32xbf16> to vector<1x128x32xbf16>
    tpu.vector_store %arg7[%c0_15, %c0_16, %c0_17], %36 {strides = array<i32>} : memref<1x128x32xbf16, #tpu.memory_space<vmem>>, vector<1x128x32xbf16>,
    %37 = vector.extract_strided_slice %32 {offsets = [0, 32], sizes = [128, 64], strides = [1, 1]} : vector<128x96xbf16> to vector<128x64xbf16>
    %c0_18 = arith.constant 0 : index
    %c0_19 = arith.constant 0 : index
    %c0_20 = arith.constant 0 : index
    %38 = vector.load %arg8[%c0_18, %c0_19, %c0_20] : memref<1x128x64xbf16, #tpu.memory_space<vmem>>, vector<1x128x64xbf16>
    %39 = vector.shape_cast %38 : vector<1x128x64xbf16> to vector<128x64xbf16>
    %40 = vector.shape_cast %37 : vector<128x64xbf16> to vector<1x128x64xbf16>
    tpu.vector_store %arg8[%c0_18, %c0_19, %c0_20], %40 {strides = array<i32>} : memref<1x128x64xbf16, #tpu.memory_space<vmem>>, vector<1x128x64xbf16>,
    return
  }
  func.func @transform_0(%arg0: i32, %arg1: i32) -> (i32, i32, i32) {
    %c0_i32 = arith.constant 0 : i32
    %c0_i32_0 = arith.constant 0 : i32
    return %arg0, %arg1, %c0_i32 : i32, i32, i32
  }
  func.func @transform_1(%arg0: i32, %arg1: i32) -> (i32, i32) {
    %c0_i32 = arith.constant 0 : i32
    %c0_i32_0 = arith.constant 0 : i32
    %c0_i32_1 = arith.constant 0 : i32
    return %c0_i32, %c0_i32_0 : i32, i32
  }
  func.func @transform_2(%arg0: i32, %arg1: i32) -> (i32, i32) {
    %c0_i32 = arith.constant 0 : i32
    %c0_i32_0 = arith.constant 0 : i32
    %c0_i32_1 = arith.constant 0 : i32
    return %c0_i32, %c0_i32_0 : i32, i32
  }
  func.func @transform_3(%arg0: i32, %arg1: i32) -> (i32, i32) {
    %c0_i32 = arith.constant 0 : i32
    %c0_i32_0 = arith.constant 0 : i32
    %c0_i32_1 = arith.constant 0 : i32
    return %c0_i32, %c0_i32_0 : i32, i32
  }
  func.func @transform_4(%arg0: i32, %arg1: i32) -> (i32, i32) {
    %c0_i32 = arith.constant 0 : i32
    %c0_i32_0 = arith.constant 0 : i32
    %c0_i32_1 = arith.constant 0 : i32
    return %c0_i32, %c0_i32_0 : i32, i32
  }
  func.func @transform_5(%arg0: i32, %arg1: i32) -> (i32, i32, i32) {
    %c0_i32 = arith.constant 0 : i32
    %c0_i32_0 = arith.constant 0 : i32
    return %arg0, %arg1, %c0_i32 : i32, i32, i32
  }
  func.func @transform_6(%arg0: i32, %arg1: i32) -> (i32, i32, i32) {
    %c0_i32 = arith.constant 0 : i32
    %c0_i32_0 = arith.constant 0 : i32
    return %arg0, %arg1, %c0_i32 : i32, i32, i32
  }
}

module attributes {stable_mosaic.version = 11 : i64} {
  func.func @kernel(%arg0: i32, %arg1: i32, %arg2: memref<1x128x32xf32, #tpu.memory_space<vmem>>, %arg3: memref<1x128x32xbf16, #tpu.memory_space<vmem>>, %arg4: memref<1x128x64xbf16, #tpu.memory_space<vmem>>, %arg5: memref<32x32xbf16, #tpu.memory_space<vmem>>, %arg6: memref<1x32xf32, #tpu.memory_space<vmem>>, %arg7: memref<1x128x32xf32, #tpu.memory_space<vmem>>, %arg8: memref<128x32xf32, #tpu.memory_space<vmem>>) attributes {dimension_semantics = [#tpu.dimension_semantics<parallel>, #tpu.dimension_semantics<parallel>], iteration_bounds = array<i64: 2, 1>, scalar_prefetch = 0 : i64, scratch_operands = 1 : i64, tpu.core_type = #tpu.core_type<tc>, window_params = [{transform_indices = @transform_0, window_bounds = array<i64: 1, 128, 32>}, {transform_indices = @transform_1, window_bounds = array<i64: 1, 128, 32>}, {transform_indices = @transform_2, window_bounds = array<i64: 1, 128, 64>}, {pipeline_mode = #tpu.pipeline_mode<synchronous>, transform_indices = @transform_3, window_bounds = array<i64: 32, 32>}, {pipeline_mode = #tpu.pipeline_mode<synchronous>, transform_indices = @transform_4, window_bounds = array<i64: 1, 32>}, {transform_indices = @transform_5, window_bounds = array<i64: 1, 128, 32>}]} {
    %c0 = arith.constant 0 : index
    %c0_0 = arith.constant 0 : index
    %c0_1 = arith.constant 0 : index
    %0 = vector.load %arg3[%c0, %c0_0, %c0_1] : memref<1x128x32xbf16, #tpu.memory_space<vmem>>, vector<1x128x32xbf16>
    %1 = vector.shape_cast %0 : vector<1x128x32xbf16> to vector<128x32xbf16>
    %c0_2 = arith.constant 0 : index
    %c0_3 = arith.constant 0 : index
    %c0_4 = arith.constant 0 : index
    %2 = vector.load %arg4[%c0_2, %c0_3, %c0_4] : memref<1x128x64xbf16, #tpu.memory_space<vmem>>, vector<1x128x64xbf16>
    %3 = vector.shape_cast %2 : vector<1x128x64xbf16> to vector<128x64xbf16>
    %4 = vector.extract_strided_slice %3 {offsets = [0, 0], sizes = [128, 32], strides = [1, 1]} : vector<128x64xbf16> to vector<128x32xbf16>
    %5 = vector.extract_strided_slice %3 {offsets = [0, 32], sizes = [128, 32], strides = [1, 1]} : vector<128x64xbf16> to vector<128x32xbf16>
    %6 = tpu.transpose %4, [1, 0] : vector<128x32xbf16> -> vector<32x128xbf16>
    %7 = tpu.iota {dimensions = array<i32: 1>} : vector<1x128xi32>
    %c16_i32 = arith.constant 16 : i32
    %8 = vector.broadcast %c16_i32 : i32 to vector<1x128xi32>
    %9 = arith.cmpi slt, %7, %8 : vector<1x128xi32>
    %10 = vector.extract_strided_slice %1 {offsets = [0, 0], sizes = [128, 8], strides = [1, 1]} : vector<128x32xbf16> to vector<128x8xbf16>
    %11 = vector.extract_strided_slice %6 {offsets = [0, 0], sizes = [8, 128], strides = [1, 1]} : vector<32x128xbf16> to vector<8x128xbf16>
    %cst = arith.constant dense<0.000000e+00> : vector<128x128xf32>
    %12 = tpu.matmul %10, %11, %cst {dimension_numbers = #tpu.dot_dimension_numbers<[1], [0], [0], [1], [0, 0, 1, 1], [], []>} : vector<128x8xbf16>, vector<8x128xbf16>, vector<128x128xf32> -> vector<128x128xf32>
    %cst_5 = arith.constant -1.000000e+30 : f32
    %13 = vector.shape_cast %9 : vector<1x128xi1> to vector<1x128xi1>
    %14 = vector.broadcast %13 : vector<1x128xi1> to vector<128x128xi1>
    %15 = vector.broadcast %cst_5 : f32 to vector<128x128xf32>
    %16 = arith.select %14, %12, %15 : vector<128x128xi1>, vector<128x128xf32>
    %cst_6 = arith.constant dense<0xFF800000> : vector<128xf32>
    %17 = vector.multi_reduction <maximumf>, %16, %cst_6 [1] : vector<128x128xf32> to vector<128xf32>
    %18 = vector.shape_cast %17 : vector<128xf32> to vector<128x1xf32>
    %19 = vector.broadcast %18 : vector<128x1xf32> to vector<128x128xf32>
    %20 = arith.subf %16, %19 : vector<128x128xf32>
    %21 = math.exp %20 : vector<128x128xf32>
    %cst_7 = arith.constant dense<0.000000e+00> : vector<128xf32>
    %22 = vector.multi_reduction <add>, %21, %cst_7 [1] : vector<128x128xf32> to vector<128xf32>
    %23 = vector.shape_cast %22 : vector<128xf32> to vector<128x1xf32>
    %24 = tpu.reciprocal %23 {approx = true} : vector<128x1xf32> -> vector<128x1xf32>
    %25 = vector.broadcast %24 : vector<128x1xf32> to vector<128x128xf32>
    %26 = arith.mulf %21, %25 : vector<128x128xf32>
    %27 = arith.truncf %26 : vector<128x128xf32> to vector<128x128xbf16>
    %28 = vector.extract_strided_slice %5 {offsets = [0, 0], sizes = [128, 8], strides = [1, 1]} : vector<128x32xbf16> to vector<128x8xbf16>
    %cst_8 = arith.constant dense<0.000000e+00> : vector<128x8xf32>
    %29 = tpu.matmul %27, %28, %cst_8 {dimension_numbers = #tpu.dot_dimension_numbers<[1], [0], [0], [1], [0, 0, 1, 1], [], []>} : vector<128x128xbf16>, vector<128x8xbf16>, vector<128x8xf32> -> vector<128x8xf32>
    %c0_9 = arith.constant 0 : index
    %c0_10 = arith.constant 0 : index
    %30 = vector.load %arg8[%c0_9, %c0_10] : memref<128x32xf32, #tpu.memory_space<vmem>>, vector<128x8xf32>
    tpu.vector_store %arg8[%c0_9, %c0_10], %29 {strides = array<i32>} : memref<128x32xf32, #tpu.memory_space<vmem>>, vector<128x8xf32>,
    %31 = vector.extract_strided_slice %1 {offsets = [0, 8], sizes = [128, 8], strides = [1, 1]} : vector<128x32xbf16> to vector<128x8xbf16>
    %32 = vector.extract_strided_slice %6 {offsets = [8, 0], sizes = [8, 128], strides = [1, 1]} : vector<32x128xbf16> to vector<8x128xbf16>
    %cst_11 = arith.constant dense<0.000000e+00> : vector<128x128xf32>
    %33 = tpu.matmul %31, %32, %cst_11 {dimension_numbers = #tpu.dot_dimension_numbers<[1], [0], [0], [1], [0, 0, 1, 1], [], []>} : vector<128x8xbf16>, vector<8x128xbf16>, vector<128x128xf32> -> vector<128x128xf32>
    %cst_12 = arith.constant -1.000000e+30 : f32
    %34 = vector.shape_cast %9 : vector<1x128xi1> to vector<1x128xi1>
    %35 = vector.broadcast %34 : vector<1x128xi1> to vector<128x128xi1>
    %36 = vector.broadcast %cst_12 : f32 to vector<128x128xf32>
    %37 = arith.select %35, %33, %36 : vector<128x128xi1>, vector<128x128xf32>
    %cst_13 = arith.constant dense<0xFF800000> : vector<128xf32>
    %38 = vector.multi_reduction <maximumf>, %37, %cst_13 [1] : vector<128x128xf32> to vector<128xf32>
    %39 = vector.shape_cast %38 : vector<128xf32> to vector<128x1xf32>
    %40 = vector.broadcast %39 : vector<128x1xf32> to vector<128x128xf32>
    %41 = arith.subf %37, %40 : vector<128x128xf32>
    %42 = math.exp %41 : vector<128x128xf32>
    %cst_14 = arith.constant dense<0.000000e+00> : vector<128xf32>
    %43 = vector.multi_reduction <add>, %42, %cst_14 [1] : vector<128x128xf32> to vector<128xf32>
    %44 = vector.shape_cast %43 : vector<128xf32> to vector<128x1xf32>
    %45 = tpu.reciprocal %44 {approx = true} : vector<128x1xf32> -> vector<128x1xf32>
    %46 = vector.broadcast %45 : vector<128x1xf32> to vector<128x128xf32>
    %47 = arith.mulf %42, %46 : vector<128x128xf32>
    %48 = arith.truncf %47 : vector<128x128xf32> to vector<128x128xbf16>
    %49 = vector.extract_strided_slice %5 {offsets = [0, 8], sizes = [128, 8], strides = [1, 1]} : vector<128x32xbf16> to vector<128x8xbf16>
    %cst_15 = arith.constant dense<0.000000e+00> : vector<128x8xf32>
    %50 = tpu.matmul %48, %49, %cst_15 {dimension_numbers = #tpu.dot_dimension_numbers<[1], [0], [0], [1], [0, 0, 1, 1], [], []>} : vector<128x128xbf16>, vector<128x8xbf16>, vector<128x8xf32> -> vector<128x8xf32>
    %c0_16 = arith.constant 0 : index
    %c8 = arith.constant 8 : index
    %51 = vector.load %arg8[%c0_16, %c8] : memref<128x32xf32, #tpu.memory_space<vmem>>, vector<128x8xf32>
    tpu.vector_store %arg8[%c0_16, %c8], %50 {strides = array<i32>} : memref<128x32xf32, #tpu.memory_space<vmem>>, vector<128x8xf32>,
    %52 = vector.extract_strided_slice %1 {offsets = [0, 16], sizes = [128, 8], strides = [1, 1]} : vector<128x32xbf16> to vector<128x8xbf16>
    %53 = vector.extract_strided_slice %6 {offsets = [16, 0], sizes = [8, 128], strides = [1, 1]} : vector<32x128xbf16> to vector<8x128xbf16>
    %cst_17 = arith.constant dense<0.000000e+00> : vector<128x128xf32>
    %54 = tpu.matmul %52, %53, %cst_17 {dimension_numbers = #tpu.dot_dimension_numbers<[1], [0], [0], [1], [0, 0, 1, 1], [], []>} : vector<128x8xbf16>, vector<8x128xbf16>, vector<128x128xf32> -> vector<128x128xf32>
    %cst_18 = arith.constant -1.000000e+30 : f32
    %55 = vector.shape_cast %9 : vector<1x128xi1> to vector<1x128xi1>
    %56 = vector.broadcast %55 : vector<1x128xi1> to vector<128x128xi1>
    %57 = vector.broadcast %cst_18 : f32 to vector<128x128xf32>
    %58 = arith.select %56, %54, %57 : vector<128x128xi1>, vector<128x128xf32>
    %cst_19 = arith.constant dense<0xFF800000> : vector<128xf32>
    %59 = vector.multi_reduction <maximumf>, %58, %cst_19 [1] : vector<128x128xf32> to vector<128xf32>
    %60 = vector.shape_cast %59 : vector<128xf32> to vector<128x1xf32>
    %61 = vector.broadcast %60 : vector<128x1xf32> to vector<128x128xf32>
    %62 = arith.subf %58, %61 : vector<128x128xf32>
    %63 = math.exp %62 : vector<128x128xf32>
    %cst_20 = arith.constant dense<0.000000e+00> : vector<128xf32>
    %64 = vector.multi_reduction <add>, %63, %cst_20 [1] : vector<128x128xf32> to vector<128xf32>
    %65 = vector.shape_cast %64 : vector<128xf32> to vector<128x1xf32>
    %66 = tpu.reciprocal %65 {approx = true} : vector<128x1xf32> -> vector<128x1xf32>
    %67 = vector.broadcast %66 : vector<128x1xf32> to vector<128x128xf32>
    %68 = arith.mulf %63, %67 : vector<128x128xf32>
    %69 = arith.truncf %68 : vector<128x128xf32> to vector<128x128xbf16>
    %70 = vector.extract_strided_slice %5 {offsets = [0, 16], sizes = [128, 8], strides = [1, 1]} : vector<128x32xbf16> to vector<128x8xbf16>
    %cst_21 = arith.constant dense<0.000000e+00> : vector<128x8xf32>
    %71 = tpu.matmul %69, %70, %cst_21 {dimension_numbers = #tpu.dot_dimension_numbers<[1], [0], [0], [1], [0, 0, 1, 1], [], []>} : vector<128x128xbf16>, vector<128x8xbf16>, vector<128x8xf32> -> vector<128x8xf32>
    %c0_22 = arith.constant 0 : index
    %c16 = arith.constant 16 : index
    %72 = vector.load %arg8[%c0_22, %c16] : memref<128x32xf32, #tpu.memory_space<vmem>>, vector<128x8xf32>
    tpu.vector_store %arg8[%c0_22, %c16], %71 {strides = array<i32>} : memref<128x32xf32, #tpu.memory_space<vmem>>, vector<128x8xf32>,
    %73 = vector.extract_strided_slice %1 {offsets = [0, 24], sizes = [128, 8], strides = [1, 1]} : vector<128x32xbf16> to vector<128x8xbf16>
    %74 = vector.extract_strided_slice %6 {offsets = [24, 0], sizes = [8, 128], strides = [1, 1]} : vector<32x128xbf16> to vector<8x128xbf16>
    %cst_23 = arith.constant dense<0.000000e+00> : vector<128x128xf32>
    %75 = tpu.matmul %73, %74, %cst_23 {dimension_numbers = #tpu.dot_dimension_numbers<[1], [0], [0], [1], [0, 0, 1, 1], [], []>} : vector<128x8xbf16>, vector<8x128xbf16>, vector<128x128xf32> -> vector<128x128xf32>
    %cst_24 = arith.constant -1.000000e+30 : f32
    %76 = vector.shape_cast %9 : vector<1x128xi1> to vector<1x128xi1>
    %77 = vector.broadcast %76 : vector<1x128xi1> to vector<128x128xi1>
    %78 = vector.broadcast %cst_24 : f32 to vector<128x128xf32>
    %79 = arith.select %77, %75, %78 : vector<128x128xi1>, vector<128x128xf32>
    %cst_25 = arith.constant dense<0xFF800000> : vector<128xf32>
    %80 = vector.multi_reduction <maximumf>, %79, %cst_25 [1] : vector<128x128xf32> to vector<128xf32>
    %81 = vector.shape_cast %80 : vector<128xf32> to vector<128x1xf32>
    %82 = vector.broadcast %81 : vector<128x1xf32> to vector<128x128xf32>
    %83 = arith.subf %79, %82 : vector<128x128xf32>
    %84 = math.exp %83 : vector<128x128xf32>
    %cst_26 = arith.constant dense<0.000000e+00> : vector<128xf32>
    %85 = vector.multi_reduction <add>, %84, %cst_26 [1] : vector<128x128xf32> to vector<128xf32>
    %86 = vector.shape_cast %85 : vector<128xf32> to vector<128x1xf32>
    %87 = tpu.reciprocal %86 {approx = true} : vector<128x1xf32> -> vector<128x1xf32>
    %88 = vector.broadcast %87 : vector<128x1xf32> to vector<128x128xf32>
    %89 = arith.mulf %84, %88 : vector<128x128xf32>
    %90 = arith.truncf %89 : vector<128x128xf32> to vector<128x128xbf16>
    %91 = vector.extract_strided_slice %5 {offsets = [0, 24], sizes = [128, 8], strides = [1, 1]} : vector<128x32xbf16> to vector<128x8xbf16>
    %cst_27 = arith.constant dense<0.000000e+00> : vector<128x8xf32>
    %92 = tpu.matmul %90, %91, %cst_27 {dimension_numbers = #tpu.dot_dimension_numbers<[1], [0], [0], [1], [0, 0, 1, 1], [], []>} : vector<128x128xbf16>, vector<128x8xbf16>, vector<128x8xf32> -> vector<128x8xf32>
    %c0_28 = arith.constant 0 : index
    %c24 = arith.constant 24 : index
    %93 = vector.load %arg8[%c0_28, %c24] : memref<128x32xf32, #tpu.memory_space<vmem>>, vector<128x8xf32>
    tpu.vector_store %arg8[%c0_28, %c24], %92 {strides = array<i32>} : memref<128x32xf32, #tpu.memory_space<vmem>>, vector<128x8xf32>,
    %c0_29 = arith.constant 0 : index
    %c0_30 = arith.constant 0 : index
    %94 = vector.load %arg8[%c0_29, %c0_30] : memref<128x32xf32, #tpu.memory_space<vmem>>, vector<128x32xf32>
    %95 = arith.truncf %94 : vector<128x32xf32> to vector<128x32xbf16>
    %c0_31 = arith.constant 0 : index
    %c0_32 = arith.constant 0 : index
    %96 = vector.load %arg5[%c0_31, %c0_32] : memref<32x32xbf16, #tpu.memory_space<vmem>>, vector<32x32xbf16>
    %cst_33 = arith.constant dense<0.000000e+00> : vector<128x32xf32>
    %97 = tpu.matmul %95, %96, %cst_33 {dimension_numbers = #tpu.dot_dimension_numbers<[1], [0], [0], [1], [0, 0, 1, 1], [], []>} : vector<128x32xbf16>, vector<32x32xbf16>, vector<128x32xf32> -> vector<128x32xf32>
    %c0_34 = arith.constant 0 : index
    %c0_35 = arith.constant 0 : index
    %98 = vector.load %arg6[%c0_34, %c0_35] : memref<1x32xf32, #tpu.memory_space<vmem>>, vector<1x32xf32>
    %99 = vector.broadcast %98 : vector<1x32xf32> to vector<128x32xf32>
    %100 = arith.addf %97, %99 : vector<128x32xf32>
    %c0_36 = arith.constant 0 : index
    %c0_37 = arith.constant 0 : index
    %c0_38 = arith.constant 0 : index
    %101 = vector.load %arg2[%c0_36, %c0_37, %c0_38] : memref<1x128x32xf32, #tpu.memory_space<vmem>>, vector<1x128x32xf32>
    %102 = vector.shape_cast %101 : vector<1x128x32xf32> to vector<128x32xf32>
    %103 = arith.addf %102, %100 : vector<128x32xf32>
    %c0_39 = arith.constant 0 : index
    %c0_40 = arith.constant 0 : index
    %c0_41 = arith.constant 0 : index
    %104 = vector.load %arg7[%c0_39, %c0_40, %c0_41] : memref<1x128x32xf32, #tpu.memory_space<vmem>>, vector<1x128x32xf32>
    %105 = vector.shape_cast %104 : vector<1x128x32xf32> to vector<128x32xf32>
    %106 = vector.shape_cast %103 : vector<128x32xf32> to vector<1x128x32xf32>
    tpu.vector_store %arg7[%c0_39, %c0_40, %c0_41], %106 {strides = array<i32>} : memref<1x128x32xf32, #tpu.memory_space<vmem>>, vector<1x128x32xf32>,
    return
  }
  func.func @transform_0(%arg0: i32, %arg1: i32) -> (i32, i32, i32) {
    %c0_i32 = arith.constant 0 : i32
    %c0_i32_0 = arith.constant 0 : i32
    return %arg0, %arg1, %c0_i32 : i32, i32, i32
  }
  func.func @transform_1(%arg0: i32, %arg1: i32) -> (i32, i32, i32) {
    %c0_i32 = arith.constant 0 : i32
    %c0_i32_0 = arith.constant 0 : i32
    return %arg0, %arg1, %c0_i32 : i32, i32, i32
  }
  func.func @transform_2(%arg0: i32, %arg1: i32) -> (i32, i32, i32) {
    %c0_i32 = arith.constant 0 : i32
    %c0_i32_0 = arith.constant 0 : i32
    %c0_i32_1 = arith.constant 0 : i32
    return %arg0, %c0_i32, %c0_i32_0 : i32, i32, i32
  }
  func.func @transform_3(%arg0: i32, %arg1: i32) -> (i32, i32) {
    %c0_i32 = arith.constant 0 : i32
    %c0_i32_0 = arith.constant 0 : i32
    %c0_i32_1 = arith.constant 0 : i32
    return %c0_i32, %c0_i32_0 : i32, i32
  }
  func.func @transform_4(%arg0: i32, %arg1: i32) -> (i32, i32) {
    %c0_i32 = arith.constant 0 : i32
    %c0_i32_0 = arith.constant 0 : i32
    %c0_i32_1 = arith.constant 0 : i32
    return %c0_i32, %c0_i32_0 : i32, i32
  }
  func.func @transform_5(%arg0: i32, %arg1: i32) -> (i32, i32, i32) {
    %c0_i32 = arith.constant 0 : i32
    %c0_i32_0 = arith.constant 0 : i32
    return %arg0, %arg1, %c0_i32 : i32, i32, i32
  }
}

module attributes {stable_mosaic.version = 11 : i64} {
  func.func @kernel(%arg0: i32, %arg1: i32, %arg2: memref<1x128x32xf32, #tpu.memory_space<vmem>>, %arg3: memref<1x32xf32, #tpu.memory_space<vmem>>, %arg4: memref<1x32xf32, #tpu.memory_space<vmem>>, %arg5: memref<32x64xbf16, #tpu.memory_space<vmem>>, %arg6: memref<1x64xf32, #tpu.memory_space<vmem>>, %arg7: memref<64x32xbf16, #tpu.memory_space<vmem>>, %arg8: memref<1x32xf32, #tpu.memory_space<vmem>>, %arg9: memref<1x128x32xf32, #tpu.memory_space<vmem>>) attributes {dimension_semantics = [#tpu.dimension_semantics<parallel>, #tpu.dimension_semantics<parallel>], iteration_bounds = array<i64: 2, 1>, scalar_prefetch = 0 : i64, scratch_operands = 0 : i64, tpu.core_type = #tpu.core_type<tc>, window_params = [{transform_indices = @transform_0, window_bounds = array<i64: 1, 128, 32>}, {pipeline_mode = #tpu.pipeline_mode<synchronous>, transform_indices = @transform_1, window_bounds = array<i64: 1, 32>}, {pipeline_mode = #tpu.pipeline_mode<synchronous>, transform_indices = @transform_2, window_bounds = array<i64: 1, 32>}, {pipeline_mode = #tpu.pipeline_mode<synchronous>, transform_indices = @transform_3, window_bounds = array<i64: 32, 64>}, {pipeline_mode = #tpu.pipeline_mode<synchronous>, transform_indices = @transform_4, window_bounds = array<i64: 1, 64>}, {pipeline_mode = #tpu.pipeline_mode<synchronous>, transform_indices = @transform_5, window_bounds = array<i64: 64, 32>}, {pipeline_mode = #tpu.pipeline_mode<synchronous>, transform_indices = @transform_6, window_bounds = array<i64: 1, 32>}, {transform_indices = @transform_7, window_bounds = array<i64: 1, 128, 32>}]} {
    %c0 = arith.constant 0 : index
    %c0_0 = arith.constant 0 : index
    %c0_1 = arith.constant 0 : index
    %0 = vector.load %arg2[%c0, %c0_0, %c0_1] : memref<1x128x32xf32, #tpu.memory_space<vmem>>, vector<1x128x32xf32>
    %1 = vector.shape_cast %0 : vector<1x128x32xf32> to vector<128x32xf32>
    %cst = arith.constant dense<0.000000e+00> : vector<128xf32>
    %2 = vector.multi_reduction <add>, %1, %cst [1] : vector<128x32xf32> to vector<128xf32>
    %3 = vector.shape_cast %2 : vector<128xf32> to vector<128x1xf32>
    %cst_2 = arith.constant 3.200000e+01 : f32
    %4 = vector.broadcast %cst_2 : f32 to vector<128x1xf32>
    %5 = arith.divf %3, %4 : vector<128x1xf32>
    %6 = vector.broadcast %5 : vector<128x1xf32> to vector<128x32xf32>
    %7 = arith.subf %1, %6 : vector<128x32xf32>
    %8 = arith.mulf %7, %7 : vector<128x32xf32>
    %cst_3 = arith.constant dense<0.000000e+00> : vector<128xf32>
    %9 = vector.multi_reduction <add>, %8, %cst_3 [1] : vector<128x32xf32> to vector<128xf32>
    %10 = vector.shape_cast %9 : vector<128xf32> to vector<128x1xf32>
    %cst_4 = arith.constant 3.200000e+01 : f32
    %11 = vector.broadcast %cst_4 : f32 to vector<128x1xf32>
    %12 = arith.divf %10, %11 : vector<128x1xf32>
    %13 = vector.broadcast %5 : vector<128x1xf32> to vector<128x32xf32>
    %14 = arith.subf %1, %13 : vector<128x32xf32>
    %cst_5 = arith.constant 9.99999997E-7 : f32
    %15 = vector.broadcast %cst_5 : f32 to vector<128x1xf32>
    %16 = arith.addf %12, %15 : vector<128x1xf32>
    %17 = math.rsqrt %16 : vector<128x1xf32>
    %18 = vector.broadcast %17 : vector<128x1xf32> to vector<128x32xf32>
    %19 = arith.mulf %14, %18 : vector<128x32xf32>
    %c0_6 = arith.constant 0 : index
    %c0_7 = arith.constant 0 : index
    %20 = vector.load %arg3[%c0_6, %c0_7] : memref<1x32xf32, #tpu.memory_space<vmem>>, vector<1x32xf32>
    %21 = vector.broadcast %20 : vector<1x32xf32> to vector<128x32xf32>
    %22 = arith.mulf %19, %21 : vector<128x32xf32>
    %c0_8 = arith.constant 0 : index
    %c0_9 = arith.constant 0 : index
    %23 = vector.load %arg4[%c0_8, %c0_9] : memref<1x32xf32, #tpu.memory_space<vmem>>, vector<1x32xf32>
    %24 = vector.broadcast %23 : vector<1x32xf32> to vector<128x32xf32>
    %25 = arith.addf %22, %24 : vector<128x32xf32>
    %26 = arith.truncf %25 : vector<128x32xf32> to vector<128x32xbf16>
    %c0_10 = arith.constant 0 : index
    %c0_11 = arith.constant 0 : index
    %27 = vector.load %arg5[%c0_10, %c0_11] : memref<32x64xbf16, #tpu.memory_space<vmem>>, vector<32x64xbf16>
    %cst_12 = arith.constant dense<0.000000e+00> : vector<128x64xf32>
    %28 = tpu.matmul %26, %27, %cst_12 {dimension_numbers = #tpu.dot_dimension_numbers<[1], [0], [0], [1], [0, 0, 1, 1], [], []>} : vector<128x32xbf16>, vector<32x64xbf16>, vector<128x64xf32> -> vector<128x64xf32>
    %c0_13 = arith.constant 0 : index
    %c0_14 = arith.constant 0 : index
    %29 = vector.load %arg6[%c0_13, %c0_14] : memref<1x64xf32, #tpu.memory_space<vmem>>, vector<1x64xf32>
    %30 = vector.broadcast %29 : vector<1x64xf32> to vector<128x64xf32>
    %31 = arith.addf %28, %30 : vector<128x64xf32>
    %cst_15 = arith.constant 5.000000e-01 : f32
    %32 = vector.broadcast %cst_15 : f32 to vector<128x64xf32>
    %33 = arith.mulf %32, %31 : vector<128x64xf32>
    %34 = arith.mulf %31, %31 : vector<128x64xf32>
    %35 = arith.mulf %34, %31 : vector<128x64xf32>
    %cst_16 = arith.constant 4.471500e-02 : f32
    %36 = vector.broadcast %cst_16 : f32 to vector<128x64xf32>
    %37 = arith.mulf %36, %35 : vector<128x64xf32>
    %38 = arith.addf %31, %37 : vector<128x64xf32>
    %cst_17 = arith.constant 0.797884583 : f32
    %39 = vector.broadcast %cst_17 : f32 to vector<128x64xf32>
    %40 = arith.mulf %39, %38 : vector<128x64xf32>
    %41 = math.tanh %40 : vector<128x64xf32>
    %cst_18 = arith.constant 1.000000e+00 : f32
    %42 = vector.broadcast %cst_18 : f32 to vector<128x64xf32>
    %43 = arith.addf %42, %41 : vector<128x64xf32>
    %44 = arith.mulf %33, %43 : vector<128x64xf32>
    %45 = arith.truncf %44 : vector<128x64xf32> to vector<128x64xbf16>
    %c0_19 = arith.constant 0 : index
    %c0_20 = arith.constant 0 : index
    %46 = vector.load %arg7[%c0_19, %c0_20] : memref<64x32xbf16, #tpu.memory_space<vmem>>, vector<64x32xbf16>
    %cst_21 = arith.constant dense<0.000000e+00> : vector<128x32xf32>
    %47 = tpu.matmul %45, %46, %cst_21 {dimension_numbers = #tpu.dot_dimension_numbers<[1], [0], [0], [1], [0, 0, 1, 1], [], []>} : vector<128x64xbf16>, vector<64x32xbf16>, vector<128x32xf32> -> vector<128x32xf32>
    %c0_22 = arith.constant 0 : index
    %c0_23 = arith.constant 0 : index
    %48 = vector.load %arg8[%c0_22, %c0_23] : memref<1x32xf32, #tpu.memory_space<vmem>>, vector<1x32xf32>
    %49 = vector.broadcast %48 : vector<1x32xf32> to vector<128x32xf32>
    %50 = arith.addf %47, %49 : vector<128x32xf32>
    %51 = arith.addf %1, %50 : vector<128x32xf32>
    %c0_24 = arith.constant 0 : index
    %c0_25 = arith.constant 0 : index
    %c0_26 = arith.constant 0 : index
    %52 = vector.load %arg9[%c0_24, %c0_25, %c0_26] : memref<1x128x32xf32, #tpu.memory_space<vmem>>, vector<1x128x32xf32>
    %53 = vector.shape_cast %52 : vector<1x128x32xf32> to vector<128x32xf32>
    %54 = vector.shape_cast %51 : vector<128x32xf32> to vector<1x128x32xf32>
    tpu.vector_store %arg9[%c0_24, %c0_25, %c0_26], %54 {strides = array<i32>} : memref<1x128x32xf32, #tpu.memory_space<vmem>>, vector<1x128x32xf32>,
    return
  }
  func.func @transform_0(%arg0: i32, %arg1: i32) -> (i32, i32, i32) {
    %c0_i32 = arith.constant 0 : i32
    %c0_i32_0 = arith.constant 0 : i32
    return %arg0, %arg1, %c0_i32 : i32, i32, i32
  }
  func.func @transform_1(%arg0: i32, %arg1: i32) -> (i32, i32) {
    %c0_i32 = arith.constant 0 : i32
    %c0_i32_0 = arith.constant 0 : i32
    %c0_i32_1 = arith.constant 0 : i32
    return %c0_i32, %c0_i32_0 : i32, i32
  }
  func.func @transform_2(%arg0: i32, %arg1: i32) -> (i32, i32) {
    %c0_i32 = arith.constant 0 : i32
    %c0_i32_0 = arith.constant 0 : i32
    %c0_i32_1 = arith.constant 0 : i32
    return %c0_i32, %c0_i32_0 : i32, i32
  }
  func.func @transform_3(%arg0: i32, %arg1: i32) -> (i32, i32) {
    %c0_i32 = arith.constant 0 : i32
    %c0_i32_0 = arith.constant 0 : i32
    %c0_i32_1 = arith.constant 0 : i32
    return %c0_i32, %c0_i32_0 : i32, i32
  }
  func.func @transform_4(%arg0: i32, %arg1: i32) -> (i32, i32) {
    %c0_i32 = arith.constant 0 : i32
    %c0_i32_0 = arith.constant 0 : i32
    %c0_i32_1 = arith.constant 0 : i32
    return %c0_i32, %c0_i32_0 : i32, i32
  }
  func.func @transform_5(%arg0: i32, %arg1: i32) -> (i32, i32) {
    %c0_i32 = arith.constant 0 : i32
    %c0_i32_0 = arith.constant 0 : i32
    %c0_i32_1 = arith.constant 0 : i32
    return %c0_i32, %c0_i32_0 : i32, i32
  }
  func.func @transform_6(%arg0: i32, %arg1: i32) -> (i32, i32) {
    %c0_i32 = arith.constant 0 : i32
    %c0_i32_0 = arith.constant 0 : i32
    %c0_i32_1 = arith.constant 0 : i32
    return %c0_i32, %c0_i32_0 : i32, i32
  }
  func.func @transform_7(%arg0: i32, %arg1: i32) -> (i32, i32, i32) {
    %c0_i32 = arith.constant 0 : i32
    %c0_i32_0 = arith.constant 0 : i32
    return %arg0, %arg1, %c0_i32 : i32, i32, i32
  }
}

module attributes {stable_mosaic.version = 11 : i64} {
  func.func @kernel(%arg0: i32, %arg1: i32, %arg2: memref<1x128x32xf32, #tpu.memory_space<vmem>>, %arg3: memref<1x32xf32, #tpu.memory_space<vmem>>, %arg4: memref<1x32xf32, #tpu.memory_space<vmem>>, %arg5: memref<1x128x32xf32, #tpu.memory_space<vmem>>) attributes {dimension_semantics = [#tpu.dimension_semantics<parallel>, #tpu.dimension_semantics<parallel>], iteration_bounds = array<i64: 2, 1>, scalar_prefetch = 0 : i64, scratch_operands = 0 : i64, tpu.core_type = #tpu.core_type<tc>, window_params = [{transform_indices = @transform_0, window_bounds = array<i64: 1, 128, 32>}, {pipeline_mode = #tpu.pipeline_mode<synchronous>, transform_indices = @transform_1, window_bounds = array<i64: 1, 32>}, {pipeline_mode = #tpu.pipeline_mode<synchronous>, transform_indices = @transform_2, window_bounds = array<i64: 1, 32>}, {transform_indices = @transform_3, window_bounds = array<i64: 1, 128, 32>}]} {
    %c0 = arith.constant 0 : index
    %c0_0 = arith.constant 0 : index
    %c0_1 = arith.constant 0 : index
    %0 = vector.load %arg2[%c0, %c0_0, %c0_1] : memref<1x128x32xf32, #tpu.memory_space<vmem>>, vector<1x128x32xf32>
    %1 = vector.shape_cast %0 : vector<1x128x32xf32> to vector<128x32xf32>
    %cst = arith.constant dense<0.000000e+00> : vector<128xf32>
    %2 = vector.multi_reduction <add>, %1, %cst [1] : vector<128x32xf32> to vector<128xf32>
    %3 = vector.shape_cast %2 : vector<128xf32> to vector<128x1xf32>
    %cst_2 = arith.constant 3.200000e+01 : f32
    %4 = vector.broadcast %cst_2 : f32 to vector<128x1xf32>
    %5 = arith.divf %3, %4 : vector<128x1xf32>
    %6 = vector.broadcast %5 : vector<128x1xf32> to vector<128x32xf32>
    %7 = arith.subf %1, %6 : vector<128x32xf32>
    %8 = arith.mulf %7, %7 : vector<128x32xf32>
    %cst_3 = arith.constant dense<0.000000e+00> : vector<128xf32>
    %9 = vector.multi_reduction <add>, %8, %cst_3 [1] : vector<128x32xf32> to vector<128xf32>
    %10 = vector.shape_cast %9 : vector<128xf32> to vector<128x1xf32>
    %cst_4 = arith.constant 3.200000e+01 : f32
    %11 = vector.broadcast %cst_4 : f32 to vector<128x1xf32>
    %12 = arith.divf %10, %11 : vector<128x1xf32>
    %13 = vector.broadcast %5 : vector<128x1xf32> to vector<128x32xf32>
    %14 = arith.subf %1, %13 : vector<128x32xf32>
    %cst_5 = arith.constant 9.99999997E-7 : f32
    %15 = vector.broadcast %cst_5 : f32 to vector<128x1xf32>
    %16 = arith.addf %12, %15 : vector<128x1xf32>
    %17 = math.rsqrt %16 : vector<128x1xf32>
    %18 = vector.broadcast %17 : vector<128x1xf32> to vector<128x32xf32>
    %19 = arith.mulf %14, %18 : vector<128x32xf32>
    %c0_6 = arith.constant 0 : index
    %c0_7 = arith.constant 0 : index
    %20 = vector.load %arg3[%c0_6, %c0_7] : memref<1x32xf32, #tpu.memory_space<vmem>>, vector<1x32xf32>
    %21 = vector.broadcast %20 : vector<1x32xf32> to vector<128x32xf32>
    %22 = arith.mulf %19, %21 : vector<128x32xf32>
    %c0_8 = arith.constant 0 : index
    %c0_9 = arith.constant 0 : index
    %23 = vector.load %arg4[%c0_8, %c0_9] : memref<1x32xf32, #tpu.memory_space<vmem>>, vector<1x32xf32>
    %24 = vector.broadcast %23 : vector<1x32xf32> to vector<128x32xf32>
    %25 = arith.addf %22, %24 : vector<128x32xf32>
    %c0_10 = arith.constant 0 : index
    %c0_11 = arith.constant 0 : index
    %c0_12 = arith.constant 0 : index
    %26 = vector.load %arg5[%c0_10, %c0_11, %c0_12] : memref<1x128x32xf32, #tpu.memory_space<vmem>>, vector<1x128x32xf32>
    %27 = vector.shape_cast %26 : vector<1x128x32xf32> to vector<128x32xf32>
    %28 = vector.shape_cast %25 : vector<128x32xf32> to vector<1x128x32xf32>
    tpu.vector_store %arg5[%c0_10, %c0_11, %c0_12], %28 {strides = array<i32>} : memref<1x128x32xf32, #tpu.memory_space<vmem>>, vector<1x128x32xf32>,
    return
  }
  func.func @transform_0(%arg0: i32, %arg1: i32) -> (i32, i32, i32) {
    %c0_i32 = arith.constant 0 : i32
    %c0_i32_0 = arith.constant 0 : i32
    return %arg0, %arg1, %c0_i32 : i32, i32, i32
  }
  func.func @transform_1(%arg0: i32, %arg1: i32) -> (i32, i32) {
    %c0_i32 = arith.constant 0 : i32
    %c0_i32_0 = arith.constant 0 : i32
    %c0_i32_1 = arith.constant 0 : i32
    return %c0_i32, %c0_i32_0 : i32, i32
  }
  func.func @transform_2(%arg0: i32, %arg1: i32) -> (i32, i32) {
    %c0_i32 = arith.constant 0 : i32
    %c0_i32_0 = arith.constant 0 : i32
    %c0_i32_1 = arith.constant 0 : i32
    return %c0_i32, %c0_i32_0 : i32, i32
  }
  func.func @transform_3(%arg0: i32, %arg1: i32) -> (i32, i32, i32) {
    %c0_i32 = arith.constant 0 : i32
    %c0_i32_0 = arith.constant 0 : i32
    return %arg0, %arg1, %c0_i32 : i32, i32, i32
  }
}

</mosaic_0001>

<bundles_post_ra>
// kernel: siglip_vision_model.8
= control target key start
LH: loop header
LB: loop body
LE: loop exit
PB: predicated region body
PF: predicated region fallthrough
CT: control target
= control target key end

     0   :  { %s771_s12 = smov 0   ;;  %s773_s13 = smov 0   ;;  %s924_s0 = inlined_call_operand.vmem [shape: bf16[2,128,128], index: 0, kind: input, shape index: {}]   ;;  %s925_s1 = inlined_call_operand.vmem [shape: bf16[128,32], index: 1, kind: input, shape index: {}]   ;;  %s926_s2 = inlined_call_operand.vmem [shape: f32[128,32], index: 2, kind: input, shape index: {}]   ;;  %s927_s3 = inlined_call_operand.vmem [shape: f32[2,128,32], index: 3, kind: output, shape index: {}]  }
   0x1   :  { %s775_s14 = smov 0  }
   0x2 LB: > { %s25_s15 = sadd.s32 1, %s745_s13  ;;  %p598_p0 = scmp.ge.s32.totalorder %s749_s14, 1  ;;  %s749_s14 = sphi %s775_s14, %s13_s14   ;;  %s745_s13 = sphi %s773_s13, %s929_s13   ;;  %s741_s12 = sphi %s771_s12, %s928_s12  }
   0x3   : > { %p27_p1 = scmp.ge.s32.totalorder %s25_s15, 2  ;;  %p169_p2 = scmp.lt.s32.totalorder %s749_s14, 3 }
   0x5   : > { %s931_s15 = smov (%p27_p1, %s25_s15), 0  ;;  %p170_p3 = pnand %p598_p0, %p169_p2 }
   0x6   : > { %p207_p4 = scmp.lt.s32.totalorder (!%p170_p3), %s741_s12, 1 }
   0x7   : > { %173 = sbr.rel (%p170_p3) target bundleno = 255 (0xff), region = 32 }
   0xc   : > { %v711_v0 = vld [vmem:[%s925_s1 + $0x38] sm:$0xff]   ;;  %v712_v1 = vld [vmem:[%s925_s1 + $0x30] sm:$0xff]   ;;  %s933_s12 = smov (!%p207_p4, %s741_s12), 1  ;;  %v713_v2 = vld [vmem:[%s925_s1 + $0x28] sm:$0xff]   ;;  %vm474_vm0 = vcmask 261120  }
   0xd   : > { %639 = vmatprep.subr.bf16.mxu0 %v711_v0  ;;  %671 = vmatprep.subr.bf16.mxu1 %v711_v0  ;;  %s621_s22 = sshll.u32 %s933_s12, 6  ;;  %v714_v3 = vld [vmem:[%s925_s1 + $0x20] sm:$0xff]   ;;  %v715_v6 = vld [vmem:[%s925_s1 + $0x18] sm:$0xff]   ;;  %v716_v7 = vld [vmem:[%s925_s1 + $0x10] sm:$0xff]   ;;  %s622_s9 = sshll.u32 %s933_s12, 7 }
   0xe   : > { %640 = vmatpush3.bf16.msra.mxu0 %v711_v0  ;;  %679 = vmatpush3.bf16.msra.mxu1 %v711_v0  ;;  %s804_s25 = scalar_lea.vmem %s924_s0, %s621_s22  ;;  %v717_v8 = vld [vmem:[%s925_s1 + $0x8] sm:$0xff]   ;;  %v718_v9 = vld [vmem:[%s925_s1] sm:$0xff]   ;;  %v267_v16 = vld [vmem:[%s926_s2 + $0x10] sm:$0xff]  ;;  %s839_s20 = scalar_lea.vmem %s927_s3, %s622_s9 }
   0xf   : > { %641 = vmatprep.subr.bf16.mxu0 %v712_v1  ;;  %672 = vmatprep.subr.bf16.mxu1 %v712_v1  ;;  %v719_v4 = vld [vmem:[%s804_s25] sm:$0xff]   ;;  %v721_v10 = vld [vmem:[%s804_s25 + $0x8] sm:$0xff]   ;;  %v723_v12 = vld [vmem:[%s804_s25 + $0x10] sm:$0xff]  }
  0x10   : > { %v720_v5 = vld [vmem:[%s804_s25 + $0x20] sm:$0xff]   ;;  %655 = vmatprep.mubr.bf16.mxu0 %v719_v4  ;;  %v722_v11 = vld [vmem:[%s804_s25 + $0x28] sm:$0xff]   ;;  %v724_v13 = vld [vmem:[%s804_s25 + $0x30] sm:$0xff]  }
  0x11   : > { %663 = vmatprep.mubr.bf16.mxu1 %v720_v5  ;;  %v725_v14 = vld [vmem:[%s804_s25 + $0x18] sm:$0xff]   ;;  %v275_v17 = vld [vmem:[%s926_s2 + $0x50] sm:$0xff]  ;;  %v265_v20 = vld [vmem:[%s926_s2] sm:$0xff] }
  0x12   : > { %642 = vmatpush3.bf16.msra.mxu0 %v712_v1  ;;  %680 = vmatpush3.bf16.msra.mxu1 %v712_v1  ;;  %v726_v15 = vld [vmem:[%s804_s25 + $0x38] sm:$0xff]   ;;  %v273_v21 = vld [vmem:[%s926_s2 + $0x40] sm:$0xff]  ;;  %v266_v32 = vld [vmem:[%s926_s2 + $0x8] sm:$0xff] }
  0x13   : > { %643 = vmatprep.subr.bf16.mxu0 %v713_v2  ;;  %673 = vmatprep.subr.bf16.mxu1 %v713_v2  ;;  %v268_v26 = vld [vmem:[%s926_s2 + $0x18] sm:$0xff]  ;;  %v274_v33 = vld [vmem:[%s926_s2 + $0x48] sm:$0xff]  ;;  %v271_v38 = vld [vmem:[%s926_s2 + $0x30] sm:$0xff] }
  0x14   : > { %v276_v27 = vld [vmem:[%s926_s2 + $0x58] sm:$0xff]  ;;  %v279_v39 = vld [vmem:[%s926_s2 + $0x70] sm:$0xff]  ;;  %v269_v44 = vld [vmem:[%s926_s2 + $0x20] sm:$0xff] }
  0x15   : > { %v277_v45 = vld [vmem:[%s926_s2 + $0x60] sm:$0xff]  ;;  %v272_v50 = vld [vmem:[%s926_s2 + $0x38] sm:$0xff]  ;;  %v270_v56 = vld [vmem:[%s926_s2 + $0x28] sm:$0xff] }
  0x16   : > { %644 = vmatpush3.bf16.msra.mxu0 %v713_v2  ;;  %681 = vmatpush3.bf16.msra.mxu1 %v713_v2  ;;  %v280_v51 = vld [vmem:[%s926_s2 + $0x78] sm:$0xff]  ;;  %v278_v57 = vld [vmem:[%s926_s2 + $0x68] sm:$0xff] }
  0x17   : > { %645 = vmatprep.subr.bf16.mxu0 %v714_v3  ;;  %674 = vmatprep.subr.bf16.mxu1 %v714_v3 }
  0x1a   : > { %646 = vmatpush3.bf16.msra.mxu0 %v714_v3  ;;  %682 = vmatpush3.bf16.msra.mxu1 %v714_v3 }
  0x1b   : > { %647 = vmatprep.subr.bf16.mxu0 %v715_v6  ;;  %675 = vmatprep.subr.bf16.mxu1 %v715_v6 }
  0x1e   : > { %648 = vmatpush3.bf16.msra.mxu0 %v715_v6  ;;  %683 = vmatpush3.bf16.msra.mxu1 %v715_v6 }
  0x1f   : > { %649 = vmatprep.subr.bf16.mxu0 %v716_v7  ;;  %676 = vmatprep.subr.bf16.mxu1 %v716_v7 }
  0x22   : > { %650 = vmatpush3.bf16.msra.mxu0 %v716_v7  ;;  %684 = vmatpush3.bf16.msra.mxu1 %v716_v7 }
  0x23   : > { %651 = vmatprep.subr.bf16.mxu0 %v717_v8  ;;  %677 = vmatprep.subr.bf16.mxu1 %v717_v8 }
  0x26   : > { %652 = vmatpush3.bf16.msra.mxu0 %v717_v8  ;;  %685 = vmatpush3.bf16.msra.mxu1 %v717_v8 }
  0x27   : > { %653 = vmatprep.subr.bf16.mxu0 %v718_v9  ;;  %678 = vmatprep.subr.bf16.mxu1 %v718_v9 }
  0x2a   : > { %654 = vmatpush3.bf16.msra.mxu0 %v718_v9  ;;  %686 = vmatpush3.bf16.msra.mxu1 %v718_v9 }
  0x2d   : > { %656 = vmatmul.mubr.bf16.vlgmr.msra.gmra.mxu0 %v721_v10  ;;  %664 = vmatmul.mubr.bf16.vlgmr.msra.gmra.mxu1 %v722_v11 }
  0x2e   : > { %659 = vmatprep.mubr.bf16.mxu0 %v723_v12  ;;  %667 = vmatprep.mubr.bf16.mxu1 %v724_v13 }
  0x35   : > { %660 = vmatmul.mubr.bf16.gmra.mxu0 %v725_v14  ;;  %668 = vmatmul.mubr.bf16.gmra.mxu1 %v726_v15 }
  0xed   : > { %v657_v18 = vpop.f32.mrf.mxu0  ;;  %v665_v19 = vpop.f32.mrf.mxu1 }
  0xee   : > { %v420_v22 = vadd.f32 %v657_v18, %v267_v16  ;;  %v452_v23 = vadd.f32 %v665_v19, %v275_v17 }
  0xef   : > { %v411_v24 = vpop.f32.mrf.mxu0  ;;  %v443_v25 = vpop.f32.mrf.mxu1 }
  0xf0   : > { %477 = vst.msk [vmem:[%s839_s20 + $0x10] sm:$0xff] %vm474_vm0, %v420_v22  ;;  %485 = vst.msk [vmem:[%s839_s20 + $0x50] sm:$0xff] %vm474_vm0, %v452_v23  ;;  %v412_v28 = vadd.f32 %v411_v24, %v265_v20  ;;  %v444_v29 = vadd.f32 %v443_v25, %v273_v21 }
  0xf1   : > { %v658_v30 = vpop.f32.mrf.mxu0  ;;  %v666_v31 = vpop.f32.mrf.mxu1 }
  0xf2   : > { %475 = vst.msk [vmem:[%s839_s20] sm:$0xff] %vm474_vm0, %v412_v28  ;;  %483 = vst.msk [vmem:[%s839_s20 + $0x40] sm:$0xff] %vm474_vm0, %v444_v29  ;;  %v423_v34 = vadd.f32 %v658_v30, %v268_v26  ;;  %v455_v35 = vadd.f32 %v666_v31, %v276_v27 }
  0xf3   : > { %v414_v36 = vpop.f32.mrf.mxu0  ;;  %v446_v37 = vpop.f32.mrf.mxu1 }
  0xf4   : > { %478 = vst.msk [vmem:[%s839_s20 + $0x18] sm:$0xff] %vm474_vm0, %v423_v34  ;;  %486 = vst.msk [vmem:[%s839_s20 + $0x58] sm:$0xff] %vm474_vm0, %v455_v35  ;;  %v415_v40 = vadd.f32 %v414_v36, %v266_v32  ;;  %v447_v41 = vadd.f32 %v446_v37, %v274_v33 }
  0xf5   : > { %v661_v42 = vpop.f32.mrf.mxu0  ;;  %v669_v43 = vpop.f32.mrf.mxu1 }
  0xf6   : > { %476 = vst.msk [vmem:[%s839_s20 + $0x8] sm:$0xff] %vm474_vm0, %v415_v40  ;;  %484 = vst.msk [vmem:[%s839_s20 + $0x48] sm:$0xff] %vm474_vm0, %v447_v41  ;;  %v436_v46 = vadd.f32 %v661_v42, %v271_v38  ;;  %v468_v47 = vadd.f32 %v669_v43, %v279_v39 }
  0xf7   : > { %v427_v48 = vpop.f32.mrf.mxu0  ;;  %v459_v49 = vpop.f32.mrf.mxu1 }
  0xf8   : > { %481 = vst.msk [vmem:[%s839_s20 + $0x30] sm:$0xff] %vm474_vm0, %v436_v46  ;;  %489 = vst.msk [vmem:[%s839_s20 + $0x70] sm:$0xff] %vm474_vm0, %v468_v47  ;;  %v428_v52 = vadd.f32 %v427_v48, %v269_v44  ;;  %v460_v53 = vadd.f32 %v459_v49, %v277_v45 }
  0xf9   : > { %v662_v54 = vpop.f32.mrf.mxu0  ;;  %v670_v55 = vpop.f32.mrf.mxu1 }
  0xfa   : > { %479 = vst.msk [vmem:[%s839_s20 + $0x20] sm:$0xff] %vm474_vm0, %v428_v52  ;;  %487 = vst.msk [vmem:[%s839_s20 + $0x60] sm:$0xff] %vm474_vm0, %v460_v53  ;;  %v439_v58 = vadd.f32 %v662_v54, %v272_v50  ;;  %v471_v59 = vadd.f32 %v670_v55, %v280_v51 }
  0xfb   : > { %v430_v60 = vpop.f32.mrf.mxu0  ;;  %v462_v61 = vpop.f32.mrf.mxu1 }
  0xfc   : > { %482 = vst.msk [vmem:[%s839_s20 + $0x38] sm:$0xff] %vm474_vm0, %v439_v58  ;;  %490 = vst.msk [vmem:[%s839_s20 + $0x78] sm:$0xff] %vm474_vm0, %v471_v59  ;;  %v431_v62 = vadd.f32 %v430_v60, %v270_v56  ;;  %v463_v63 = vadd.f32 %v462_v61, %v278_v57 }
  0xfe   : > { %480 = vst.msk [vmem:[%s839_s20 + $0x28] sm:$0xff] %vm474_vm0, %v431_v62  ;;  %488 = vst.msk [vmem:[%s839_s20 + $0x68] sm:$0xff] %vm474_vm0, %v463_v63 }
  0xff PF: > { %s13_s14 = sadd.s32 1, %s749_s14   ;;  %s928_s12 = smov %s745_s13 }
 0x100   : > { %p10_p5 = scmp.ge.s32.totalorder %s13_s14, 4   ;;  %s929_s13 = smov %s931_s15 }
 0x102   :  { %12 = sbr.rel (!%p10_p5) target bundleno = 2 (0x2), region = 65 }

// kernel: siglip_vision_model.9
= control target key start
LH: loop header
LB: loop body
LE: loop exit
PB: predicated region body
PF: predicated region fallthrough
CT: control target
= control target key end

     0   :  { %s1237_s21 = smov 0   ;;  %s1239_s22 = smov 0   ;;  %s1612_s0 = inlined_call_operand.vmem [shape: f32[2,128,32], index: 0, kind: input, shape index: {}]   ;;  %s1613_s1 = inlined_call_operand.vmem [shape: f32[1,32], index: 1, kind: input, shape index: {}]   ;;  %s1614_s2 = inlined_call_operand.vmem [shape: f32[1,32], index: 2, kind: input, shape index: {}]   ;;  %s1615_s3 = inlined_call_operand.vmem [shape: bf16[32,96], index: 3, kind: input, shape index: {}]   ;;  %s1616_s4 = inlined_call_operand.vmem [shape: f32[1,96], index: 4, kind: input, shape index: {}]   ;;  %s1617_s5 = inlined_call_operand.vmem [shape: bf16[2,128,32], index: 5, kind: output, shape index: {0}]   ;;  %s1618_s6 = inlined_call_operand.vmem [shape: bf16[2,128,64], index: 6, kind: output, shape index: {1}]  }
   0x1   :  { %s1241_s23 = smov 0  }
   0x2 LB: > { %s29_s24 = sadd.s32 1, %s1195_s22  ;;  %p1027_p0 = scmp.ge.s32.totalorder %s1199_s23, 1  ;;  %s1199_s23 = sphi %s1241_s23, %s17_s23   ;;  %s1195_s22 = sphi %s1239_s22, %s1620_s22   ;;  %s1191_s21 = sphi %s1237_s21, %s1619_s21  }
   0x3   : > { %p31_p1 = scmp.ge.s32.totalorder %s29_s24, 2  ;;  %p238_p2 = scmp.lt.s32.totalorder %s1199_s23, 3 }
   0x5   : > { %s1622_s24 = smov (%p31_p1, %s29_s24), 0  ;;  %p239_p3 = pnand %p1027_p0, %p238_p2 }
   0x6   : > { %p286_p4 = scmp.lt.s32.totalorder (!%p239_p3), %s1191_s21, 1  ;;  %s1201_s19 = smov (!%p239_p3), 96  }
   0x7   : > { %242 = sbr.rel (%p239_p3) target bundleno = 683 (0x2ab), region = 40 }
   0xc   : > { %s1624_s21 = smov (!%p286_p4, %s1191_s21), 1  ;;  %vm332_vm0 = vcmask 261120   ;;  %vm804_vm1 = vcmask 257024   ;;  %vm869_vm2 = vcmask 519168  }
   0xd   : > { %s1065_s25 = sshll.u32 %s1624_s21, 7  ;;  %s1066_s15 = sshll.u32 %s1624_s21, 6 }
   0xe   : > { %s1261_s28 = scalar_lea.vmem %s1612_s0, %s1065_s25  ;;  %s1499_s18 = scalar_lea.vmem %s1617_s5, %s1066_s15 }
   0xf   : > { %v316_v0 = vld [vmem:[%s1261_s28] sm:$0xff]  ;;  %v317_v2 = vld [vmem:[%s1261_s28 + $0x8] sm:$0xff]  ;;  %v318_v8 = vld [vmem:[%s1261_s28 + $0x10] sm:$0xff]  ;;  %s1569_s26 = scalar_lea.vmem %s1618_s6, %s1066_s15 }
  0x10   : > { %v324_v1 = vld [vmem:[%s1261_s28 + $0x40] sm:$0xff]  ;;  %v333_v3 = vsel %vm332_vm0, %v316_v0, 0.0  ;;  %v325_v5 = vld [vmem:[%s1261_s28 + $0x48] sm:$0xff]  ;;  %v336_v6 = vsel %vm332_vm0, %v317_v2, 0.0  ;;  %v319_v9 = vld [vmem:[%s1261_s28 + $0x18] sm:$0xff]  ;;  %v339_v10 = vsel %vm332_vm0, %v318_v8, 0.0 }
  0x11   : > { %v357_v4 = vsel %vm332_vm0, %v324_v1, 0.0  ;;  %334 = vadd.xlane.f32.xlu0 %v333_v3  ;;  %v360_v7 = vsel %vm332_vm0, %v325_v5, 0.0  ;;  %v342_v11 = vsel %vm332_vm0, %v319_v9, 0.0  ;;  %v1276_v12 = vld [vmem:[%s1261_s28 + $0x50] sm:$0xff]  ;;  %v1279_v13 = vld [vmem:[%s1261_s28 + $0x58] sm:$0xff]  ;;  %v1286_v16 = vld [vmem:[%s1261_s28 + $0x20] sm:$0xff] }
  0x12   : > { %358 = vadd.xlane.f32.xlu1 %v357_v4  ;;  %v363_v14 = vsel %vm332_vm0, %v1276_v12, 0.0  ;;  %v366_v15 = vsel %vm332_vm0, %v1279_v13, 0.0  ;;  %v1289_v17 = vld [vmem:[%s1261_s28 + $0x28] sm:$0xff]  ;;  %v345_v18 = vsel %vm332_vm0, %v1286_v16, 0.0  ;;  %v1296_v20 = vld [vmem:[%s1261_s28 + $0x60] sm:$0xff]  ;;  %v1306_v24 = vld [vmem:[%s1261_s28 + $0x30] sm:$0xff] }
  0x13   : > { %v348_v19 = vsel %vm332_vm0, %v1289_v17, 0.0  ;;  %v1299_v21 = vld [vmem:[%s1261_s28 + $0x68] sm:$0xff]  ;;  %v369_v22 = vsel %vm332_vm0, %v1296_v20, 0.0  ;;  %v1309_v25 = vld [vmem:[%s1261_s28 + $0x38] sm:$0xff]  ;;  %v351_v26 = vsel %vm332_vm0, %v1306_v24, 0.0  ;;  %v1316_v28 = vld [vmem:[%s1261_s28 + $0x70] sm:$0xff] }
  0x14   : > { %v372_v23 = vsel %vm332_vm0, %v1299_v21, 0.0  ;;  %v354_v27 = vsel %vm332_vm0, %v1309_v25, 0.0  ;;  %v1319_v29 = vld [vmem:[%s1261_s28 + $0x78] sm:$0xff]  ;;  %v375_v30 = vsel %vm332_vm0, %v1316_v28, 0.0 }
  0x15   : > { %337 = vadd.xlane.f32.xlu0 %v336_v6  ;;  %v378_v31 = vsel %vm332_vm0, %v1319_v29, 0.0 }
  0x16   : > { %361 = vadd.xlane.f32.xlu1 %v360_v7 }
  0x19   : > { %340 = vadd.xlane.f32.xlu0 %v339_v10 }
  0x1a   : > { %343 = vadd.xlane.f32.xlu1 %v342_v11 }
  0x1d   : > { %364 = vadd.xlane.f32.xlu0 %v363_v14 }
  0x1e   : > { %367 = vadd.xlane.f32.xlu1 %v366_v15 }
  0x21   : > { %346 = vadd.xlane.f32.xlu0 %v345_v18 }
  0x22   : > { %349 = vadd.xlane.f32.xlu1 %v348_v19 }
  0x25   : > { %370 = vadd.xlane.f32.xlu0 %v369_v22 }
  0x26   : > { %373 = vadd.xlane.f32.xlu1 %v372_v23 }
  0x29   : > { %352 = vadd.xlane.f32.xlu0 %v351_v26 }
  0x2a   : > { %355 = vadd.xlane.f32.xlu1 %v354_v27 }
  0x2d   : > { %376 = vadd.xlane.f32.xlu0 %v375_v30 }
  0x2e   : > { %379 = vadd.xlane.f32.xlu1 %v378_v31 }
  0x9a   : > { %v335_v32 = vpop.xlane.xlu0 %334 }
  0x9b   : > { %v359_v33 = vpop.xlane.xlu1 %358  ;;  %v382_v34 = vmul.f32 0.03125, %v335_v32 }
  0x9c   : > { %v390_v35 = vmul.f32 0.03125, %v359_v33 }
  0x9d   : > { %v1325_v36 = vsub.f32 %v316_v0, %v382_v34 }
  0x9e   : > { %v1327_v37 = vsub.f32 %v324_v1, %v390_v35  ;;  %v338_v38 = vpop.xlane.xlu0 %337 }
  0x9f   : > { %v362_v39 = vpop.xlane.xlu1 %361  ;;  %v383_v40 = vmul.f32 0.03125, %v338_v38  ;;  %v414_v42 = vmul.f32 %v1325_v36, %v1325_v36 }
  0xa0   : > { %v391_v41 = vmul.f32 0.03125, %v362_v39  ;;  %v422_v43 = vmul.f32 %v1327_v37, %v1327_v37 }
  0xa1   : > { %v1333_v44 = vsub.f32 %v317_v2, %v383_v40  ;;  %v430_v46 = vsel %vm332_vm0, %v414_v42, 0.0 }
  0xa2   : > { %v1335_v45 = vsub.f32 %v325_v5, %v391_v41  ;;  %431 = vadd.xlane.f32.xlu0 %v430_v46  ;;  %v341_v47 = vpop.xlane.xlu0 %340  ;;  %v454_v49 = vsel %vm332_vm0, %v422_v43, 0.0 }
  0xa3   : > { %v344_v48 = vpop.xlane.xlu1 %343  ;;  %v384_v50 = vmul.f32 0.03125, %v341_v47  ;;  %v415_v52 = vmul.f32 %v1333_v44, %v1333_v44 }
  0xa4   : > { %v385_v51 = vmul.f32 0.03125, %v344_v48  ;;  %v423_v53 = vmul.f32 %v1335_v45, %v1335_v45 }
  0xa5   : > { %v1343_v54 = vsub.f32 %v318_v8, %v384_v50  ;;  %v433_v56 = vsel %vm332_vm0, %v415_v52, 0.0 }
  0xa6   : > { %v1345_v55 = vsub.f32 %v319_v9, %v385_v51  ;;  %455 = vadd.xlane.f32.xlu0 %v454_v49  ;;  %434 = vadd.xlane.f32.xlu1 %v433_v56  ;;  %v365_v57 = vpop.xlane.xlu0 %364  ;;  %v457_v59 = vsel %vm332_vm0, %v423_v53, 0.0  ;;  %v1144_v53 = vld [vmem:[%s1615_s3] sm:$0xff]  }
  0xa7   : > { %v368_v58 = vpop.xlane.xlu1 %367  ;;  %v392_v60 = vmul.f32 0.03125, %v365_v57  ;;  %v416_v62 = vmul.f32 %v1343_v54, %v1343_v54 }
  0xa8   : > { %v393_v61 = vmul.f32 0.03125, %v368_v58  ;;  %v417_v63 = vmul.f32 %v1345_v55, %v1345_v55 }
  0xa9   : > { %v1354_v0 = vsub.f32 %v1276_v12, %v392_v60  ;;  %v436_v2 = vsel %vm332_vm0, %v416_v62, 0.0 }
  0xaa   : > { %v1357_v1 = vsub.f32 %v1279_v13, %v393_v61  ;;  %458 = vadd.xlane.f32.xlu1 %v457_v59  ;;  %437 = vadd.xlane.f32.xlu0 %v436_v2  ;;  %v347_v3 = vpop.xlane.xlu0 %346  ;;  %v439_v5 = vsel %vm332_vm0, %v417_v63, 0.0 }
  0xab   : > { %v350_v4 = vpop.xlane.xlu1 %349  ;;  %v386_v6 = vmul.f32 0.03125, %v347_v3  ;;  %v424_v8 = vmul.f32 %v1354_v0, %v1354_v0 }
  0xac   : > { %v387_v7 = vmul.f32 0.03125, %v350_v4  ;;  %v425_v9 = vmul.f32 %v1357_v1, %v1357_v1 }
  0xad   : > { %v1366_v10 = vsub.f32 %v1286_v16, %v386_v6  ;;  %v460_v12 = vsel %vm332_vm0, %v424_v8, 0.0 }
  0xae   : > { %v1369_v11 = vsub.f32 %v1289_v17, %v387_v7  ;;  %440 = vadd.xlane.f32.xlu1 %v439_v5  ;;  %461 = vadd.xlane.f32.xlu0 %v460_v12  ;;  %v371_v13 = vpop.xlane.xlu0 %370  ;;  %v463_v15 = vsel %vm332_vm0, %v425_v9, 0.0 }
  0xaf   : > { %v374_v14 = vpop.xlane.xlu1 %373  ;;  %v394_v18 = vmul.f32 0.03125, %v371_v13  ;;  %v418_v22 = vmul.f32 %v1366_v10, %v1366_v10 }
  0xb0   : > { %v395_v19 = vmul.f32 0.03125, %v374_v14  ;;  %v419_v16 = vmul.f32 %v1369_v11, %v1369_v11 }
  0xb1   : > { %v1378_v23 = vsub.f32 %v1296_v20, %v394_v18  ;;  %v442_v26 = vsel %vm332_vm0, %v418_v22, 0.0 }
  0xb2   : > { %v1381_v17 = vsub.f32 %v1299_v21, %v395_v19  ;;  %464 = vadd.xlane.f32.xlu1 %v463_v15  ;;  %443 = vadd.xlane.f32.xlu0 %v442_v26  ;;  %v353_v27 = vpop.xlane.xlu0 %352  ;;  %v445_v31 = vsel %vm332_vm0, %v419_v16, 0.0 }
  0xb3   : > { %v356_v30 = vpop.xlane.xlu1 %355  ;;  %v388_v32 = vmul.f32 0.03125, %v353_v27  ;;  %v426_v34 = vmul.f32 %v1378_v23, %v1378_v23 }
  0xb4   : > { %v389_v33 = vmul.f32 0.03125, %v356_v30  ;;  %v427_v20 = vmul.f32 %v1381_v17, %v1381_v17 }
  0xb5   : > { %v1390_v35 = vsub.f32 %v1306_v24, %v388_v32  ;;  %v466_v38 = vsel %vm332_vm0, %v426_v34, 0.0 }
  0xb6   : > { %v1393_v21 = vsub.f32 %v1309_v25, %v389_v33  ;;  %446 = vadd.xlane.f32.xlu1 %v445_v31  ;;  %467 = vadd.xlane.f32.xlu0 %v466_v38  ;;  %v377_v39 = vpop.xlane.xlu0 %376  ;;  %v469_v41 = vsel %vm332_vm0, %v427_v20, 0.0  ;;  %v1425_v33 = vld [vmem:[%s1613_s1] ss:$0 sm:$0xff] }
  0xb7   : > { %v380_v40 = vpop.xlane.xlu1 %379  ;;  %v396_v42 = vmul.f32 0.03125, %v377_v39  ;;  %v420_v46 = vmul.f32 %v1390_v35, %v1390_v35 }
  0xb8   : > { %v397_v43 = vmul.f32 0.03125, %v380_v40  ;;  %v421_v24 = vmul.f32 %v1393_v21, %v1393_v21 }
  0xb9   : > { %v1402_v47 = vsub.f32 %v1316_v28, %v396_v42  ;;  %v448_v48 = vsel %vm332_vm0, %v420_v46, 0.0 }
  0xba   : > { %v1405_v25 = vsub.f32 %v1319_v29, %v397_v43  ;;  %470 = vadd.xlane.f32.xlu1 %v469_v41  ;;  %449 = vadd.xlane.f32.xlu0 %v448_v48  ;;  %v451_v49 = vsel %vm332_vm0, %v421_v24, 0.0  ;;  %v1143_v29 = vld [vmem:[%s1615_s3 + $0x8] sm:$0xff]  }
  0xbb   : > { %v428_v50 = vmul.f32 %v1402_v47, %v1402_v47  ;;  %1094 = vmatprep.subr.bf16.mxu0 %v1143_v29  ;;  %1114 = vmatprep.subr.bf16.mxu1 %v1143_v29 }
  0xbc   : > { %v429_v51 = vmul.f32 %v1405_v25, %v1405_v25  ;;  %1095 = vmatpush3.bf16.msra.mxu0 %v1143_v29  ;;  %1116 = vmatpush3.bf16.msra.mxu1 %v1143_v29 }
  0xbd   : > { %v472_v52 = vsel %vm332_vm0, %v428_v50, 0.0  ;;  %1096 = vmatprep.subr.bf16.mxu0 %v1144_v53  ;;  %1115 = vmatprep.subr.bf16.mxu1 %v1144_v53 }
  0xbe   : > { %452 = vadd.xlane.f32.xlu1 %v451_v49  ;;  %473 = vadd.xlane.f32.xlu0 %v472_v52  ;;  %v475_v28 = vsel %vm332_vm0, %v429_v51, 0.0 }
  0xc0   : > { %1097 = vmatpush3.bf16.msra.mxu0 %v1144_v53  ;;  %1117 = vmatpush3.bf16.msra.mxu1 %v1144_v53 }
  0xc2   : > { %476 = vadd.xlane.f32.xlu1 %v475_v28 }
 0x12b   : > { %v432_v56 = vpop.xlane.xlu0 %431 }
 0x12c   : > { %v478_v57 = vmul.f32 0.03125, %v432_v56 }
 0x12e   : > { %v494_v58 = vadd.f32 1e-06, %v478_v57 }
 0x12f   : > { %v435_v59 = vpop.xlane.xlu1 %434  ;;  %v456_v60 = vpop.xlane.xlu0 %455 }
 0x130   : > { %1145 = vrsqrt.f32 %v494_v58  ;;  %v479_v61 = vmul.f32 0.03125, %v435_v59  ;;  %v486_v62 = vmul.f32 0.03125, %v456_v60 }
 0x132   : > { %v495_v63 = vadd.f32 1e-06, %v479_v61  ;;  %v502_v2 = vadd.f32 1e-06, %v486_v62 }
 0x133   : > { %v459_v3 = vpop.xlane.xlu1 %458  ;;  %v438_v4 = vpop.xlane.xlu0 %437 }
 0x134   : > { %1147 = vrsqrt.f32 %v495_v63  ;;  %v487_v5 = vmul.f32 0.03125, %v459_v3  ;;  %v480_v6 = vmul.f32 0.03125, %v438_v4 }
 0x135   : > { %1149 = vrsqrt.f32 %v502_v2 }
 0x136   : > { %v503_v7 = vadd.f32 1e-06, %v487_v5  ;;  %v496_v8 = vadd.f32 1e-06, %v480_v6 }
 0x137   : > { %v441_v9 = vpop.xlane.xlu1 %440  ;;  %v462_v12 = vpop.xlane.xlu0 %461 }
 0x138   : > { %1151 = vrsqrt.f32 %v503_v7  ;;  %v481_v13 = vmul.f32 0.03125, %v441_v9  ;;  %v488_v14 = vmul.f32 0.03125, %v462_v12 }
 0x139   : > { %1153 = vrsqrt.f32 %v496_v8 }
 0x13a   : > { %v497_v15 = vadd.f32 1e-06, %v481_v13  ;;  %v504_v18 = vadd.f32 1e-06, %v488_v14 }
 0x13b   : > { %v465_v19 = vpop.xlane.xlu1 %464  ;;  %v444_v22 = vpop.xlane.xlu0 %443 }
 0x13c   : > { %1155 = vrsqrt.f32 %v497_v15  ;;  %v489_v16 = vmul.f32 0.03125, %v465_v19  ;;  %v482_v26 = vmul.f32 0.03125, %v444_v22 }
 0x13d   : > { %v1146_v27 = vpop.eup %1145  ;;  %1157 = vrsqrt.f32 %v504_v18 }
 0x13e   : > { %v505_v30 = vadd.f32 1e-06, %v489_v16  ;;  %v498_v31 = vadd.f32 1e-06, %v482_v26  ;;  %v526_v32 = vmul.f32 %v1146_v27, %v1325_v36  ;;  %v1432_v36 = vld [vmem:[%s1614_s2] ss:$0 sm:$0xff] }
 0x13f   : > { %v447_v34 = vpop.xlane.xlu1 %446  ;;  %v468_v20 = vpop.xlane.xlu0 %467 }
 0x140   : > { %1159 = vrsqrt.f32 %v505_v30  ;;  %v483_v38 = vmul.f32 0.03125, %v447_v34  ;;  %v490_v39 = vmul.f32 0.03125, %v468_v20  ;;  %v549_v41 = vmul.f32 %v1425_v33, %v526_v32 }
 0x141   : > { %v1148_v40 = vpop.eup %1147  ;;  %1161 = vrsqrt.f32 %v498_v31 }
 0x142   : > { %v1150_v42 = vpop.eup %1149  ;;  %v499_v43 = vadd.f32 1e-06, %v483_v38  ;;  %v506_v46 = vadd.f32 1e-06, %v490_v39  ;;  %v527_v24 = vmul.f32 %v1148_v40, %v1333_v44  ;;  %v572_v53 = vadd.f32 %v1432_v36, %v549_v41 }
 0x143   : > { %v471_v48 = vpop.xlane.xlu1 %470  ;;  %v450_v49 = vpop.xlane.xlu0 %449  ;;  %v534_v50 = vmul.f32 %v1150_v42, %v1327_v37 }
 0x144   : > { %1163 = vrsqrt.f32 %v499_v43  ;;  %v491_v51 = vmul.f32 0.03125, %v471_v48  ;;  %v484_v52 = vmul.f32 0.03125, %v450_v49  ;;  %v550_v28 = vmul.f32 %v1425_v33, %v527_v24 }
 0x145   : > { %v1152_v29 = vpop.eup %1151  ;;  %1165 = vrsqrt.f32 %v506_v46  ;;  %v557_v37 = vmul.f32 %v1425_v33, %v534_v50 }
 0x146   : > { %v1154_v56 = vpop.eup %1153  ;;  %v507_v44 = vadd.f32 1e-06, %v491_v51  ;;  %v500_v57 = vadd.f32 1e-06, %v484_v52  ;;  %v573_v58 = vadd.f32 %v1432_v36, %v550_v28  ;;  %v535_v59 = vmul.f32 %v1152_v29, %v1335_v45 }
 0x147   : > { %v453_v60 = vpop.xlane.xlu1 %452  ;;  %v474_v61 = vpop.xlane.xlu0 %473  ;;  %v528_v62 = vmul.f32 %v1154_v56, %v1343_v54  ;;  %v580_v54 = vadd.f32 %v1432_v36, %v557_v37 }
 0x148   : > { %1167 = vrsqrt.f32 %v507_v44  ;;  %v485_v63 = vmul.f32 0.03125, %v453_v60  ;;  %v492_v2 = vmul.f32 0.03125, %v474_v61  ;;  %v588_v3 = vpack.c.bf16 %v573_v58, %v572_v53 }
 0x149   : > { %v1156_v4 = vpop.eup %1155  ;;  %1169 = vrsqrt.f32 %v500_v57  ;;  %v558_v5 = vmul.f32 %v1425_v33, %v535_v59  ;;  %v551_v6 = vmul.f32 %v1425_v33, %v528_v62 }
 0x14a   : > { %v1158_v7 = vpop.eup %1157  ;;  %v501_v8 = vadd.f32 1e-06, %v485_v63  ;;  %v508_v9 = vadd.f32 1e-06, %v492_v2  ;;  %1098 = vmatprep.mubr.msk.bf16.mxu0 %vm332_vm0, %v588_v3  ;;  %v529_v45 = vmul.f32 %v1156_v4, %v1345_v55  ;;  %v1490_v4 = vld [vmem:[%s1616_s4] ss:$0 sm:$0xff] }
 0x14b   : > { %v477_v12 = vpop.xlane.xlu1 %476  ;;  %v581_v13 = vadd.f32 %v1432_v36, %v558_v5  ;;  %v536_v14 = vmul.f32 %v1158_v7, %v1354_v0  ;;  %v574_v16 = vadd.f32 %v1432_v36, %v551_v6 }
 0x14c   : > { %1171 = vrsqrt.f32 %v501_v8  ;;  %v493_v15 = vmul.f32 0.03125, %v477_v12  ;;  %v552_v18 = vmul.f32 %v1425_v33, %v529_v45 }
 0x14d   : > { %v1160_v19 = vpop.eup %1159  ;;  %1173 = vrsqrt.f32 %v508_v9  ;;  %v592_v22 = vpack.c.bf16 %v581_v13, %v580_v54  ;;  %v559_v31 = vmul.f32 %v1425_v33, %v536_v14 }
 0x14e   : > { %v1162_v26 = vpop.eup %1161  ;;  %v509_v27 = vadd.f32 1e-06, %v493_v15  ;;  %v575_v55 = vadd.f32 %v1432_v36, %v552_v18  ;;  %v537_v30 = vmul.f32 %v1160_v19, %v1357_v1 }
 0x14f   : > { %1106 = vmatprep.mubr.msk.bf16.mxu1 %vm332_vm0, %v592_v22  ;;  %v530_v0 = vmul.f32 %v1162_v26, %v1366_v10  ;;  %v582_v39 = vadd.f32 %v1432_v36, %v559_v31 }
 0x150   : > { %1175 = vrsqrt.f32 %v509_v27  ;;  %v589_v32 = vpack.c.bf16 %v575_v55, %v574_v16  ;;  %v560_v34 = vmul.f32 %v1425_v33, %v537_v30 }
 0x151   : > { %v1164_v20 = vpop.eup %1163  ;;  %v553_v41 = vmul.f32 %v1425_v33, %v530_v0 }
 0x152   : > { %v1166_v38 = vpop.eup %1165  ;;  %1099 = vmatmul.mubr.msk.bf16.vlgmr.msra.gmra.mxu0 %vm332_vm0, %v589_v32  ;;  %v583_v40 = vadd.f32 %v1432_v36, %v560_v34  ;;  %v531_v1 = vmul.f32 %v1164_v20, %v1369_v11 }
 0x153   : > { %v538_v42 = vmul.f32 %v1166_v38, %v1378_v23  ;;  %v576_v48 = vadd.f32 %v1432_v36, %v553_v41 }
 0x154   : > { %v593_v43 = vpack.c.bf16 %v583_v40, %v582_v39  ;;  %v554_v10 = vmul.f32 %v1425_v33, %v531_v1 }
 0x155   : > { %v1168_v46 = vpop.eup %1167  ;;  %v561_v51 = vmul.f32 %v1425_v33, %v538_v42 }
 0x156   : > { %v1170_v24 = vpop.eup %1169  ;;  %1107 = vmatmul.mubr.msk.bf16.vlgmr.msra.gmra.mxu1 %vm332_vm0, %v593_v43  ;;  %v577_v49 = vadd.f32 %v1432_v36, %v554_v10  ;;  %v539_v50 = vmul.f32 %v1168_v46, %v1381_v17 }
 0x157   : > { %v532_v11 = vmul.f32 %v1170_v24, %v1390_v35  ;;  %v584_v53 = vadd.f32 %v1432_v36, %v561_v51 }
 0x158   : > { %v590_v52 = vpack.c.bf16 %v577_v49, %v576_v48  ;;  %v562_v23 = vmul.f32 %v1425_v33, %v539_v50 }
 0x159   : > { %v1172_v28 = vpop.eup %1171  ;;  %v555_v57 = vmul.f32 %v1425_v33, %v532_v11 }
 0x15a   : > { %v1174_v29 = vpop.eup %1173  ;;  %1102 = vmatprep.mubr.msk.bf16.mxu0 %vm332_vm0, %v590_v52  ;;  %v585_v56 = vadd.f32 %v1432_v36, %v562_v23  ;;  %v533_v44 = vmul.f32 %v1172_v28, %v1393_v21 }
 0x15b   : > { %v540_v17 = vmul.f32 %v1174_v29, %v1402_v47  ;;  %v578_v60 = vadd.f32 %v1432_v36, %v555_v57 }
 0x15c   : > { %v594_v58 = vpack.c.bf16 %v585_v56, %v584_v53  ;;  %v556_v35 = vmul.f32 %v1425_v33, %v533_v44 }
 0x15d   : > { %v1176_v59 = vpop.eup %1175  ;;  %v563_v21 = vmul.f32 %v1425_v33, %v540_v17 }
 0x15e   : > { %1110 = vmatprep.mubr.msk.bf16.mxu1 %vm332_vm0, %v594_v58  ;;  %v579_v61 = vadd.f32 %v1432_v36, %v556_v35  ;;  %v541_v37 = vmul.f32 %v1176_v59, %v1405_v25 }
 0x15f   : > { %v586_v47 = vadd.f32 %v1432_v36, %v563_v21 }
 0x160   : > { %v591_v62 = vpack.c.bf16 %v579_v61, %v578_v60  ;;  %v564_v63 = vmul.f32 %v1425_v33, %v541_v37 }
 0x162   : > { %1103 = vmatmul.mubr.msk.bf16.gmra.mxu0 %vm332_vm0, %v591_v62  ;;  %v587_v2 = vadd.f32 %v1432_v36, %v564_v63 }
 0x164   : > { %v595_v3 = vpack.c.bf16 %v587_v2, %v586_v47 }
 0x166   : > { %1111 = vmatmul.mubr.msk.bf16.gmra.mxu1 %vm332_vm0, %v595_v3 }
 0x212   : > { %v1100_v25 = vpop.f32.mrf.mxu0 }
 0x213   : > { %v686_v5 = vadd.f32 %v1100_v25, %v1490_v4 }
 0x214   : > { %v677_v33 = vpop.f32.mrf.mxu0 }
 0x215   : > { %v1070_v36 = vpack.c.bf16 %v686_v5, %v686_v5  ;;  %v678_v6 = vadd.f32 %v1490_v4, %v677_v33 }
 0x216   : > { %v1101_v7 = vpop.f32.mrf.mxu0  ;;  %v1108_v8 = vpop.f32.mrf.mxu1 }
 0x217   : > { %807 = vst.msk [vmem:[%s1499_s18 + $0x8] sm:$0xf] %vm804_vm1, %v1070_v36  ;;  %v1068_v9 = vpack.c.bf16 %v678_v6, %v678_v6  ;;  %v689_v45 = vadd.f32 %v1101_v7, %v1490_v4  ;;  %v718_v12 = vadd.f32 %v1108_v8, %v1490_v4  ;;  %825 = vrot.lane.b32.xlu1 %v1070_v36, %s1201_s19 }
 0x218   : > { %v680_v54 = vpop.f32.mrf.mxu0  ;;  %v709_v13 = vpop.f32.mrf.mxu1 }
 0x219   : > { %805 = vst.msk [vmem:[%s1499_s18] sm:$0xf] %vm804_vm1, %v1068_v9  ;;  %v1071_v14 = vpack.c.bf16 %v689_v45, %v689_v45  ;;  %v1078_v15 = vpack.c.bf16 %v718_v12, %v718_v12  ;;  %v681_v18 = vadd.f32 %v1490_v4, %v680_v54  ;;  %v710_v19 = vadd.f32 %v1490_v4, %v709_v13 }
 0x21a   : > { %v1109_v22 = vpop.f32.mrf.mxu1 }
 0x21b   : > { %808 = vst.msk [vmem:[%s1499_s18 + $0xc] sm:$0xf] %vm804_vm1, %v1071_v14  ;;  %815 = vst.msk [vmem:[%s1499_s18 + $0x28] sm:$0xf] %vm804_vm1, %v1078_v15  ;;  %v1069_v16 = vpack.c.bf16 %v681_v18, %v681_v18  ;;  %v1076_v26 = vpack.c.bf16 %v710_v19, %v710_v19  ;;  %v721_v27 = vadd.f32 %v1109_v22, %v1490_v4  ;;  %827 = vrot.lane.b32.xlu1 %v1071_v14, %s1201_s19 }
 0x21c   : > { %841 = vrot.lane.b32.xlu0 %v1078_v15, %s1201_s19  ;;  %v712_v55 = vpop.f32.mrf.mxu1 }
 0x21d   : > { %806 = vst.msk [vmem:[%s1499_s18 + $0x4] sm:$0xf] %vm804_vm1, %v1069_v16  ;;  %813 = vst.msk [vmem:[%s1499_s18 + $0x20] sm:$0xf] %vm804_vm1, %v1076_v26  ;;  %v1079_v30 = vpack.c.bf16 %v721_v27, %v721_v27  ;;  %v713_v31 = vadd.f32 %v1490_v4, %v712_v55 }
 0x21f   : > { %816 = vst.msk [vmem:[%s1499_s18 + $0x2c] sm:$0xf] %vm804_vm1, %v1079_v30  ;;  %v1077_v0 = vpack.c.bf16 %v713_v31, %v713_v31  ;;  %843 = vrot.lane.b32.xlu1 %v1079_v30, %s1201_s19 }
 0x220   : > { %821 = vrot.lane.b32.xlu0 %v1068_v9, %s1201_s19 }
 0x221   : > { %814 = vst.msk [vmem:[%s1499_s18 + $0x24] sm:$0xf] %vm804_vm1, %v1077_v0 }
 0x222   : > { %v1104_v32 = vpop.f32.mrf.mxu0 }
 0x223   : > { %v702_v34 = vadd.f32 %v1104_v32, %v1490_v4  ;;  %823 = vrot.lane.b32.xlu1 %v1069_v16, %s1201_s19 }
 0x224   : > { %837 = vrot.lane.b32.xlu0 %v1076_v26, %s1201_s19  ;;  %v693_v20 = vpop.f32.mrf.mxu0 }
 0x225   : > { %v1074_v38 = vpack.c.bf16 %v702_v34, %v702_v34  ;;  %v694_v39 = vadd.f32 %v1490_v4, %v693_v20 }
 0x226   : > { %v1105_v40 = vpop.f32.mrf.mxu0  ;;  %v1112_v1 = vpop.f32.mrf.mxu1 }
 0x227   : > { %811 = vst.msk [vmem:[%s1499_s18 + $0x18] sm:$0xf] %vm804_vm1, %v1074_v38  ;;  %v1072_v41 = vpack.c.bf16 %v694_v39, %v694_v39  ;;  %v705_v42 = vadd.f32 %v1105_v40, %v1490_v4  ;;  %v734_v43 = vadd.f32 %v1112_v1, %v1490_v4  ;;  %839 = vrot.lane.b32.xlu1 %v1077_v0, %s1201_s19 }
 0x228   : > { %833 = vrot.lane.b32.xlu0 %v1074_v38, %s1201_s19  ;;  %v696_v10 = vpop.f32.mrf.mxu0  ;;  %v725_v46 = vpop.f32.mrf.mxu1 }
 0x229   : > { %809 = vst.msk [vmem:[%s1499_s18 + $0x10] sm:$0xf] %vm804_vm1, %v1072_v41  ;;  %v1075_v24 = vpack.c.bf16 %v705_v42, %v705_v42  ;;  %v1082_v48 = vpack.c.bf16 %v734_v43, %v734_v43  ;;  %v697_v49 = vadd.f32 %v1490_v4, %v696_v10  ;;  %v726_v50 = vadd.f32 %v1490_v4, %v725_v46 }
 0x22a   : > { %v1113_v51 = vpop.f32.mrf.mxu1 }
 0x22b   : > { %812 = vst.msk [vmem:[%s1499_s18 + $0x1c] sm:$0xf] %vm804_vm1, %v1075_v24  ;;  %819 = vst.msk [vmem:[%s1499_s18 + $0x38] sm:$0xf] %vm804_vm1, %v1082_v48  ;;  %v1073_v11 = vpack.c.bf16 %v697_v49, %v697_v49  ;;  %v1080_v52 = vpack.c.bf16 %v726_v50, %v726_v50  ;;  %v737_v23 = vadd.f32 %v1113_v51, %v1490_v4  ;;  %835 = vrot.lane.b32.xlu1 %v1075_v24, %s1201_s19 }
 0x22c   : > { %829 = vrot.lane.b32.xlu0 %v1072_v41, %s1201_s19  ;;  %v728_v28 = vpop.f32.mrf.mxu1 }
 0x22d   : > { %810 = vst.msk [vmem:[%s1499_s18 + $0x14] sm:$0xf] %vm804_vm1, %v1073_v11  ;;  %817 = vst.msk [vmem:[%s1499_s18 + $0x30] sm:$0xf] %vm804_vm1, %v1080_v52  ;;  %v1083_v29 = vpack.c.bf16 %v737_v23, %v737_v23  ;;  %v729_v53 = vadd.f32 %v1490_v4, %v728_v28 }
 0x22f   : > { %820 = vst.msk [vmem:[%s1499_s18 + $0x3c] sm:$0xf] %vm804_vm1, %v1083_v29  ;;  %v1081_v56 = vpack.c.bf16 %v729_v53, %v729_v53  ;;  %831 = vrot.lane.b32.xlu1 %v1073_v11, %s1201_s19 }
 0x230   : > { %845 = vrot.lane.b32.xlu0 %v1080_v52, %s1201_s19 }
 0x231   : > { %818 = vst.msk [vmem:[%s1499_s18 + $0x34] sm:$0xf] %vm804_vm1, %v1081_v56 }
 0x233   : > { %847 = vrot.lane.b32.xlu1 %v1081_v56, %s1201_s19 }
 0x234   : > { %849 = vrot.lane.b32.xlu0 %v1082_v48, %s1201_s19 }
 0x237   : > { %851 = vrot.lane.b32.xlu1 %v1083_v29, %s1201_s19 }
 0x289   : > { %v826_v44 = vpop.permute.xlu1 %825 }
 0x28a   : > { %872 = vst.msk [vmem:[%s1569_s26 + $0x8] sm:$0xf] %vm869_vm2, %v826_v44 }
 0x28d   : > { %v828_v57 = vpop.permute.xlu1 %827 }
 0x28e   : > { %v842_v17 = vpop.permute.xlu0 %841  ;;  %873 = vst.msk [vmem:[%s1569_s26 + $0xc] sm:$0xf] %vm869_vm2, %v828_v57 }
 0x28f   : > { %880 = vst.msk [vmem:[%s1569_s26 + $0x28] sm:$0xf] %vm869_vm2, %v842_v17 }
 0x291   : > { %v844_v58 = vpop.permute.xlu1 %843 }
 0x292   : > { %v822_v35 = vpop.permute.xlu0 %821  ;;  %881 = vst.msk [vmem:[%s1569_s26 + $0x2c] sm:$0xf] %vm869_vm2, %v844_v58 }
 0x293   : > { %870 = vst.msk [vmem:[%s1569_s26] sm:$0xf] %vm869_vm2, %v822_v35 }
 0x295   : > { %v824_v59 = vpop.permute.xlu1 %823 }
 0x296   : > { %v838_v60 = vpop.permute.xlu0 %837  ;;  %871 = vst.msk [vmem:[%s1569_s26 + $0x4] sm:$0xf] %vm869_vm2, %v824_v59 }
 0x297   : > { %878 = vst.msk [vmem:[%s1569_s26 + $0x20] sm:$0xf] %vm869_vm2, %v838_v60 }
 0x299   : > { %v840_v61 = vpop.permute.xlu1 %839 }
 0x29a   : > { %v834_v37 = vpop.permute.xlu0 %833  ;;  %879 = vst.msk [vmem:[%s1569_s26 + $0x24] sm:$0xf] %vm869_vm2, %v840_v61 }
 0x29b   : > { %876 = vst.msk [vmem:[%s1569_s26 + $0x18] sm:$0xf] %vm869_vm2, %v834_v37 }
 0x29d   : > { %v836_v21 = vpop.permute.xlu1 %835 }
 0x29e   : > { %v830_v62 = vpop.permute.xlu0 %829  ;;  %877 = vst.msk [vmem:[%s1569_s26 + $0x1c] sm:$0xf] %vm869_vm2, %v836_v21 }
 0x29f   : > { %874 = vst.msk [vmem:[%s1569_s26 + $0x10] sm:$0xf] %vm869_vm2, %v830_v62 }
 0x2a1   : > { %v832_v63 = vpop.permute.xlu1 %831 }
 0x2a2   : > { %v846_v47 = vpop.permute.xlu0 %845  ;;  %875 = vst.msk [vmem:[%s1569_s26 + $0x14] sm:$0xf] %vm869_vm2, %v832_v63 }
 0x2a3   : > { %882 = vst.msk [vmem:[%s1569_s26 + $0x30] sm:$0xf] %vm869_vm2, %v846_v47 }
 0x2a5   : > { %v848_v2 = vpop.permute.xlu1 %847 }
 0x2a6   : > { %v850_v3 = vpop.permute.xlu0 %849  ;;  %883 = vst.msk [vmem:[%s1569_s26 + $0x34] sm:$0xf] %vm869_vm2, %v848_v2 }
 0x2a7   : > { %884 = vst.msk [vmem:[%s1569_s26 + $0x38] sm:$0xf] %vm869_vm2, %v850_v3 }
 0x2a9   : > { %v852_v4 = vpop.permute.xlu1 %851 }
 0x2aa   : > { %885 = vst.msk [vmem:[%s1569_s26 + $0x3c] sm:$0xf] %vm869_vm2, %v852_v4 }
 0x2ab PF: > { %s17_s23 = sadd.s32 1, %s1199_s23   ;;  %s1619_s21 = smov %s1195_s22 }
 0x2ac   : > { %p14_p5 = scmp.ge.s32.totalorder %s17_s23, 4   ;;  %s1620_s22 = smov %s1622_s24 }
 0x2ae   :  { %16 = sbr.rel (!%p14_p5) target bundleno = 2 (0x2), region = 82 }

// kernel: siglip_vision_model.11
= control target key start
LH: loop header
LB: loop body
LE: loop exit
PB: predicated region body
PF: predicated region fallthrough
CT: control target
= control target key end

     0   :  { %s1454_s24 = smov 0   ;;  %s1456_s25 = smov 0   ;;  %s1944_s0 = inlined_call_operand.vmem [shape: f32[2,128,32], index: 0, kind: input, shape index: {}]   ;;  %s1945_s1 = inlined_call_operand.vmem [shape: f32[1,32], index: 1, kind: input, shape index: {}]   ;;  %s1946_s2 = inlined_call_operand.vmem [shape: f32[1,32], index: 2, kind: input, shape index: {}]   ;;  %s1947_s3 = inlined_call_operand.vmem [shape: bf16[32,64], index: 3, kind: input, shape index: {}]   ;;  %s1948_s4 = inlined_call_operand.vmem [shape: f32[1,64], index: 4, kind: input, shape index: {}]   ;;  %s1949_s5 = inlined_call_operand.vmem [shape: bf16[64,32], index: 5, kind: input, shape index: {}]   ;;  %s1950_s6 = inlined_call_operand.vmem [shape: f32[1,32], index: 6, kind: input, shape index: {}]   ;;  %s1951_s7 = inlined_call_operand.vmem [shape: f32[2,128,32], index: 7, kind: output, shape index: {}]  }
   0x1   :  { %s1458_s26 = smov 0  }
   0x2 LB: > { %s29_s27 = sadd.s32 1, %s1408_s25  ;;  %p1179_p0 = scmp.ge.s32.totalorder %s1412_s26, 1  ;;  %s1412_s26 = sphi %s1458_s26, %s17_s26   ;;  %s1408_s25 = sphi %s1456_s25, %s1953_s25   ;;  %s1404_s24 = sphi %s1454_s24, %s1952_s24  }
   0x3   : > { %p31_p1 = scmp.ge.s32.totalorder %s29_s27, 2  ;;  %p258_p2 = scmp.lt.s32.totalorder %s1412_s26, 3 }
   0x5   : > { %s1955_s27 = smov (%p31_p1, %s29_s27), 0  ;;  %p259_p3 = pnand %p1179_p0, %p258_p2 }
   0x6   : > { %p299_p4 = scmp.lt.s32.totalorder (!%p259_p3), %s1404_s24, 1 }
   0x7   : > { %262 = sbr.rel (%p259_p3) target bundleno = 806 (0x326), region = 48 }
   0xc   : > { %s1957_s24 = smov (!%p299_p4, %s1404_s24), 1  ;;  %vm335_vm0 = vcmask 261120   ;;  %vm934_vm1 = vcmask 523264  }
   0xd   : > { %s1212_s28 = sshll.u32 %s1957_s24, 7 }
   0xe   : > { %s1480_s8 = scalar_lea.vmem %s1944_s0, %s1212_s28  ;;  %s1870_s14 = scalar_lea.vmem %s1951_s7, %s1212_s28 }
   0xf   : > { %v319_v0 = vld [vmem:[%s1480_s8] sm:$0xff]  ;;  %v321_v1 = vld [vmem:[%s1480_s8 + $0x10] sm:$0xff]  ;;  %v320_v2 = vld [vmem:[%s1480_s8 + $0x8] sm:$0xff] }
  0x10   : > { %v336_v3 = vsel %vm335_vm0, %v319_v0, 0.0  ;;  %v342_v4 = vsel %vm335_vm0, %v321_v1, 0.0  ;;  %v322_v5 = vld [vmem:[%s1480_s8 + $0x18] sm:$0xff]  ;;  %v339_v6 = vsel %vm335_vm0, %v320_v2, 0.0  ;;  %v323_v8 = vld [vmem:[%s1480_s8 + $0x20] sm:$0xff]  ;;  %v324_v9 = vld [vmem:[%s1480_s8 + $0x28] sm:$0xff] }
  0x11   : > { %337 = vadd.xlane.f32.xlu0 %v336_v3  ;;  %343 = vadd.xlane.f32.xlu1 %v342_v4  ;;  %v345_v7 = vsel %vm335_vm0, %v322_v5, 0.0  ;;  %v348_v10 = vsel %vm335_vm0, %v323_v8, 0.0  ;;  %v351_v11 = vsel %vm335_vm0, %v324_v9, 0.0  ;;  %v1495_v12 = vld [vmem:[%s1480_s8 + $0x30] sm:$0xff]  ;;  %v1498_v13 = vld [vmem:[%s1480_s8 + $0x38] sm:$0xff]  ;;  %v1505_v16 = vld [vmem:[%s1480_s8 + $0x40] sm:$0xff] }
  0x12   : > { %v354_v14 = vsel %vm335_vm0, %v1495_v12, 0.0  ;;  %v357_v15 = vsel %vm335_vm0, %v1498_v13, 0.0  ;;  %v1508_v17 = vld [vmem:[%s1480_s8 + $0x48] sm:$0xff]  ;;  %v360_v18 = vsel %vm335_vm0, %v1505_v16, 0.0  ;;  %v1515_v20 = vld [vmem:[%s1480_s8 + $0x50] sm:$0xff]  ;;  %v1518_v21 = vld [vmem:[%s1480_s8 + $0x58] sm:$0xff] }
  0x13   : > { %v363_v19 = vsel %vm335_vm0, %v1508_v17, 0.0  ;;  %v366_v22 = vsel %vm335_vm0, %v1515_v20, 0.0  ;;  %v369_v23 = vsel %vm335_vm0, %v1518_v21, 0.0  ;;  %v1525_v24 = vld [vmem:[%s1480_s8 + $0x60] sm:$0xff]  ;;  %v1528_v25 = vld [vmem:[%s1480_s8 + $0x68] sm:$0xff]  ;;  %v1535_v28 = vld [vmem:[%s1480_s8 + $0x70] sm:$0xff] }
  0x14   : > { %v372_v26 = vsel %vm335_vm0, %v1525_v24, 0.0  ;;  %v375_v27 = vsel %vm335_vm0, %v1528_v25, 0.0  ;;  %v1538_v29 = vld [vmem:[%s1480_s8 + $0x78] sm:$0xff]  ;;  %v378_v30 = vsel %vm335_vm0, %v1535_v28, 0.0 }
  0x15   : > { %340 = vadd.xlane.f32.xlu0 %v339_v6  ;;  %346 = vadd.xlane.f32.xlu1 %v345_v7  ;;  %v381_v31 = vsel %vm335_vm0, %v1538_v29, 0.0 }
  0x19   : > { %349 = vadd.xlane.f32.xlu0 %v348_v10  ;;  %352 = vadd.xlane.f32.xlu1 %v351_v11 }
  0x1d   : > { %355 = vadd.xlane.f32.xlu0 %v354_v14  ;;  %358 = vadd.xlane.f32.xlu1 %v357_v15 }
  0x21   : > { %361 = vadd.xlane.f32.xlu0 %v360_v18  ;;  %364 = vadd.xlane.f32.xlu1 %v363_v19 }
  0x25   : > { %367 = vadd.xlane.f32.xlu0 %v366_v22  ;;  %370 = vadd.xlane.f32.xlu1 %v369_v23 }
  0x29   : > { %373 = vadd.xlane.f32.xlu0 %v372_v26  ;;  %376 = vadd.xlane.f32.xlu1 %v375_v27 }
  0x2d   : > { %379 = vadd.xlane.f32.xlu0 %v378_v30  ;;  %382 = vadd.xlane.f32.xlu1 %v381_v31 }
  0x9a   : > { %v338_v32 = vpop.xlane.xlu0 %337  ;;  %v344_v33 = vpop.xlane.xlu1 %343 }
  0x9b   : > { %v385_v34 = vmul.f32 0.03125, %v338_v32  ;;  %v387_v35 = vmul.f32 0.03125, %v344_v33 }
  0x9d   : > { %v1544_v36 = vsub.f32 %v319_v0, %v385_v34  ;;  %v1546_v37 = vsub.f32 %v321_v1, %v387_v35 }
  0x9e   : > { %v341_v38 = vpop.xlane.xlu0 %340  ;;  %v347_v39 = vpop.xlane.xlu1 %346 }
  0x9f   : > { %v386_v40 = vmul.f32 0.03125, %v341_v38  ;;  %v388_v41 = vmul.f32 0.03125, %v347_v39  ;;  %v417_v42 = vmul.f32 %v1544_v36, %v1544_v36  ;;  %v419_v43 = vmul.f32 %v1546_v37, %v1546_v37 }
  0xa1   : > { %v1552_v44 = vsub.f32 %v320_v2, %v386_v40  ;;  %v1554_v45 = vsub.f32 %v322_v5, %v388_v41  ;;  %v433_v46 = vsel %vm335_vm0, %v417_v42, 0.0  ;;  %v439_v49 = vsel %vm335_vm0, %v419_v43, 0.0 }
  0xa2   : > { %434 = vadd.xlane.f32.xlu0 %v433_v46  ;;  %v350_v47 = vpop.xlane.xlu0 %349  ;;  %v353_v48 = vpop.xlane.xlu1 %352 }
  0xa3   : > { %v389_v50 = vmul.f32 0.03125, %v350_v47  ;;  %v390_v51 = vmul.f32 0.03125, %v353_v48  ;;  %v418_v52 = vmul.f32 %v1552_v44, %v1552_v44  ;;  %v420_v53 = vmul.f32 %v1554_v45, %v1554_v45 }
  0xa5   : > { %v1562_v54 = vsub.f32 %v323_v8, %v389_v50  ;;  %v1564_v55 = vsub.f32 %v324_v9, %v390_v51  ;;  %v436_v56 = vsel %vm335_vm0, %v418_v52, 0.0  ;;  %v442_v59 = vsel %vm335_vm0, %v420_v53, 0.0  ;;  %v1305_v53 = vld [vmem:[%s1947_s3] sm:$0xff]  }
  0xa6   : > { %440 = vadd.xlane.f32.xlu0 %v439_v49  ;;  %437 = vadd.xlane.f32.xlu1 %v436_v56  ;;  %v356_v57 = vpop.xlane.xlu0 %355  ;;  %v359_v58 = vpop.xlane.xlu1 %358 }
  0xa7   : > { %v391_v60 = vmul.f32 0.03125, %v356_v57  ;;  %v392_v61 = vmul.f32 0.03125, %v359_v58  ;;  %v421_v62 = vmul.f32 %v1562_v54, %v1562_v54  ;;  %v422_v63 = vmul.f32 %v1564_v55, %v1564_v55 }
  0xa9   : > { %v1573_v0 = vsub.f32 %v1495_v12, %v391_v60  ;;  %v1576_v1 = vsub.f32 %v1498_v13, %v392_v61  ;;  %v445_v2 = vsel %vm335_vm0, %v421_v62, 0.0  ;;  %v448_v5 = vsel %vm335_vm0, %v422_v63, 0.0 }
  0xaa   : > { %443 = vadd.xlane.f32.xlu1 %v442_v59  ;;  %446 = vadd.xlane.f32.xlu0 %v445_v2  ;;  %v362_v3 = vpop.xlane.xlu0 %361  ;;  %v365_v4 = vpop.xlane.xlu1 %364 }
  0xab   : > { %v393_v6 = vmul.f32 0.03125, %v362_v3  ;;  %v394_v7 = vmul.f32 0.03125, %v365_v4  ;;  %v423_v8 = vmul.f32 %v1573_v0, %v1573_v0  ;;  %v424_v9 = vmul.f32 %v1576_v1, %v1576_v1 }
  0xad   : > { %v1585_v10 = vsub.f32 %v1505_v16, %v393_v6  ;;  %v1588_v11 = vsub.f32 %v1508_v17, %v394_v7  ;;  %v451_v12 = vsel %vm335_vm0, %v423_v8, 0.0  ;;  %v454_v15 = vsel %vm335_vm0, %v424_v9, 0.0 }
  0xae   : > { %449 = vadd.xlane.f32.xlu1 %v448_v5  ;;  %452 = vadd.xlane.f32.xlu0 %v451_v12  ;;  %v368_v13 = vpop.xlane.xlu0 %367  ;;  %v371_v14 = vpop.xlane.xlu1 %370 }
  0xaf   : > { %v395_v18 = vmul.f32 0.03125, %v368_v13  ;;  %v396_v19 = vmul.f32 0.03125, %v371_v14  ;;  %v425_v22 = vmul.f32 %v1585_v10, %v1585_v10  ;;  %v426_v16 = vmul.f32 %v1588_v11, %v1588_v11 }
  0xb1   : > { %v1597_v23 = vsub.f32 %v1515_v20, %v395_v18  ;;  %v1600_v17 = vsub.f32 %v1518_v21, %v396_v19  ;;  %v457_v26 = vsel %vm335_vm0, %v425_v22, 0.0  ;;  %v460_v31 = vsel %vm335_vm0, %v426_v16, 0.0 }
  0xb2   : > { %455 = vadd.xlane.f32.xlu1 %v454_v15  ;;  %458 = vadd.xlane.f32.xlu0 %v457_v26  ;;  %v374_v27 = vpop.xlane.xlu0 %373  ;;  %v377_v30 = vpop.xlane.xlu1 %376 }
  0xb3   : > { %v397_v32 = vmul.f32 0.03125, %v374_v27  ;;  %v398_v33 = vmul.f32 0.03125, %v377_v30  ;;  %v427_v34 = vmul.f32 %v1597_v23, %v1597_v23  ;;  %v428_v20 = vmul.f32 %v1600_v17, %v1600_v17 }
  0xb5   : > { %v1609_v35 = vsub.f32 %v1525_v24, %v397_v32  ;;  %v1612_v21 = vsub.f32 %v1528_v25, %v398_v33  ;;  %v463_v38 = vsel %vm335_vm0, %v427_v34, 0.0  ;;  %v466_v41 = vsel %vm335_vm0, %v428_v20, 0.0  ;;  %v1644_v33 = vld [vmem:[%s1945_s1] ss:$0 sm:$0xff] }
  0xb6   : > { %461 = vadd.xlane.f32.xlu1 %v460_v31  ;;  %464 = vadd.xlane.f32.xlu0 %v463_v38  ;;  %v380_v39 = vpop.xlane.xlu0 %379  ;;  %v383_v40 = vpop.xlane.xlu1 %382 }
  0xb7   : > { %v399_v42 = vmul.f32 0.03125, %v380_v39  ;;  %v400_v43 = vmul.f32 0.03125, %v383_v40  ;;  %v429_v46 = vmul.f32 %v1609_v35, %v1609_v35  ;;  %v430_v24 = vmul.f32 %v1612_v21, %v1612_v21 }
  0xb9   : > { %v1621_v47 = vsub.f32 %v1535_v28, %v399_v42  ;;  %v1624_v25 = vsub.f32 %v1538_v29, %v400_v43  ;;  %v469_v48 = vsel %vm335_vm0, %v429_v46, 0.0  ;;  %v472_v49 = vsel %vm335_vm0, %v430_v24, 0.0  ;;  %v1304_v29 = vld [vmem:[%s1947_s3 + $0x8] sm:$0xff]  }
  0xba   : > { %467 = vadd.xlane.f32.xlu1 %v466_v41  ;;  %470 = vadd.xlane.f32.xlu0 %v469_v48 }
  0xbb   : > { %v431_v50 = vmul.f32 %v1621_v47, %v1621_v47  ;;  %v432_v51 = vmul.f32 %v1624_v25, %v1624_v25  ;;  %1236 = vmatprep.subr.bf16.mxu0 %v1304_v29 }
  0xbc   : > { %1237 = vmatpush3.bf16.msra.mxu0 %v1304_v29 }
  0xbd   : > { %v475_v52 = vsel %vm335_vm0, %v431_v50, 0.0  ;;  %v478_v28 = vsel %vm335_vm0, %v432_v51, 0.0  ;;  %1238 = vmatprep.subr.bf16.mxu0 %v1305_v53 }
  0xbe   : > { %473 = vadd.xlane.f32.xlu1 %v472_v49  ;;  %476 = vadd.xlane.f32.xlu0 %v475_v52 }
  0xc0   : > { %1239 = vmatpush3.bf16.msra.mxu0 %v1305_v53 }
  0xc2   : > { %479 = vadd.xlane.f32.xlu1 %v478_v28 }
 0x12b   : > { %v435_v56 = vpop.xlane.xlu0 %434 }
 0x12c   : > { %v481_v57 = vmul.f32 0.03125, %v435_v56 }
 0x12e   : > { %v497_v58 = vadd.f32 1e-06, %v481_v57 }
 0x12f   : > { %v438_v59 = vpop.xlane.xlu1 %437  ;;  %v441_v60 = vpop.xlane.xlu0 %440 }
 0x130   : > { %1310 = vrsqrt.f32 %v497_v58  ;;  %v482_v61 = vmul.f32 0.03125, %v438_v59  ;;  %v483_v62 = vmul.f32 0.03125, %v441_v60 }
 0x132   : > { %v498_v63 = vadd.f32 1e-06, %v482_v61  ;;  %v499_v2 = vadd.f32 1e-06, %v483_v62 }
 0x133   : > { %v444_v3 = vpop.xlane.xlu1 %443  ;;  %v447_v4 = vpop.xlane.xlu0 %446 }
 0x134   : > { %1312 = vrsqrt.f32 %v498_v63  ;;  %v484_v5 = vmul.f32 0.03125, %v444_v3  ;;  %v485_v6 = vmul.f32 0.03125, %v447_v4 }
 0x135   : > { %1314 = vrsqrt.f32 %v499_v2 }
 0x136   : > { %v500_v7 = vadd.f32 1e-06, %v484_v5  ;;  %v501_v8 = vadd.f32 1e-06, %v485_v6 }
 0x137   : > { %v450_v9 = vpop.xlane.xlu1 %449  ;;  %v453_v12 = vpop.xlane.xlu0 %452 }
 0x138   : > { %1316 = vrsqrt.f32 %v500_v7  ;;  %v486_v13 = vmul.f32 0.03125, %v450_v9  ;;  %v487_v14 = vmul.f32 0.03125, %v453_v12 }
 0x139   : > { %1318 = vrsqrt.f32 %v501_v8 }
 0x13a   : > { %v502_v15 = vadd.f32 1e-06, %v486_v13  ;;  %v503_v18 = vadd.f32 1e-06, %v487_v14 }
 0x13b   : > { %v456_v19 = vpop.xlane.xlu1 %455  ;;  %v459_v22 = vpop.xlane.xlu0 %458 }
 0x13c   : > { %1320 = vrsqrt.f32 %v502_v15  ;;  %v488_v16 = vmul.f32 0.03125, %v456_v19  ;;  %v489_v26 = vmul.f32 0.03125, %v459_v22 }
 0x13d   : > { %v1311_v27 = vpop.eup %1310  ;;  %1322 = vrsqrt.f32 %v503_v18 }
 0x13e   : > { %v504_v30 = vadd.f32 1e-06, %v488_v16  ;;  %v505_v31 = vadd.f32 1e-06, %v489_v26  ;;  %v529_v32 = vmul.f32 %v1311_v27, %v1544_v36  ;;  %v1651_v36 = vld [vmem:[%s1946_s2] ss:$0 sm:$0xff] }
 0x13f   : > { %v462_v34 = vpop.xlane.xlu1 %461  ;;  %v465_v20 = vpop.xlane.xlu0 %464 }
 0x140   : > { %1324 = vrsqrt.f32 %v504_v30  ;;  %v490_v38 = vmul.f32 0.03125, %v462_v34  ;;  %v491_v39 = vmul.f32 0.03125, %v465_v20  ;;  %v552_v41 = vmul.f32 %v1644_v33, %v529_v32 }
 0x141   : > { %v1313_v40 = vpop.eup %1312  ;;  %1326 = vrsqrt.f32 %v505_v31 }
 0x142   : > { %v1315_v42 = vpop.eup %1314  ;;  %v506_v43 = vadd.f32 1e-06, %v490_v38  ;;  %v507_v46 = vadd.f32 1e-06, %v491_v39  ;;  %v530_v24 = vmul.f32 %v1313_v40, %v1552_v44  ;;  %v575_v53 = vadd.f32 %v1651_v36, %v552_v41 }
 0x143   : > { %v468_v48 = vpop.xlane.xlu1 %467  ;;  %v471_v49 = vpop.xlane.xlu0 %470  ;;  %v531_v50 = vmul.f32 %v1315_v42, %v1546_v37 }
 0x144   : > { %1328 = vrsqrt.f32 %v506_v43  ;;  %v492_v51 = vmul.f32 0.03125, %v468_v48  ;;  %v493_v52 = vmul.f32 0.03125, %v471_v49  ;;  %v553_v28 = vmul.f32 %v1644_v33, %v530_v24 }
 0x145   : > { %v1317_v29 = vpop.eup %1316  ;;  %1330 = vrsqrt.f32 %v507_v46  ;;  %v554_v37 = vmul.f32 %v1644_v33, %v531_v50 }
 0x146   : > { %v1319_v56 = vpop.eup %1318  ;;  %v508_v44 = vadd.f32 1e-06, %v492_v51  ;;  %v509_v57 = vadd.f32 1e-06, %v493_v52  ;;  %v576_v58 = vadd.f32 %v1651_v36, %v553_v28  ;;  %v532_v59 = vmul.f32 %v1317_v29, %v1554_v45 }
 0x147   : > { %v474_v60 = vpop.xlane.xlu1 %473  ;;  %v477_v61 = vpop.xlane.xlu0 %476  ;;  %v533_v62 = vmul.f32 %v1319_v56, %v1562_v54  ;;  %v577_v54 = vadd.f32 %v1651_v36, %v554_v37 }
 0x148   : > { %1332 = vrsqrt.f32 %v508_v44  ;;  %v494_v63 = vmul.f32 0.03125, %v474_v60  ;;  %v495_v2 = vmul.f32 0.03125, %v477_v61  ;;  %v591_v3 = vpack.c.bf16 %v576_v58, %v575_v53 }
 0x149   : > { %v1321_v4 = vpop.eup %1320  ;;  %1334 = vrsqrt.f32 %v509_v57  ;;  %v555_v5 = vmul.f32 %v1644_v33, %v532_v59  ;;  %v556_v6 = vmul.f32 %v1644_v33, %v533_v62 }
 0x14a   : > { %v1323_v7 = vpop.eup %1322  ;;  %v510_v8 = vadd.f32 1e-06, %v494_v63  ;;  %v511_v9 = vadd.f32 1e-06, %v495_v2  ;;  %1240 = vmatprep.mubr.msk.bf16.mxu0 %vm335_vm0, %v591_v3  ;;  %v534_v45 = vmul.f32 %v1321_v4, %v1564_v55  ;;  %v1307_v4 = vld [vmem:[%s1949_s5 + $0x10] sm:$0xff]  }
 0x14b   : > { %v480_v12 = vpop.xlane.xlu1 %479  ;;  %v578_v13 = vadd.f32 %v1651_v36, %v555_v5  ;;  %v535_v14 = vmul.f32 %v1323_v7, %v1573_v0  ;;  %v579_v16 = vadd.f32 %v1651_v36, %v556_v6  ;;  %v1721_v5 = vld [vmem:[%s1948_s4] ss:$0 sm:$0xff] }
 0x14c   : > { %1336 = vrsqrt.f32 %v510_v8  ;;  %v496_v15 = vmul.f32 0.03125, %v480_v12  ;;  %v557_v18 = vmul.f32 %v1644_v33, %v534_v45 }
 0x14d   : > { %v1325_v19 = vpop.eup %1324  ;;  %1338 = vrsqrt.f32 %v511_v9  ;;  %v592_v22 = vpack.c.bf16 %v578_v13, %v577_v54  ;;  %v558_v31 = vmul.f32 %v1644_v33, %v535_v14 }
 0x14e   : > { %v1327_v26 = vpop.eup %1326  ;;  %v512_v27 = vadd.f32 1e-06, %v496_v15  ;;  %v580_v55 = vadd.f32 %v1651_v36, %v557_v18  ;;  %v536_v30 = vmul.f32 %v1325_v19, %v1576_v1 }
 0x14f   : > { %1241 = vmatmul.mubr.msk.bf16.vlgmr.msra.gmra.mxu0 %vm335_vm0, %v592_v22  ;;  %v537_v0 = vmul.f32 %v1327_v26, %v1585_v10  ;;  %v581_v39 = vadd.f32 %v1651_v36, %v558_v31 }
 0x150   : > { %1340 = vrsqrt.f32 %v512_v27  ;;  %v593_v32 = vpack.c.bf16 %v580_v55, %v579_v16  ;;  %v559_v34 = vmul.f32 %v1644_v33, %v536_v30 }
 0x151   : > { %v1329_v20 = vpop.eup %1328  ;;  %v560_v41 = vmul.f32 %v1644_v33, %v537_v0 }
 0x152   : > { %v1331_v38 = vpop.eup %1330  ;;  %1244 = vmatprep.mubr.msk.bf16.mxu0 %vm335_vm0, %v593_v32  ;;  %v582_v40 = vadd.f32 %v1651_v36, %v559_v34  ;;  %v538_v1 = vmul.f32 %v1329_v20, %v1588_v11 }
 0x153   : > { %v539_v42 = vmul.f32 %v1331_v38, %v1597_v23  ;;  %v583_v48 = vadd.f32 %v1651_v36, %v560_v41 }
 0x154   : > { %v594_v43 = vpack.c.bf16 %v582_v40, %v581_v39  ;;  %v561_v10 = vmul.f32 %v1644_v33, %v538_v1 }
 0x155   : > { %v1333_v46 = vpop.eup %1332  ;;  %v562_v51 = vmul.f32 %v1644_v33, %v539_v42 }
 0x156   : > { %v1335_v24 = vpop.eup %1334  ;;  %v584_v49 = vadd.f32 %v1651_v36, %v561_v10  ;;  %v540_v50 = vmul.f32 %v1333_v46, %v1600_v17 }
 0x157   : > { %1245 = vmatmul.mubr.msk.bf16.gmra.mxu0 %vm335_vm0, %v594_v43  ;;  %v541_v11 = vmul.f32 %v1335_v24, %v1609_v35  ;;  %v585_v53 = vadd.f32 %v1651_v36, %v562_v51 }
 0x158   : > { %v595_v52 = vpack.c.bf16 %v584_v49, %v583_v48  ;;  %v563_v23 = vmul.f32 %v1644_v33, %v540_v50 }
 0x159   : > { %v1337_v28 = vpop.eup %1336  ;;  %v564_v17 = vmul.f32 %v1644_v33, %v541_v11 }
 0x15a   : > { %v1339_v29 = vpop.eup %1338  ;;  %1248 = vmatprep.mubr.msk.bf16.mxu0 %vm335_vm0, %v595_v52  ;;  %v586_v56 = vadd.f32 %v1651_v36, %v563_v23  ;;  %v542_v44 = vmul.f32 %v1337_v28, %v1612_v21 }
 0x15b   : > { %v543_v57 = vmul.f32 %v1339_v29, %v1621_v47  ;;  %v587_v60 = vadd.f32 %v1651_v36, %v564_v17 }
 0x15c   : > { %v596_v58 = vpack.c.bf16 %v586_v56, %v585_v53  ;;  %v565_v35 = vmul.f32 %v1644_v33, %v542_v44 }
 0x15d   : > { %v1341_v59 = vpop.eup %1340  ;;  %v566_v62 = vmul.f32 %v1644_v33, %v543_v57 }
 0x15e   : > { %v588_v61 = vadd.f32 %v1651_v36, %v565_v35  ;;  %v544_v37 = vmul.f32 %v1341_v59, %v1624_v25  ;;  %v1306_v25 = vld [vmem:[%s1949_s5 + $0x18] sm:$0xff]  }
 0x15f   : > { %1249 = vmatmul.mubr.msk.bf16.gmra.mxu0 %vm335_vm0, %v596_v58  ;;  %v589_v47 = vadd.f32 %v1651_v36, %v566_v62  ;;  %1256 = vmatprep.subr.bf16.mxu1 %v1306_v25 }
 0x160   : > { %v597_v63 = vpack.c.bf16 %v588_v61, %v587_v60  ;;  %v567_v21 = vmul.f32 %v1644_v33, %v544_v37  ;;  %1257 = vmatpush3.bf16.msra.mxu1 %v1306_v25  ;;  %v1308_v33 = vld [vmem:[%s1949_s5 + $0x8] sm:$0xff]  }
 0x161   : > { %1258 = vmatprep.subr.bf16.mxu1 %v1307_v4 }
 0x162   : > { %1252 = vmatprep.mubr.msk.bf16.mxu0 %vm335_vm0, %v597_v63  ;;  %v590_v2 = vadd.f32 %v1651_v36, %v567_v21  ;;  %v1309_v36 = vld [vmem:[%s1949_s5] sm:$0xff]  }
 0x164   : > { %v598_v3 = vpack.c.bf16 %v590_v2, %v589_v47  ;;  %1259 = vmatpush3.bf16.msra.mxu1 %v1307_v4 }
 0x165   : > { %1260 = vmatprep.subr.bf16.mxu1 %v1308_v33 }
 0x167   : > { %1253 = vmatmul.mubr.msk.bf16.gmra.mxu0 %vm335_vm0, %v598_v3 }
 0x168   : > { %1261 = vmatpush3.bf16.msra.mxu1 %v1308_v33 }
 0x169   : > { %1262 = vmatprep.subr.bf16.mxu1 %v1309_v36 }
 0x16c   : > { %1263 = vmatpush3.bf16.msra.mxu1 %v1309_v36 }
 0x20f   : > { %v1242_v6 = vpop.f32.mrf.mxu0 }
 0x210   : > { %v1724_v7 = vadd.f32 %v1242_v6, %v1721_v5 }
 0x211   : > { %v680_v8 = vpop.f32.mrf.mxu0 }
 0x212   : > { %v1727_v9 = vadd.f32 %v1721_v5, %v680_v8  ;;  %v761_v54 = vmul.f32 %v1724_v7, %v1724_v7 }
 0x213   : > { %v1243_v45 = vpop.f32.mrf.mxu0 }
 0x214   : > { %v1730_v12 = vadd.f32 %v1243_v45, %v1721_v5  ;;  %v759_v13 = vmul.f32 %v1727_v9, %v1727_v9  ;;  %v777_v22 = vmul.f32 %v761_v54, %v1724_v7 }
 0x215   : > { %v683_v14 = vpop.f32.mrf.mxu0 }
 0x216   : > { %v762_v15 = vmul.f32 %v1730_v12, %v1730_v12  ;;  %v1739_v19 = vadd.f32 %v1721_v5, %v683_v14  ;;  %v775_v16 = vmul.f32 %v759_v13, %v1727_v9  ;;  %v793_v0 = vmul.f32 0.044715, %v777_v22 }
 0x217   : > { %v1246_v18 = vpop.f32.mrf.mxu0 }
 0x218   : > { %v778_v27 = vmul.f32 %v762_v15, %v1730_v12  ;;  %v760_v31 = vmul.f32 %v1739_v19, %v1739_v19  ;;  %v791_v32 = vmul.f32 0.044715, %v775_v16  ;;  %v1758_v1 = vadd.f32 %v1246_v18, %v1721_v5 }
 0x219   : > { %v696_v26 = vpop.f32.mrf.mxu0  ;;  %v809_v46 = vadd.f32 %v793_v0, %v1724_v7 }
 0x21a   : > { %v1745_v55 = vadd.f32 %v1721_v5, %v696_v26  ;;  %v794_v40 = vmul.f32 0.044715, %v778_v27  ;;  %v776_v43 = vmul.f32 %v760_v31, %v1739_v19  ;;  %v807_v24 = vadd.f32 %v791_v32, %v1727_v9 }
 0x21b   : > { %v1247_v30 = vpop.f32.mrf.mxu0  ;;  %v765_v23 = vmul.f32 %v1758_v1, %v1758_v1  ;;  %v825_v44 = vmul.f32 0.7978846, %v809_v46 }
 0x21c   : > { %v763_v34 = vmul.f32 %v1745_v55, %v1745_v55  ;;  %v1752_v20 = vadd.f32 %v1247_v30, %v1721_v5  ;;  %v810_v52 = vadd.f32 %v794_v40, %v1730_v12  ;;  %v792_v29 = vmul.f32 0.044715, %v776_v43 }
 0x21d   : > { %v699_v38 = vpop.f32.mrf.mxu0  ;;  %v823_v17 = vmul.f32 0.7978846, %v807_v24  ;;  %v781_v63 = vmul.f32 %v765_v23, %v1758_v1  ;;  %1342 = vtanh.f32 %v825_v44 }
 0x21e   : > { %v1755_v39 = vadd.f32 %v1721_v5, %v699_v38  ;;  %v779_v41 = vmul.f32 %v763_v34, %v1745_v55  ;;  %v766_v48 = vmul.f32 %v1752_v20, %v1752_v20  ;;  %v826_v62 = vmul.f32 0.7978846, %v810_v52 }
 0x21f   : > { %v1250_v42 = vpop.f32.mrf.mxu0  ;;  %v808_v2 = vadd.f32 %v792_v29, %v1739_v19  ;;  %1344 = vtanh.f32 %v823_v17  ;;  %v797_v54 = vmul.f32 0.044715, %v781_v63 }
 0x220   : > { %v764_v10 = vmul.f32 %v1755_v39, %v1755_v39  ;;  %v795_v50 = vmul.f32 0.044715, %v779_v41  ;;  %v782_v57 = vmul.f32 %v766_v48, %v1752_v20  ;;  %v1789_v21 = vadd.f32 %v1250_v42, %v1721_v5 }
 0x221   : > { %v712_v49 = vpop.f32.mrf.mxu0  ;;  %1346 = vtanh.f32 %v826_v62  ;;  %v824_v18 = vmul.f32 0.7978846, %v808_v2  ;;  %v813_v38 = vadd.f32 %v797_v54, %v1758_v1  ;;  %v748_v54 = vmul.f32 0.5, %v1755_v39 }
 0x222   : > { %v780_v51 = vmul.f32 %v764_v10, %v1755_v39  ;;  %v1770_v11 = vadd.f32 %v1721_v5, %v712_v49  ;;  %v811_v59 = vadd.f32 %v795_v50, %v1745_v55  ;;  %v798_v25 = vmul.f32 0.044715, %v782_v57 }
 0x223   : > { %v1251_v28 = vpop.f32.mrf.mxu0  ;;  %v769_v13 = vmul.f32 %v1789_v21, %v1789_v21  ;;  %v829_v52 = vmul.f32 0.7978846, %v813_v38 }
 0x224   : > { %v796_v53 = vmul.f32 0.044715, %v780_v51  ;;  %v767_v56 = vmul.f32 %v1770_v11, %v1770_v11  ;;  %v1779_v58 = vadd.f32 %v1251_v28, %v1721_v5  ;;  %v827_v6 = vmul.f32 0.7978846, %v811_v59 }
 0x225   : > { %v715_v35 = vpop.f32.mrf.mxu0  ;;  %v814_v16 = vadd.f32 %v798_v25, %v1752_v20  ;;  %v785_v40 = vmul.f32 %v769_v13, %v1789_v21 }
 0x226   : > { %v812_v60 = vadd.f32 %v796_v53, %v1755_v39  ;;  %v783_v61 = vmul.f32 %v767_v56, %v1770_v11  ;;  %v1785_v37 = vadd.f32 %v1721_v5, %v715_v35  ;;  %v770_v4 = vmul.f32 %v1779_v58, %v1779_v58 }
 0x227   : > { %v1254_v47 = vpop.f32.mrf.mxu0  ;;  %v830_v10 = vmul.f32 0.7978846, %v814_v16  ;;  %v801_v23 = vmul.f32 0.044715, %v785_v40 }
 0x228   : > { %v828_v3 = vmul.f32 0.7978846, %v812_v60  ;;  %v768_v33 = vmul.f32 %v1785_v37, %v1785_v37  ;;  %v799_v8 = vmul.f32 0.044715, %v783_v61  ;;  %v786_v26 = vmul.f32 %v770_v4, %v1779_v58 }
 0x229   : > { %v728_v36 = vpop.f32.mrf.mxu0  ;;  %v1818_v42 = vadd.f32 %v1254_v47, %v1721_v5  ;;  %v817_v35 = vadd.f32 %v801_v23, %v1789_v21  ;;  %v750_v23 = vmul.f32 0.5, %v1752_v20 }
 0x22a   : > { %v1797_v45 = vadd.f32 %v1721_v5, %v728_v36  ;;  %v784_v14 = vmul.f32 %v768_v33, %v1785_v37  ;;  %1348 = vtanh.f32 %v828_v3  ;;  %v815_v0 = vadd.f32 %v799_v8, %v1770_v11  ;;  %v1343_v56 = vpop.eup %1342 }
 0x22b   : > { %v1255_v15 = vpop.f32.mrf.mxu0  ;;  %1350 = vtanh.f32 %v827_v6  ;;  %v802_v46 = vmul.f32 0.044715, %v786_v26  ;;  %v833_v25 = vmul.f32 0.7978846, %v817_v35  ;;  %v743_v6 = vmul.f32 0.5, %v1727_v9 }
 0x22c   : > { %v771_v22 = vmul.f32 %v1797_v45, %v1797_v45  ;;  %v800_v27 = vmul.f32 0.044715, %v784_v14  ;;  %v1807_v30 = vadd.f32 %v1255_v15, %v1721_v5  ;;  %v831_v49 = vmul.f32 0.7978846, %v815_v0  ;;  %v1345_v57 = vpop.eup %1344 }
 0x22d   : > { %v731_v31 = vpop.f32.mrf.mxu0  ;;  %1352 = vtanh.f32 %v824_v18  ;;  %v818_v29 = vadd.f32 %v802_v46, %v1779_v58  ;;  %v855_v13 = vadd.f32 1.0, %v1345_v57  ;;  %v746_v18 = vmul.f32 0.5, %v1730_v12 }
 0x22e   : > { %v787_v32 = vmul.f32 %v771_v22, %v1797_v45  ;;  %v1812_v34 = vadd.f32 %v1721_v5, %v731_v31  ;;  %v816_v41 = vadd.f32 %v800_v27, %v1785_v37  ;;  %v774_v48 = vmul.f32 %v1807_v30, %v1807_v30  ;;  %v1347_v60 = vpop.eup %1346 }
 0x22f   : > { %v773_v5 = vmul.f32 %v1818_v42, %v1818_v42  ;;  %v834_v63 = vmul.f32 0.7978846, %v818_v29  ;;  %v858_v8 = vadd.f32 1.0, %v1347_v60  ;;  %v857_v16 = vadd.f32 1.0, %v1343_v56 }
 0x230   : > { %v772_v43 = vmul.f32 %v1812_v34, %v1812_v34  ;;  %v832_v24 = vmul.f32 0.7978846, %v816_v41  ;;  %v803_v50 = vmul.f32 0.044715, %v787_v32  ;;  %v790_v53 = vmul.f32 %v774_v48, %v1807_v30 }
 0x231   : > { %v789_v59 = vmul.f32 %v773_v5, %v1818_v42  ;;  %v747_v26 = vmul.f32 0.5, %v1745_v55  ;;  %v744_v27 = vmul.f32 0.5, %v1739_v19  ;;  %v745_v32 = vmul.f32 0.5, %v1724_v7 }
 0x232   : > { %v788_v51 = vmul.f32 %v772_v43, %v1812_v34  ;;  %1354 = vtanh.f32 %v832_v24  ;;  %v819_v44 = vadd.f32 %v803_v50, %v1797_v45  ;;  %v806_v47 = vmul.f32 0.044715, %v790_v53 }
 0x233   : > { %1356 = vtanh.f32 %v830_v10  ;;  %v805_v4 = vmul.f32 0.044715, %v789_v59  ;;  %v874_v38 = vmul.f32 %v858_v8, %v746_v18  ;;  %v871_v41 = vmul.f32 %v855_v13, %v743_v6 }
 0x234   : > { %v804_v28 = vmul.f32 0.044715, %v788_v51  ;;  %1358 = vtanh.f32 %v831_v49  ;;  %v835_v2 = vmul.f32 0.7978846, %v819_v44  ;;  %v822_v36 = vadd.f32 %v806_v47, %v1807_v30 }
 0x235   : > { %1360 = vtanh.f32 %v829_v52  ;;  %v821_v22 = vadd.f32 %v805_v4, %v1818_v42  ;;  %v873_v24 = vmul.f32 %v857_v16, %v745_v32  ;;  %v752_v52 = vmul.f32 0.5, %v1785_v37 }
 0x236   : > { %v820_v17 = vadd.f32 %v804_v28, %v1812_v34  ;;  %v838_v39 = vmul.f32 0.7978846, %v822_v36  ;;  %v751_v28 = vmul.f32 0.5, %v1770_v11  ;;  %v749_v56 = vmul.f32 0.5, %v1758_v1 }
 0x237   : > { %v1349_v62 = vpop.eup %1348  ;;  %v837_v46 = vmul.f32 0.7978846, %v821_v22  ;;  %v888_v19 = vpack.c.bf16 %v874_v38, %v873_v24  ;;  %v754_v11 = vmul.f32 0.5, %v1779_v58  ;;  %v755_v1 = vmul.f32 0.5, %v1797_v45  ;;  %v1862_v22 = vld [vmem:[%s1950_s6] ss:$0 sm:$0xff] }
 0x238   : > { %v836_v61 = vmul.f32 0.7978846, %v820_v17  ;;  %v1351_v3 = vpop.eup %1350  ;;  %v860_v33 = vadd.f32 1.0, %v1349_v62  ;;  %v758_v13 = vmul.f32 0.5, %v1807_v30 }
 0x239   : > { %v859_v14 = vadd.f32 1.0, %v1351_v3 }
 0x23a   : > { %1362 = vtanh.f32 %v836_v61  ;;  %v1353_v15 = vpop.eup %1352  ;;  %v876_v0 = vmul.f32 %v860_v33, %v748_v54 }
 0x23b   : > { %1364 = vtanh.f32 %v834_v63  ;;  %v856_v31 = vadd.f32 1.0, %v1353_v15  ;;  %v875_v10 = vmul.f32 %v859_v14, %v747_v26  ;;  %v756_v63 = vmul.f32 0.5, %v1812_v34  ;;  %v1374_v26 = vld [vmem:[%s1480_s8 + $0x10] sm:$0xff] }
 0x23c   : > { %1366 = vtanh.f32 %v835_v2 }
 0x23d   : > { %1368 = vtanh.f32 %v833_v25  ;;  %v872_v43 = vmul.f32 %v856_v31, %v744_v27  ;;  %v889_v55 = vpack.c.bf16 %v876_v0, %v875_v10  ;;  %v753_v25 = vmul.f32 0.5, %v1789_v21 }
 0x23e   : > { %1370 = vtanh.f32 %v838_v39  ;;  %v757_v21 = vmul.f32 0.5, %v1818_v42 }
 0x23f   : > { %v1355_v9 = vpop.eup %1354  ;;  %v887_v49 = vpack.c.bf16 %v872_v43, %v871_v41  ;;  %1372 = vtanh.f32 %v837_v46 }
 0x240   : > { %v1357_v40 = vpop.eup %1356  ;;  %v864_v50 = vadd.f32 1.0, %v1355_v9  ;;  %v1375_v9 = vld [vmem:[%s1480_s8] sm:$0xff] }
 0x241   : > { %v1359_v12 = vpop.eup %1358  ;;  %v862_v51 = vadd.f32 1.0, %v1357_v40  ;;  %1264 = vmatprep.mubr.msk.bf16.mxu1 %vm934_vm1, %v887_v49  ;;  %v1376_v40 = vld [vmem:[%s1480_s8 + $0x18] sm:$0xff]  ;;  %v1378_v49 = vld [vmem:[%s1480_s8 + $0x30] sm:$0xff] }
 0x242   : > { %v1361_v48 = vpop.eup %1360  ;;  %v863_v7 = vadd.f32 1.0, %v1359_v12  ;;  %1265 = vmatmul.mubr.msk.bf16.vlgmr.msra.gmra.mxu1 %vm934_vm1, %v888_v19  ;;  %v880_v29 = vmul.f32 %v864_v50, %v752_v52  ;;  %v1377_v12 = vld [vmem:[%s1480_s8 + $0x8] sm:$0xff] }
 0x243   : > { %v861_v5 = vadd.f32 1.0, %v1361_v48  ;;  %1268 = vmatprep.mubr.msk.bf16.mxu1 %vm934_vm1, %v889_v55  ;;  %v878_v44 = vmul.f32 %v862_v51, %v750_v23  ;;  %v1379_v51 = vld [vmem:[%s1480_s8 + $0x20] sm:$0xff] }
 0x244   : > { %v879_v37 = vmul.f32 %v863_v7, %v751_v28 }
 0x245   : > { %v877_v35 = vmul.f32 %v861_v5, %v749_v56  ;;  %v1380_v5 = vld [vmem:[%s1480_s8 + $0x38] sm:$0xff]  ;;  %v1381_v56 = vld [vmem:[%s1480_s8 + $0x28] sm:$0xff] }
 0x246   : > { %v891_v60 = vpack.c.bf16 %v880_v29, %v879_v37 }
 0x247   : > { %v1363_v53 = vpop.eup %1362  ;;  %v890_v61 = vpack.c.bf16 %v878_v44, %v877_v35 }
 0x248   : > { %v1365_v17 = vpop.eup %1364  ;;  %v868_v20 = vadd.f32 1.0, %v1363_v53 }
 0x249   : > { %v1367_v57 = vpop.eup %1366  ;;  %v866_v62 = vadd.f32 1.0, %v1365_v17 }
 0x24a   : > { %v1369_v59 = vpop.eup %1368  ;;  %v867_v47 = vadd.f32 1.0, %v1367_v57  ;;  %1269 = vmatmul.mubr.msk.bf16.gmra.mxu1 %vm934_vm1, %v890_v61  ;;  %v884_v3 = vmul.f32 %v868_v20, %v756_v63  ;;  %v1382_v57 = vld [vmem:[%s1480_s8 + $0x50] sm:$0xff]  ;;  %v1383_v20 = vld [vmem:[%s1480_s8 + $0x40] sm:$0xff] }
 0x24b   : > { %v865_v2 = vadd.f32 1.0, %v1369_v59  ;;  %1272 = vmatprep.mubr.msk.bf16.mxu1 %vm934_vm1, %v891_v60  ;;  %v882_v4 = vmul.f32 %v866_v62, %v754_v11  ;;  %v1371_v33 = vpop.eup %1370 }
 0x24c   : > { %v883_v36 = vmul.f32 %v867_v47, %v755_v1  ;;  %v1373_v8 = vpop.eup %1372  ;;  %v870_v58 = vadd.f32 1.0, %v1371_v33  ;;  %v1384_v47 = vld [vmem:[%s1480_s8 + $0x58] sm:$0xff] }
 0x24d   : > { %v881_v6 = vmul.f32 %v865_v2, %v753_v25  ;;  %v869_v45 = vadd.f32 1.0, %v1373_v8 }
 0x24e   : > { %v893_v34 = vpack.c.bf16 %v884_v3, %v883_v36  ;;  %v886_v14 = vmul.f32 %v870_v58, %v758_v13  ;;  %v1385_v3 = vld [vmem:[%s1480_s8 + $0x48] sm:$0xff]  ;;  %v1386_v36 = vld [vmem:[%s1480_s8 + $0x70] sm:$0xff] }
 0x24f   : > { %v892_v54 = vpack.c.bf16 %v882_v4, %v881_v6  ;;  %v885_v15 = vmul.f32 %v869_v45, %v757_v21  ;;  %v1388_v21 = vld [vmem:[%s1480_s8 + $0x78] sm:$0xff] }
 0x251   : > { %v894_v18 = vpack.c.bf16 %v886_v14, %v885_v15 }
 0x252   : > { %1273 = vmatmul.mubr.msk.bf16.gmra.mxu1 %vm934_vm1, %v892_v54  ;;  %v1387_v54 = vld [vmem:[%s1480_s8 + $0x60] sm:$0xff] }
 0x253   : > { %1276 = vmatprep.mubr.msk.bf16.mxu1 %vm934_vm1, %v893_v34 }
 0x25a   : > { %1277 = vmatmul.mubr.msk.bf16.gmra.mxu1 %vm934_vm1, %v894_v18  ;;  %v1389_v18 = vld [vmem:[%s1480_s8 + $0x68] sm:$0xff] }
 0x302   : > { %v1266_v30 = vpop.f32.mrf.mxu1 }
 0x303   : > { %v1002_v16 = vadd.f32 %v1266_v30, %v1862_v22 }
 0x304   : > { %v993_v42 = vpop.f32.mrf.mxu1 }
 0x305   : > { %v1058_v27 = vadd.f32 %v1374_v26, %v1002_v16  ;;  %v994_v31 = vadd.f32 %v1862_v22, %v993_v42 }
 0x306   : > { %v1267_v0 = vpop.f32.mrf.mxu1 }
 0x307   : > { %1074 = vst.msk [vmem:[%s1870_s14 + $0x10] sm:$0xff] %vm335_vm0, %v1058_v27  ;;  %v1056_v32 = vadd.f32 %v1375_v9, %v994_v31  ;;  %v1005_v39 = vadd.f32 %v1267_v0, %v1862_v22 }
 0x308   : > { %v996_v38 = vpop.f32.mrf.mxu1 }
 0x309   : > { %1072 = vst.msk [vmem:[%s1870_s14] sm:$0xff] %vm335_vm0, %v1056_v32  ;;  %v1059_v41 = vadd.f32 %v1376_v40, %v1005_v39  ;;  %v997_v43 = vadd.f32 %v1862_v22, %v996_v38 }
 0x30a   : > { %v1270_v10 = vpop.f32.mrf.mxu1 }
 0x30b   : > { %1075 = vst.msk [vmem:[%s1870_s14 + $0x18] sm:$0xff] %vm335_vm0, %v1059_v41  ;;  %v1057_v46 = vadd.f32 %v1377_v12, %v997_v43  ;;  %v1018_v24 = vadd.f32 %v1270_v10, %v1862_v22 }
 0x30c   : > { %v1009_v48 = vpop.f32.mrf.mxu1 }
 0x30d   : > { %1073 = vst.msk [vmem:[%s1870_s14 + $0x8] sm:$0xff] %vm335_vm0, %v1057_v46  ;;  %v1062_v55 = vadd.f32 %v1378_v49, %v1018_v24  ;;  %v1010_v50 = vadd.f32 %v1862_v22, %v1009_v48 }
 0x30e   : > { %v1271_v19 = vpop.f32.mrf.mxu1 }
 0x30f   : > { %1078 = vst.msk [vmem:[%s1870_s14 + $0x30] sm:$0xff] %vm335_vm0, %v1062_v55  ;;  %v1060_v52 = vadd.f32 %v1379_v51, %v1010_v50  ;;  %v1021_v7 = vadd.f32 %v1271_v19, %v1862_v22 }
 0x310   : > { %v1012_v23 = vpop.f32.mrf.mxu1 }
 0x311   : > { %1076 = vst.msk [vmem:[%s1870_s14 + $0x20] sm:$0xff] %vm335_vm0, %v1060_v52  ;;  %v1063_v28 = vadd.f32 %v1380_v5, %v1021_v7  ;;  %v1013_v29 = vadd.f32 %v1862_v22, %v1012_v23 }
 0x312   : > { %v1274_v53 = vpop.f32.mrf.mxu1 }
 0x313   : > { %1079 = vst.msk [vmem:[%s1870_s14 + $0x38] sm:$0xff] %vm335_vm0, %v1063_v28  ;;  %v1061_v44 = vadd.f32 %v1381_v56, %v1013_v29  ;;  %v1034_v17 = vadd.f32 %v1274_v53, %v1862_v22 }
 0x314   : > { %v1025_v37 = vpop.f32.mrf.mxu1 }
 0x315   : > { %1077 = vst.msk [vmem:[%s1870_s14 + $0x28] sm:$0xff] %vm335_vm0, %v1061_v44  ;;  %v1066_v35 = vadd.f32 %v1382_v57, %v1034_v17  ;;  %v1026_v59 = vadd.f32 %v1862_v22, %v1025_v37 }
 0x316   : > { %v1275_v60 = vpop.f32.mrf.mxu1 }
 0x317   : > { %1082 = vst.msk [vmem:[%s1870_s14 + $0x50] sm:$0xff] %vm335_vm0, %v1066_v35  ;;  %v1064_v61 = vadd.f32 %v1383_v20, %v1026_v59  ;;  %v1037_v62 = vadd.f32 %v1275_v60, %v1862_v22 }
 0x318   : > { %v1028_v63 = vpop.f32.mrf.mxu1 }
 0x319   : > { %1080 = vst.msk [vmem:[%s1870_s14 + $0x40] sm:$0xff] %vm335_vm0, %v1064_v61  ;;  %v1067_v11 = vadd.f32 %v1384_v47, %v1037_v62  ;;  %v1029_v2 = vadd.f32 %v1862_v22, %v1028_v63 }
 0x31a   : > { %v1278_v1 = vpop.f32.mrf.mxu1 }
 0x31b   : > { %1083 = vst.msk [vmem:[%s1870_s14 + $0x58] sm:$0xff] %vm335_vm0, %v1067_v11  ;;  %v1065_v25 = vadd.f32 %v1385_v3, %v1029_v2  ;;  %v1050_v4 = vadd.f32 %v1278_v1, %v1862_v22 }
 0x31c   : > { %v1041_v33 = vpop.f32.mrf.mxu1 }
 0x31d   : > { %1081 = vst.msk [vmem:[%s1870_s14 + $0x48] sm:$0xff] %vm335_vm0, %v1065_v25  ;;  %v1070_v6 = vadd.f32 %v1386_v36, %v1050_v4  ;;  %v1042_v8 = vadd.f32 %v1862_v22, %v1041_v33 }
 0x31e   : > { %v1279_v34 = vpop.f32.mrf.mxu1 }
 0x31f   : > { %1086 = vst.msk [vmem:[%s1870_s14 + $0x70] sm:$0xff] %vm335_vm0, %v1070_v6  ;;  %v1068_v58 = vadd.f32 %v1387_v54, %v1042_v8  ;;  %v1053_v13 = vadd.f32 %v1279_v34, %v1862_v22 }
 0x320   : > { %v1044_v45 = vpop.f32.mrf.mxu1 }
 0x321   : > { %1084 = vst.msk [vmem:[%s1870_s14 + $0x60] sm:$0xff] %vm335_vm0, %v1068_v58  ;;  %v1071_v14 = vadd.f32 %v1388_v21, %v1053_v13  ;;  %v1045_v15 = vadd.f32 %v1862_v22, %v1044_v45 }
 0x323   : > { %1087 = vst.msk [vmem:[%s1870_s14 + $0x78] sm:$0xff] %vm335_vm0, %v1071_v14  ;;  %v1069_v30 = vadd.f32 %v1389_v18, %v1045_v15 }
 0x325   : > { %1085 = vst.msk [vmem:[%s1870_s14 + $0x68] sm:$0xff] %vm335_vm0, %v1069_v30 }
 0x326 PF: > { %s17_s26 = sadd.s32 1, %s1412_s26   ;;  %s1952_s24 = smov %s1408_s25 }
 0x327   : > { %p14_p5 = scmp.ge.s32.totalorder %s17_s26, 4   ;;  %s1953_s25 = smov %s1955_s27 }
 0x329   :  { %16 = sbr.rel (!%p14_p5) target bundleno = 2 (0x2), region = 78 }

// kernel: siglip_vision_model.15
= control target key start
LH: loop header
LB: loop body
LE: loop exit
PB: predicated region body
PF: predicated region fallthrough
CT: control target
= control target key end

     0   :  { %s700_s12 = smov 0   ;;  %s702_s13 = smov 0   ;;  %s986_s0 = inlined_call_operand.vmem [shape: f32[2,128,32], index: 0, kind: input, shape index: {}]   ;;  %s987_s1 = inlined_call_operand.vmem [shape: f32[1,32], index: 1, kind: input, shape index: {}]   ;;  %s988_s2 = inlined_call_operand.vmem [shape: f32[1,32], index: 2, kind: input, shape index: {}]   ;;  %s989_s3 = inlined_call_operand.vmem [shape: f32[2,128,32], index: 3, kind: output, shape index: {}]  }
   0x1   :  { %s704_s14 = smov 0  }
   0x2 LB: > { %s25_s15 = sadd.s32 1, %s674_s13  ;;  %p589_p0 = scmp.ge.s32.totalorder %s678_s14, 1  ;;  %s678_s14 = sphi %s704_s14, %s13_s14   ;;  %s674_s13 = sphi %s702_s13, %s991_s13   ;;  %s670_s12 = sphi %s700_s12, %s990_s12  }
   0x3   : > { %p27_p1 = scmp.ge.s32.totalorder %s25_s15, 2  ;;  %p158_p2 = scmp.lt.s32.totalorder %s678_s14, 3 }
   0x5   : > { %s993_s15 = smov (%p27_p1, %s25_s15), 0  ;;  %p159_p3 = pnand %p589_p0, %p158_p2 }
   0x6   : > { %p191_p4 = scmp.lt.s32.totalorder (!%p159_p3), %s670_s12, 1 }
   0x7   : > { %162 = sbr.rel (%p159_p3) target bundleno = 357 (0x165), region = 32 }
   0xc   : > { %s995_s12 = smov (!%p191_p4, %s670_s12), 1  ;;  %vm226_vm0 = vcmask 261120  }
   0xd   : > { %s598_s16 = sshll.u32 %s995_s12, 7 }
   0xe   : > { %s726_s19 = scalar_lea.vmem %s986_s0, %s598_s16  ;;  %s897_s26 = scalar_lea.vmem %s989_s3, %s598_s16 }
   0xf   : > { %v210_v0 = vld [vmem:[%s726_s19] sm:$0xff]  ;;  %v212_v1 = vld [vmem:[%s726_s19 + $0x10] sm:$0xff]  ;;  %v211_v2 = vld [vmem:[%s726_s19 + $0x8] sm:$0xff] }
  0x10   : > { %v227_v3 = vsel %vm226_vm0, %v210_v0, 0.0  ;;  %v233_v4 = vsel %vm226_vm0, %v212_v1, 0.0  ;;  %v213_v5 = vld [vmem:[%s726_s19 + $0x18] sm:$0xff]  ;;  %v230_v6 = vsel %vm226_vm0, %v211_v2, 0.0  ;;  %v214_v8 = vld [vmem:[%s726_s19 + $0x20] sm:$0xff]  ;;  %v215_v9 = vld [vmem:[%s726_s19 + $0x28] sm:$0xff] }
  0x11   : > { %228 = vadd.xlane.f32.xlu0 %v227_v3  ;;  %234 = vadd.xlane.f32.xlu1 %v233_v4  ;;  %v236_v7 = vsel %vm226_vm0, %v213_v5, 0.0  ;;  %v239_v10 = vsel %vm226_vm0, %v214_v8, 0.0  ;;  %v242_v11 = vsel %vm226_vm0, %v215_v9, 0.0  ;;  %v741_v12 = vld [vmem:[%s726_s19 + $0x30] sm:$0xff]  ;;  %v744_v13 = vld [vmem:[%s726_s19 + $0x38] sm:$0xff]  ;;  %v751_v16 = vld [vmem:[%s726_s19 + $0x40] sm:$0xff] }
  0x12   : > { %v245_v14 = vsel %vm226_vm0, %v741_v12, 0.0  ;;  %v248_v15 = vsel %vm226_vm0, %v744_v13, 0.0  ;;  %v754_v17 = vld [vmem:[%s726_s19 + $0x48] sm:$0xff]  ;;  %v251_v18 = vsel %vm226_vm0, %v751_v16, 0.0  ;;  %v761_v20 = vld [vmem:[%s726_s19 + $0x50] sm:$0xff]  ;;  %v764_v21 = vld [vmem:[%s726_s19 + $0x58] sm:$0xff] }
  0x13   : > { %v254_v19 = vsel %vm226_vm0, %v754_v17, 0.0  ;;  %v257_v22 = vsel %vm226_vm0, %v761_v20, 0.0  ;;  %v260_v23 = vsel %vm226_vm0, %v764_v21, 0.0  ;;  %v771_v24 = vld [vmem:[%s726_s19 + $0x60] sm:$0xff]  ;;  %v774_v25 = vld [vmem:[%s726_s19 + $0x68] sm:$0xff]  ;;  %v781_v28 = vld [vmem:[%s726_s19 + $0x70] sm:$0xff] }
  0x14   : > { %v263_v26 = vsel %vm226_vm0, %v771_v24, 0.0  ;;  %v266_v27 = vsel %vm226_vm0, %v774_v25, 0.0  ;;  %v784_v29 = vld [vmem:[%s726_s19 + $0x78] sm:$0xff]  ;;  %v269_v30 = vsel %vm226_vm0, %v781_v28, 0.0 }
  0x15   : > { %231 = vadd.xlane.f32.xlu0 %v230_v6  ;;  %237 = vadd.xlane.f32.xlu1 %v236_v7  ;;  %v272_v31 = vsel %vm226_vm0, %v784_v29, 0.0 }
  0x19   : > { %240 = vadd.xlane.f32.xlu0 %v239_v10  ;;  %243 = vadd.xlane.f32.xlu1 %v242_v11 }
  0x1d   : > { %246 = vadd.xlane.f32.xlu0 %v245_v14  ;;  %249 = vadd.xlane.f32.xlu1 %v248_v15 }
  0x21   : > { %252 = vadd.xlane.f32.xlu0 %v251_v18  ;;  %255 = vadd.xlane.f32.xlu1 %v254_v19 }
  0x25   : > { %258 = vadd.xlane.f32.xlu0 %v257_v22  ;;  %261 = vadd.xlane.f32.xlu1 %v260_v23 }
  0x29   : > { %264 = vadd.xlane.f32.xlu0 %v263_v26  ;;  %267 = vadd.xlane.f32.xlu1 %v266_v27 }
  0x2d   : > { %270 = vadd.xlane.f32.xlu0 %v269_v30  ;;  %273 = vadd.xlane.f32.xlu1 %v272_v31 }
  0x9a   : > { %v229_v32 = vpop.xlane.xlu0 %228  ;;  %v235_v33 = vpop.xlane.xlu1 %234 }
  0x9b   : > { %v276_v34 = vmul.f32 0.03125, %v229_v32  ;;  %v278_v35 = vmul.f32 0.03125, %v235_v33 }
  0x9d   : > { %v790_v36 = vsub.f32 %v210_v0, %v276_v34  ;;  %v792_v37 = vsub.f32 %v212_v1, %v278_v35 }
  0x9e   : > { %v232_v38 = vpop.xlane.xlu0 %231  ;;  %v238_v39 = vpop.xlane.xlu1 %237 }
  0x9f   : > { %v277_v40 = vmul.f32 0.03125, %v232_v38  ;;  %v279_v41 = vmul.f32 0.03125, %v238_v39  ;;  %v308_v42 = vmul.f32 %v790_v36, %v790_v36  ;;  %v310_v43 = vmul.f32 %v792_v37, %v792_v37 }
  0xa1   : > { %v798_v44 = vsub.f32 %v211_v2, %v277_v40  ;;  %v800_v45 = vsub.f32 %v213_v5, %v279_v41  ;;  %v324_v46 = vsel %vm226_vm0, %v308_v42, 0.0  ;;  %v330_v49 = vsel %vm226_vm0, %v310_v43, 0.0 }
  0xa2   : > { %325 = vadd.xlane.f32.xlu0 %v324_v46  ;;  %v241_v47 = vpop.xlane.xlu0 %240  ;;  %v244_v48 = vpop.xlane.xlu1 %243 }
  0xa3   : > { %v280_v50 = vmul.f32 0.03125, %v241_v47  ;;  %v281_v51 = vmul.f32 0.03125, %v244_v48  ;;  %v309_v52 = vmul.f32 %v798_v44, %v798_v44  ;;  %v311_v53 = vmul.f32 %v800_v45, %v800_v45 }
  0xa5   : > { %v808_v54 = vsub.f32 %v214_v8, %v280_v50  ;;  %v810_v55 = vsub.f32 %v215_v9, %v281_v51  ;;  %v327_v56 = vsel %vm226_vm0, %v309_v52, 0.0  ;;  %v333_v59 = vsel %vm226_vm0, %v311_v53, 0.0 }
  0xa6   : > { %331 = vadd.xlane.f32.xlu0 %v330_v49  ;;  %328 = vadd.xlane.f32.xlu1 %v327_v56  ;;  %v247_v57 = vpop.xlane.xlu0 %246  ;;  %v250_v58 = vpop.xlane.xlu1 %249 }
  0xa7   : > { %v282_v60 = vmul.f32 0.03125, %v247_v57  ;;  %v283_v61 = vmul.f32 0.03125, %v250_v58  ;;  %v312_v62 = vmul.f32 %v808_v54, %v808_v54  ;;  %v313_v63 = vmul.f32 %v810_v55, %v810_v55 }
  0xa9   : > { %v819_v0 = vsub.f32 %v741_v12, %v282_v60  ;;  %v822_v1 = vsub.f32 %v744_v13, %v283_v61  ;;  %v336_v2 = vsel %vm226_vm0, %v312_v62, 0.0  ;;  %v339_v5 = vsel %vm226_vm0, %v313_v63, 0.0 }
  0xaa   : > { %334 = vadd.xlane.f32.xlu1 %v333_v59  ;;  %337 = vadd.xlane.f32.xlu0 %v336_v2  ;;  %v253_v3 = vpop.xlane.xlu0 %252  ;;  %v256_v4 = vpop.xlane.xlu1 %255 }
  0xab   : > { %v284_v6 = vmul.f32 0.03125, %v253_v3  ;;  %v285_v7 = vmul.f32 0.03125, %v256_v4  ;;  %v314_v8 = vmul.f32 %v819_v0, %v819_v0  ;;  %v315_v9 = vmul.f32 %v822_v1, %v822_v1 }
  0xad   : > { %v831_v10 = vsub.f32 %v751_v16, %v284_v6  ;;  %v834_v11 = vsub.f32 %v754_v17, %v285_v7  ;;  %v342_v12 = vsel %vm226_vm0, %v314_v8, 0.0  ;;  %v345_v15 = vsel %vm226_vm0, %v315_v9, 0.0 }
  0xae   : > { %340 = vadd.xlane.f32.xlu1 %v339_v5  ;;  %343 = vadd.xlane.f32.xlu0 %v342_v12  ;;  %v259_v13 = vpop.xlane.xlu0 %258  ;;  %v262_v14 = vpop.xlane.xlu1 %261 }
  0xaf   : > { %v286_v18 = vmul.f32 0.03125, %v259_v13  ;;  %v287_v19 = vmul.f32 0.03125, %v262_v14  ;;  %v316_v22 = vmul.f32 %v831_v10, %v831_v10  ;;  %v317_v16 = vmul.f32 %v834_v11, %v834_v11 }
  0xb1   : > { %v843_v23 = vsub.f32 %v761_v20, %v286_v18  ;;  %v846_v17 = vsub.f32 %v764_v21, %v287_v19  ;;  %v348_v26 = vsel %vm226_vm0, %v316_v22, 0.0  ;;  %v351_v31 = vsel %vm226_vm0, %v317_v16, 0.0 }
  0xb2   : > { %346 = vadd.xlane.f32.xlu1 %v345_v15  ;;  %349 = vadd.xlane.f32.xlu0 %v348_v26  ;;  %v265_v27 = vpop.xlane.xlu0 %264  ;;  %v268_v30 = vpop.xlane.xlu1 %267  ;;  %v883_v26 = vld [vmem:[%s987_s1] ss:$0 sm:$0xff] }
  0xb3   : > { %v288_v32 = vmul.f32 0.03125, %v265_v27  ;;  %v289_v33 = vmul.f32 0.03125, %v268_v30  ;;  %v318_v34 = vmul.f32 %v843_v23, %v843_v23  ;;  %v319_v20 = vmul.f32 %v846_v17, %v846_v17 }
  0xb5   : > { %v855_v35 = vsub.f32 %v771_v24, %v288_v32  ;;  %v858_v21 = vsub.f32 %v774_v25, %v289_v33  ;;  %v354_v38 = vsel %vm226_vm0, %v318_v34, 0.0  ;;  %v357_v41 = vsel %vm226_vm0, %v319_v20, 0.0  ;;  %v889_v32 = vld [vmem:[%s988_s2] ss:$0 sm:$0xff] }
  0xb6   : > { %352 = vadd.xlane.f32.xlu1 %v351_v31  ;;  %355 = vadd.xlane.f32.xlu0 %v354_v38  ;;  %v271_v39 = vpop.xlane.xlu0 %270  ;;  %v274_v40 = vpop.xlane.xlu1 %273 }
  0xb7   : > { %v290_v42 = vmul.f32 0.03125, %v271_v39  ;;  %v291_v43 = vmul.f32 0.03125, %v274_v40  ;;  %v320_v46 = vmul.f32 %v855_v35, %v855_v35  ;;  %v321_v24 = vmul.f32 %v858_v21, %v858_v21 }
  0xb9   : > { %v867_v47 = vsub.f32 %v781_v28, %v290_v42  ;;  %v870_v25 = vsub.f32 %v784_v29, %v291_v43  ;;  %v360_v48 = vsel %vm226_vm0, %v320_v46, 0.0  ;;  %v363_v49 = vsel %vm226_vm0, %v321_v24, 0.0 }
  0xba   : > { %358 = vadd.xlane.f32.xlu1 %v357_v41  ;;  %361 = vadd.xlane.f32.xlu0 %v360_v48 }
  0xbb   : > { %v322_v50 = vmul.f32 %v867_v47, %v867_v47  ;;  %v323_v51 = vmul.f32 %v870_v25, %v870_v25 }
  0xbd   : > { %v366_v52 = vsel %vm226_vm0, %v322_v50, 0.0  ;;  %v369_v28 = vsel %vm226_vm0, %v323_v51, 0.0 }
  0xbe   : > { %364 = vadd.xlane.f32.xlu1 %v363_v49  ;;  %367 = vadd.xlane.f32.xlu0 %v366_v52 }
  0xc2   : > { %370 = vadd.xlane.f32.xlu1 %v369_v28 }
 0x12b   : > { %v326_v29 = vpop.xlane.xlu0 %325 }
 0x12c   : > { %v372_v53 = vmul.f32 0.03125, %v326_v29 }
 0x12e   : > { %v388_v56 = vadd.f32 1e-06, %v372_v53 }
 0x12f   : > { %v329_v57 = vpop.xlane.xlu1 %328  ;;  %v332_v58 = vpop.xlane.xlu0 %331 }
 0x130   : > { %624 = vrsqrt.f32 %v388_v56  ;;  %v373_v59 = vmul.f32 0.03125, %v329_v57  ;;  %v374_v60 = vmul.f32 0.03125, %v332_v58 }
 0x132   : > { %v389_v61 = vadd.f32 1e-06, %v373_v59  ;;  %v390_v62 = vadd.f32 1e-06, %v374_v60 }
 0x133   : > { %v335_v63 = vpop.xlane.xlu1 %334  ;;  %v338_v2 = vpop.xlane.xlu0 %337 }
 0x134   : > { %626 = vrsqrt.f32 %v389_v61  ;;  %v375_v3 = vmul.f32 0.03125, %v335_v63  ;;  %v376_v4 = vmul.f32 0.03125, %v338_v2 }
 0x135   : > { %628 = vrsqrt.f32 %v390_v62 }
 0x136   : > { %v391_v5 = vadd.f32 1e-06, %v375_v3  ;;  %v392_v6 = vadd.f32 1e-06, %v376_v4 }
 0x137   : > { %v341_v7 = vpop.xlane.xlu1 %340  ;;  %v344_v8 = vpop.xlane.xlu0 %343 }
 0x138   : > { %630 = vrsqrt.f32 %v391_v5  ;;  %v377_v9 = vmul.f32 0.03125, %v341_v7  ;;  %v378_v12 = vmul.f32 0.03125, %v344_v8 }
 0x139   : > { %632 = vrsqrt.f32 %v392_v6 }
 0x13a   : > { %v393_v13 = vadd.f32 1e-06, %v377_v9  ;;  %v394_v14 = vadd.f32 1e-06, %v378_v12 }
 0x13b   : > { %v347_v15 = vpop.xlane.xlu1 %346  ;;  %v350_v18 = vpop.xlane.xlu0 %349 }
 0x13c   : > { %634 = vrsqrt.f32 %v393_v13  ;;  %v379_v19 = vmul.f32 0.03125, %v347_v15  ;;  %v380_v22 = vmul.f32 0.03125, %v350_v18 }
 0x13d   : > { %v625_v16 = vpop.eup %624  ;;  %636 = vrsqrt.f32 %v394_v14 }
 0x13e   : > { %v420_v27 = vmul.f32 %v625_v16, %v790_v36  ;;  %v395_v30 = vadd.f32 1e-06, %v379_v19  ;;  %v396_v31 = vadd.f32 1e-06, %v380_v22 }
 0x13f   : > { %v353_v33 = vpop.xlane.xlu1 %352  ;;  %v356_v34 = vpop.xlane.xlu0 %355 }
 0x140   : > { %v443_v20 = vmul.f32 %v883_v26, %v420_v27  ;;  %638 = vrsqrt.f32 %v395_v30  ;;  %v381_v38 = vmul.f32 0.03125, %v353_v33  ;;  %v382_v39 = vmul.f32 0.03125, %v356_v34 }
 0x141   : > { %v627_v40 = vpop.eup %626  ;;  %640 = vrsqrt.f32 %v396_v31 }
 0x142   : > { %v629_v36 = vpop.eup %628  ;;  %v466_v41 = vadd.f32 %v889_v32, %v443_v20  ;;  %v421_v42 = vmul.f32 %v627_v40, %v798_v44  ;;  %v397_v43 = vadd.f32 1e-06, %v381_v38  ;;  %v398_v46 = vadd.f32 1e-06, %v382_v39 }
 0x143   : > { %v422_v24 = vmul.f32 %v629_v36, %v792_v37  ;;  %v359_v48 = vpop.xlane.xlu1 %358  ;;  %v362_v49 = vpop.xlane.xlu0 %361 }
 0x144   : > { %482 = vst.msk [vmem:[%s897_s26] sm:$0xff] %vm226_vm0, %v466_v41  ;;  %v444_v50 = vmul.f32 %v883_v26, %v421_v42  ;;  %642 = vrsqrt.f32 %v397_v43  ;;  %v383_v51 = vmul.f32 0.03125, %v359_v48  ;;  %v384_v52 = vmul.f32 0.03125, %v362_v49 }
 0x145   : > { %v631_v28 = vpop.eup %630  ;;  %v445_v29 = vmul.f32 %v883_v26, %v422_v24  ;;  %644 = vrsqrt.f32 %v398_v46 }
 0x146   : > { %v633_v44 = vpop.eup %632  ;;  %v467_v53 = vadd.f32 %v889_v32, %v444_v50  ;;  %v423_v37 = vmul.f32 %v631_v28, %v800_v45  ;;  %v399_v56 = vadd.f32 1e-06, %v383_v51  ;;  %v400_v57 = vadd.f32 1e-06, %v384_v52 }
 0x147   : > { %v468_v58 = vadd.f32 %v889_v32, %v445_v29  ;;  %v424_v59 = vmul.f32 %v633_v44, %v808_v54  ;;  %v365_v60 = vpop.xlane.xlu1 %364  ;;  %v368_v61 = vpop.xlane.xlu0 %367 }
 0x148   : > { %483 = vst.msk [vmem:[%s897_s26 + $0x8] sm:$0xff] %vm226_vm0, %v467_v53  ;;  %v446_v62 = vmul.f32 %v883_v26, %v423_v37  ;;  %646 = vrsqrt.f32 %v399_v56  ;;  %v385_v63 = vmul.f32 0.03125, %v365_v60  ;;  %v386_v2 = vmul.f32 0.03125, %v368_v61 }
 0x149   : > { %v635_v3 = vpop.eup %634  ;;  %484 = vst.msk [vmem:[%s897_s26 + $0x10] sm:$0xff] %vm226_vm0, %v468_v58  ;;  %v447_v45 = vmul.f32 %v883_v26, %v424_v59  ;;  %648 = vrsqrt.f32 %v400_v57 }
 0x14a   : > { %v637_v4 = vpop.eup %636  ;;  %v469_v54 = vadd.f32 %v889_v32, %v446_v62  ;;  %v425_v5 = vmul.f32 %v635_v3, %v810_v55  ;;  %v401_v6 = vadd.f32 1e-06, %v385_v63  ;;  %v402_v7 = vadd.f32 1e-06, %v386_v2 }
 0x14b   : > { %v470_v8 = vadd.f32 %v889_v32, %v447_v45  ;;  %v426_v9 = vmul.f32 %v637_v4, %v819_v0  ;;  %v371_v12 = vpop.xlane.xlu1 %370 }
 0x14c   : > { %485 = vst.msk [vmem:[%s897_s26 + $0x18] sm:$0xff] %vm226_vm0, %v469_v54  ;;  %v448_v13 = vmul.f32 %v883_v26, %v425_v5  ;;  %650 = vrsqrt.f32 %v401_v6  ;;  %v387_v14 = vmul.f32 0.03125, %v371_v12 }
 0x14d   : > { %v639_v15 = vpop.eup %638  ;;  %486 = vst.msk [vmem:[%s897_s26 + $0x20] sm:$0xff] %vm226_vm0, %v470_v8  ;;  %v449_v55 = vmul.f32 %v883_v26, %v426_v9  ;;  %652 = vrsqrt.f32 %v402_v7 }
 0x14e   : > { %v641_v18 = vpop.eup %640  ;;  %v471_v19 = vadd.f32 %v889_v32, %v448_v13  ;;  %v427_v0 = vmul.f32 %v639_v15, %v822_v1  ;;  %v403_v22 = vadd.f32 1e-06, %v387_v14 }
 0x14f   : > { %v472_v16 = vadd.f32 %v889_v32, %v449_v55  ;;  %v428_v27 = vmul.f32 %v641_v18, %v831_v10 }
 0x150   : > { %487 = vst.msk [vmem:[%s897_s26 + $0x28] sm:$0xff] %vm226_vm0, %v471_v19  ;;  %v450_v30 = vmul.f32 %v883_v26, %v427_v0  ;;  %654 = vrsqrt.f32 %v403_v22 }
 0x151   : > { %v643_v31 = vpop.eup %642  ;;  %488 = vst.msk [vmem:[%s897_s26 + $0x30] sm:$0xff] %vm226_vm0, %v472_v16  ;;  %v451_v33 = vmul.f32 %v883_v26, %v428_v27 }
 0x152   : > { %v645_v34 = vpop.eup %644  ;;  %v473_v1 = vadd.f32 %v889_v32, %v450_v30  ;;  %v429_v20 = vmul.f32 %v643_v31, %v834_v11 }
 0x153   : > { %v474_v38 = vadd.f32 %v889_v32, %v451_v33  ;;  %v430_v10 = vmul.f32 %v645_v34, %v843_v23 }
 0x154   : > { %489 = vst.msk [vmem:[%s897_s26 + $0x38] sm:$0xff] %vm226_vm0, %v473_v1  ;;  %v452_v39 = vmul.f32 %v883_v26, %v429_v20 }
 0x155   : > { %v647_v40 = vpop.eup %646  ;;  %490 = vst.msk [vmem:[%s897_s26 + $0x40] sm:$0xff] %vm226_vm0, %v474_v38  ;;  %v453_v36 = vmul.f32 %v883_v26, %v430_v10 }
 0x156   : > { %v649_v41 = vpop.eup %648  ;;  %v475_v42 = vadd.f32 %v889_v32, %v452_v39  ;;  %v431_v11 = vmul.f32 %v647_v40, %v846_v17 }
 0x157   : > { %v476_v43 = vadd.f32 %v889_v32, %v453_v36  ;;  %v432_v23 = vmul.f32 %v649_v41, %v855_v35 }
 0x158   : > { %491 = vst.msk [vmem:[%s897_s26 + $0x48] sm:$0xff] %vm226_vm0, %v475_v42  ;;  %v454_v46 = vmul.f32 %v883_v26, %v431_v11 }
 0x159   : > { %v651_v24 = vpop.eup %650  ;;  %492 = vst.msk [vmem:[%s897_s26 + $0x50] sm:$0xff] %vm226_vm0, %v476_v43  ;;  %v455_v48 = vmul.f32 %v883_v26, %v432_v23 }
 0x15a   : > { %v653_v49 = vpop.eup %652  ;;  %v477_v50 = vadd.f32 %v889_v32, %v454_v46  ;;  %v433_v17 = vmul.f32 %v651_v24, %v858_v21 }
 0x15b   : > { %v478_v51 = vadd.f32 %v889_v32, %v455_v48  ;;  %v434_v35 = vmul.f32 %v653_v49, %v867_v47 }
 0x15c   : > { %493 = vst.msk [vmem:[%s897_s26 + $0x58] sm:$0xff] %vm226_vm0, %v477_v50  ;;  %v456_v52 = vmul.f32 %v883_v26, %v433_v17 }
 0x15d   : > { %v655_v28 = vpop.eup %654  ;;  %494 = vst.msk [vmem:[%s897_s26 + $0x60] sm:$0xff] %vm226_vm0, %v478_v51  ;;  %v457_v29 = vmul.f32 %v883_v26, %v434_v35 }
 0x15e   : > { %v479_v44 = vadd.f32 %v889_v32, %v456_v52  ;;  %v435_v53 = vmul.f32 %v655_v28, %v870_v25 }
 0x15f   : > { %v480_v37 = vadd.f32 %v889_v32, %v457_v29 }
 0x160   : > { %495 = vst.msk [vmem:[%s897_s26 + $0x68] sm:$0xff] %vm226_vm0, %v479_v44  ;;  %v458_v21 = vmul.f32 %v883_v26, %v435_v53 }
 0x161   : > { %496 = vst.msk [vmem:[%s897_s26 + $0x70] sm:$0xff] %vm226_vm0, %v480_v37 }
 0x162   : > { %v481_v47 = vadd.f32 %v889_v32, %v458_v21 }
 0x164   : > { %497 = vst.msk [vmem:[%s897_s26 + $0x78] sm:$0xff] %vm226_vm0, %v481_v47 }
 0x165 PF: > { %s13_s14 = sadd.s32 1, %s678_s14   ;;  %s990_s12 = smov %s674_s13 }
 0x166   : > { %p10_p5 = scmp.ge.s32.totalorder %s13_s14, 4   ;;  %s991_s13 = smov %s993_s15 }
 0x168   :  { %12 = sbr.rel (!%p10_p5) target bundleno = 2 (0x2), region = 62 }

// kernel: siglip_vision_model.10
= control target key start
LH: loop header
LB: loop body
LE: loop exit
PB: predicated region body
PF: predicated region fallthrough
CT: control target
= control target key end

     0   :  { %s3796_s18 = smov 0   ;;  %s3798_s19 = smov 0   ;;  %s5107_s0 = inlined_call_operand.vmem [shape: f32[2,128,32], index: 0, kind: input, shape index: {}]   ;;  %s5108_s1 = inlined_call_operand.vmem [shape: bf16[2,128,32], index: 1, kind: input, shape index: {}]   ;;  %s5109_s2 = inlined_call_operand.vmem [shape: bf16[2,128,64], index: 2, kind: input, shape index: {}]   ;;  %s5110_s3 = inlined_call_operand.vmem [shape: bf16[32,32], index: 3, kind: input, shape index: {}]   ;;  %s5111_s4 = inlined_call_operand.vmem [shape: f32[1,32], index: 4, kind: input, shape index: {}]   ;;  %s5112_s5 = inlined_call_operand.vmem [shape: f32[2,128,32], index: 5, kind: output, shape index: {}]  }
   0x1   :  { %s3800_s20 = smov 0  }
   0x2 LB: > { %s27_s21 = sadd.s32 1, %s3750_s19  ;;  %p2868_p0 = scmp.ge.s32.totalorder %s3754_s20, 1  ;;  %s3754_s20 = sphi %s3800_s20, %s15_s20   ;;  %s3750_s19 = sphi %s3798_s19, %s5116_s19   ;;  %s3746_s18 = sphi %s3796_s18, %s5115_s18  }
   0x3   : > { %p29_p1 = scmp.ge.s32.totalorder %s27_s21, 2  ;;  %p235_p2 = scmp.lt.s32.totalorder %s3754_s20, 3 }
   0x5   : > { %s5118_s21 = smov (%p29_p1, %s27_s21), 0  ;;  %p236_p3 = pnand %p2868_p0, %p235_p2 }
   0x7   : > { %239 = sbr.rel (%p236_p3) target bundleno = 3064 (0xbf8), region = 40 }
   0xc   : > { %p286_p4 = scmp.lt.s32.totalorder %s3746_s18, 1  ;;  %vm436_vm0 = vcmask 64512   ;;  %s3756_s26 = smov 96   ;;  %v353_v30 = vlaneseq  ;;  %vm1419_vm2 = vcmask 130112   ;;  %vm1966_vm3 = vcmask 195712  }
   0xd   : > { %s3757_s30 = smov 120   ;;  %s3758_s6 = smov 88   ;;  %vm2513_vm4 = vcmask 261312   ;;  %vm2577_vm5 = vcmask 261120  }
   0xe   : > { %s5120_s18 = smov (!%p286_p4, %s3746_s18), 1  ;;  %v3935_v31 = vand.u32 127, %v353_v30  ;;  %s3759_s7 = smov 112  }
   0xf   : > { %s2939_s22 = sshll.u32 %s5120_s18, 6  ;;  %s3760_s8 = smov 80  }
  0x10   : > { %s3820_s25 = scalar_lea.vmem %s5109_s2, %s2939_s22  ;;  %s3847_s29 = scalar_lea.vmem %s5108_s1, %s2939_s22  ;;  %vm355_vm1 = vcmp.lt.s32.totalorder %v3935_v31, 16 }
  0x11   : > { %v3823_v0 = vld [vmem:[%s3820_s25 + $0x38] sm:$0xff]   ;;  %v3826_v1 = vld [vmem:[%s3820_s25 + $0x30] sm:$0xff]   ;;  %v3839_v3 = vld [vmem:[%s3820_s25 + $0x28] sm:$0xff]   ;;  %s3761_s9 = smov 104   ;;  %s3762_s10 = smov 72  }
  0x12   : > { %3372 = vmatprep.subr.msk.bf16.mxu0 %vm436_vm0, %v3823_v0  ;;  %v483_v2 = vsel %vm436_vm0, %v3823_v0, 0  ;;  %766 = vrot.lane.b32.xlu0 %v3823_v0, %s3756_s26  ;;  %v3842_v4 = vld [vmem:[%s3820_s25 + $0x10] sm:$0xff]   ;;  %v3852_v5 = vld [vmem:[%s3820_s25 + $0x20] sm:$0xff]   ;;  %v480_v6 = vsel %vm436_vm0, %v3826_v1, 0  ;;  %v3868_v8 = vld [vmem:[%s3820_s25 + $0x18] sm:$0xff]   ;;  %v477_v9 = vsel %vm436_vm0, %v3839_v3, 0 }
  0x13   : > { %3081 = vmatpush3.bf16.xpose.msra.mxu0 %v483_v2  ;;  %764 = vrot.lane.b32.xlu1 %v3826_v1, %s3756_s26  ;;  %v3859_v7 = vld [vmem:[%s3847_s29] sm:$0xff]   ;;  %v474_v10 = vsel %vm436_vm0, %v3852_v5, 0  ;;  %v471_v11 = vsel %vm436_vm0, %v3868_v8, 0  ;;  %v468_v12 = vsel %vm436_vm0, %v3842_v4, 0  ;;  %v3887_v13 = vld [vmem:[%s3820_s25 + $0x8] sm:$0xff]   ;;  %v3904_v18 = vld [vmem:[%s3847_s29 + $0x10] sm:$0xff]  }
  0x14   : > { %3373 = vmatprep.subr.msk.bf16.mxu0 %vm436_vm0, %v3826_v1  ;;  %3096 = vmatprep.mubr.msk.bf16.mxu0 %vm436_vm0, %v3859_v7  ;;  %v465_v14 = vsel %vm436_vm0, %v3887_v13, 0  ;;  %v3894_v15 = vld [vmem:[%s3820_s25] sm:$0xff]   ;;  %v3901_v17 = vld [vmem:[%s3847_s29 + $0x8] sm:$0xff]   ;;  %v3911_v19 = vld [vmem:[%s3847_s29 + $0x18] sm:$0xff]   ;;  %s3763_s11 = smov 8   ;;  %s3764_s12 = smov 16  }
  0x15   : > { %v462_v16 = vsel %vm436_vm0, %v3894_v15, 0  ;;  %v3914_v20 = vld [vmem:[%s3847_s29 + $0x20] sm:$0xff]   ;;  %v3921_v21 = vld [vmem:[%s3847_s29 + $0x28] sm:$0xff]   ;;  %v3924_v22 = vld [vmem:[%s3847_s29 + $0x30] sm:$0xff]   ;;  %s3765_s17 = smov 24   ;;  %s2938_s22 = sshll.u32 %s5120_s18, 7 }
  0x16   : > { %762 = vrot.lane.b32.xlu0 %v3839_v3, %s3756_s26  ;;  %v3931_v23 = vld [vmem:[%s3847_s29 + $0x38] sm:$0xff]  }
  0x17   : > { %756 = vrot.lane.b32.xlu1 %v3842_v4, %s3756_s26 }
  0x1a   : > { %760 = vrot.lane.b32.xlu0 %v3852_v5, %s3756_s26 }
  0x1b   : > { %3083 = vmatpush3.bf16.xpose.msra.mxu0 %v480_v6 }
  0x1c   : > { %3374 = vmatprep.subr.msk.bf16.mxu0 %vm436_vm0, %v3839_v3 }
  0x1e   : > { %758 = vrot.lane.b32.xlu0 %v3868_v8, %s3756_s26 }
  0x23   : > { %3085 = vmatpush3.bf16.xpose.msra.mxu0 %v477_v9 }
  0x24   : > { %3375 = vmatprep.subr.msk.bf16.mxu0 %vm436_vm0, %v3852_v5 }
  0x2b   : > { %3087 = vmatpush3.bf16.xpose.msra.mxu0 %v474_v10 }
  0x2c   : > { %3376 = vmatprep.subr.msk.bf16.mxu0 %vm436_vm0, %v3868_v8 }
  0x33   : > { %3089 = vmatpush3.bf16.xpose.msra.mxu0 %v471_v11 }
  0x34   : > { %3377 = vmatprep.subr.msk.bf16.mxu0 %vm436_vm0, %v3842_v4 }
  0x3b   : > { %3091 = vmatpush3.bf16.xpose.msra.mxu0 %v468_v12 }
  0x3c   : > { %3378 = vmatprep.subr.msk.bf16.mxu0 %vm436_vm0, %v3887_v13 }
  0x43   : > { %3093 = vmatpush3.bf16.xpose.msra.mxu0 %v465_v14 }
  0x44   : > { %3379 = vmatprep.subr.msk.bf16.mxu0 %vm436_vm0, %v3894_v15 }
  0x4b   : > { %3095 = vmatpush3.bf16.xpose.msra.mxu0 %v462_v16 }
  0x52   : > { %3097 = vmatmul.mubr.msk.bf16.vlgmr.msra.gmra.mxu0 %vm436_vm0, %v3901_v17 }
  0x53   : > { %3100 = vmatprep.mubr.msk.bf16.mxu0 %vm436_vm0, %v3904_v18 }
  0x5a   : > { %3101 = vmatmul.mubr.msk.bf16.gmra.mxu0 %vm436_vm0, %v3911_v19 }
  0x5b   : > { %3104 = vmatprep.mubr.msk.bf16.mxu0 %vm436_vm0, %v3914_v20 }
  0x62   : > { %3105 = vmatmul.mubr.msk.bf16.gmra.mxu0 %vm436_vm0, %v3921_v21 }
  0x63   : > { %3108 = vmatprep.mubr.msk.bf16.mxu0 %vm436_vm0, %v3924_v22 }
  0x6a   : > { %3109 = vmatmul.mubr.msk.bf16.gmra.mxu0 %vm436_vm0, %v3931_v23 }
  0x84   : > { %v767_v24 = vpop.permute.xlu0 %766 }
  0x85   : > { %3112 = vmatprep.subr.bf16.mxu1 %v767_v24  ;;  %v765_v25 = vpop.permute.xlu1 %764 }
  0x86   : > { %3113 = vmatpush3.bf16.msra.mxu1 %v767_v24 }
  0x87   : > { %3114 = vmatprep.subr.bf16.mxu1 %v765_v25 }
  0x88   : > { %v763_v26 = vpop.permute.xlu0 %762 }
  0x89   : > { %v757_v29 = vpop.permute.xlu1 %756 }
  0x8a   : > { %3115 = vmatpush3.bf16.msra.mxu1 %v765_v25 }
  0x8b   : > { %3116 = vmatprep.subr.bf16.mxu1 %v763_v26 }
  0x8c   : > { %v761_v27 = vpop.permute.xlu0 %760 }
  0x8e   : > { %3117 = vmatpush3.bf16.msra.mxu1 %v763_v26 }
  0x8f   : > { %3118 = vmatprep.subr.bf16.mxu1 %v761_v27 }
  0x90   : > { %v759_v28 = vpop.permute.xlu0 %758 }
  0x92   : > { %3119 = vmatpush3.bf16.msra.mxu1 %v761_v27 }
  0x93   : > { %3120 = vmatprep.subr.bf16.mxu1 %v759_v28 }
  0x96   : > { %3121 = vmatpush3.bf16.msra.mxu1 %v759_v28 }
  0x97   : > { %3122 = vmatprep.subr.bf16.mxu1 %v757_v29 }
  0x9a   : > { %3123 = vmatpush3.bf16.msra.mxu1 %v757_v29 }
 0x112   : > { %v3098_v32 = vpop.f32.mrf.mxu0 }
 0x113   : > { %v586_v33 = vsel %vm355_vm1, %v3098_v32, -1e+30 }
 0x114   : > { %604 = vmax.xlane.f32.xlu1 %v586_v33  ;;  %v519_v34 = vpop.f32.mrf.mxu0 }
 0x115   : > { %v584_v35 = vsel %vm355_vm1, %v519_v34, -1e+30 }
 0x116   : > { %600 = vmax.xlane.f32.xlu0 %v584_v35  ;;  %v3099_v36 = vpop.f32.mrf.mxu0 }
 0x117   : > { %v587_v37 = vsel %vm355_vm1, %v3099_v36, -1e+30 }
 0x118   : > { %606 = vmax.xlane.f32.xlu1 %v587_v37  ;;  %v522_v38 = vpop.f32.mrf.mxu0 }
 0x119   : > { %v3946_v39 = vsel %vm355_vm1, %v522_v38, -1e+30 }
 0x11a   : > { %602 = vmax.xlane.f32.xlu0 %v3946_v39  ;;  %v3102_v40 = vpop.f32.mrf.mxu0 }
 0x11b   : > { %v3960_v47 = vsel %vm355_vm1, %v3102_v40, -1e+30 }
 0x11c   : > { %v535_v41 = vpop.f32.mrf.mxu0 }
 0x11d   : > { %v3970_v50 = vsel %vm355_vm1, %v535_v41, -1e+30 }
 0x11e   : > { %v3103_v42 = vpop.f32.mrf.mxu0 }
 0x11f   : > { %v3955_v45 = vsel %vm355_vm1, %v3103_v42, -1e+30 }
 0x120   : > { %v538_v43 = vpop.f32.mrf.mxu0 }
 0x121   : > { %v3965_v48 = vsel %vm355_vm1, %v538_v43, -1e+30 }
 0x122   : > { %v3106_v44 = vpop.f32.mrf.mxu0 }
 0x123   : > { %v3980_v53 = vsel %vm355_vm1, %v3106_v44, -1e+30 }
 0x124   : > { %v551_v46 = vpop.f32.mrf.mxu0 }
 0x125   : > { %v3990_v56 = vsel %vm355_vm1, %v551_v46, -1e+30 }
 0x126   : > { %v3107_v49 = vpop.f32.mrf.mxu0 }
 0x127   : > { %v3975_v51 = vsel %vm355_vm1, %v3107_v49, -1e+30 }
 0x128   : > { %v554_v52 = vpop.f32.mrf.mxu0 }
 0x129   : > { %752 = vrot.lane.b32.xlu1 %v3894_v15, %s3756_s26  ;;  %v3985_v54 = vsel %vm355_vm1, %v554_v52, -1e+30 }
 0x12a   : > { %v3110_v55 = vpop.f32.mrf.mxu0 }
 0x12b   : > { %v3995_v57 = vsel %vm355_vm1, %v3110_v55, -1e+30 }
 0x12c   : > { %v567_v58 = vpop.f32.mrf.mxu0 }
 0x12d   : > { %v4000_v59 = vsel %vm355_vm1, %v567_v58, -1e+30 }
 0x12e   : > { %v3111_v60 = vpop.f32.mrf.mxu0 }
 0x12f   : > { %v4015_v61 = vsel %vm355_vm1, %v3111_v60, -1e+30 }
 0x130   : > { %754 = vrot.lane.b32.xlu0 %v3887_v13, %s3756_s26  ;;  %v570_v62 = vpop.f32.mrf.mxu0 }
 0x131   : > { %v4020_v63 = vsel %vm355_vm1, %v570_v62, -1e+30 }
 0x14d   : > { %614 = vmax.xlane.f32.xlu1 %v3955_v45 }
 0x14f   : > { %612 = vmax.xlane.f32.xlu0 %v3960_v47 }
 0x151   : > { %610 = vmax.xlane.f32.xlu1 %v3965_v48 }
 0x153   : > { %608 = vmax.xlane.f32.xlu0 %v3970_v50 }
 0x155   : > { %622 = vmax.xlane.f32.xlu1 %v3975_v51 }
 0x157   : > { %620 = vmax.xlane.f32.xlu0 %v3980_v53 }
 0x159   : > { %618 = vmax.xlane.f32.xlu1 %v3985_v54 }
 0x15b   : > { %616 = vmax.xlane.f32.xlu0 %v3990_v56 }
 0x15f   : > { %628 = vmax.xlane.f32.xlu0 %v3995_v57 }
 0x163   : > { %624 = vmax.xlane.f32.xlu0 %v4000_v59 }
 0x16a   : > { %917 = vrot.lane.b32.xlu1 %v3826_v1, %s3757_s30 }
 0x16e   : > { %913 = vrot.lane.b32.xlu1 %v3852_v5, %s3757_s30 }
 0x179   : > { %919 = vrot.lane.b32.xlu0 %v3823_v0, %s3757_s30 }
 0x17d   : > { %915 = vrot.lane.b32.xlu0 %v3839_v3, %s3757_s30 }
 0x181   : > { %911 = vrot.lane.b32.xlu0 %v3868_v8, %s3757_s30 }
 0x192   : > { %630 = vmax.xlane.f32.xlu1 %v4015_v61 }
 0x196   : > { %626 = vmax.xlane.f32.xlu1 %v4020_v63 }
 0x19d   : > { %v605_v2 = vpop.xlane.xlu1 %604 }
 0x19e   : > { %v634_v6 = vsub.f32 %v586_v33, %v605_v2 }
 0x19f   : > { %v601_v9 = vpop.xlane.xlu0 %600 }
 0x1a0   : > { %v652_v10 = vmul.f32 1.442695, %v634_v6  ;;  %v632_v11 = vsub.f32 %v584_v35, %v601_v9 }
 0x1a1   : > { %v607_v12 = vpop.xlane.xlu1 %606 }
 0x1a2   : > { %3456 = vpow2.f32 %v652_v10  ;;  %v648_v14 = vmul.f32 1.442695, %v632_v11  ;;  %v635_v16 = vsub.f32 %v587_v37, %v607_v12 }
 0x1a3   : > { %v603_v24 = vpop.xlane.xlu0 %602 }
 0x1a4   : > { %3458 = vpow2.f32 %v648_v14  ;;  %v654_v25 = vmul.f32 1.442695, %v635_v16  ;;  %v633_v26 = vsub.f32 %v3946_v39, %v603_v24 }
 0x1a5   : > { %v753_v28 = vpop.permute.xlu1 %752 }
 0x1a6   : > { %3460 = vpow2.f32 %v654_v25  ;;  %v650_v29 = vmul.f32 1.442695, %v633_v26 }
 0x1a7   : > { %v755_v27 = vpop.permute.xlu0 %754 }
 0x1a8   : > { %3124 = vmatprep.subr.bf16.mxu1 %v755_v27  ;;  %3462 = vpow2.f32 %v650_v29 }
 0x1a9   : > { %3125 = vmatpush3.bf16.msra.mxu1 %v755_v27 }
 0x1aa   : > { %3126 = vmatprep.subr.bf16.mxu1 %v753_v28 }
 0x1ad   : > { %3127 = vmatpush3.bf16.msra.mxu1 %v753_v28 }
 0x1af   : > { %v4024_v30 = vpop.eup %3456 }
 0x1b0   : > { %684 = vadd.xlane.f32.xlu1 %v4024_v30 }
 0x1b1   : > { %v4027_v32 = vpop.eup %3458 }
 0x1b3   : > { %v4030_v33 = vpop.eup %3460 }
 0x1b4   : > { %680 = vadd.xlane.f32.xlu1 %v4027_v32 }
 0x1b5   : > { %v4033_v34 = vpop.eup %3462 }
 0x1b8   : > { %686 = vadd.xlane.f32.xlu1 %v4030_v33 }
 0x1bc   : > { %682 = vadd.xlane.f32.xlu1 %v4033_v34 }
 0x1cd   : > { %909 = vrot.lane.b32.xlu1 %v3842_v4, %s3757_s30 }
 0x1d6   : > { %v615_v35 = vpop.xlane.xlu1 %614 }
 0x1d7   : > { %v639_v42 = vsub.f32 %v3955_v45, %v615_v35 }
 0x1d8   : > { %v613_v36 = vpop.xlane.xlu0 %612 }
 0x1d9   : > { %v638_v37 = vsub.f32 %v3960_v47, %v613_v36  ;;  %v662_v52 = vmul.f32 1.442695, %v639_v42 }
 0x1da   : > { %v611_v38 = vpop.xlane.xlu1 %610 }
 0x1db   : > { %v660_v39 = vmul.f32 1.442695, %v638_v37  ;;  %v637_v40 = vsub.f32 %v3965_v48, %v611_v38 }
 0x1dc   : > { %v609_v41 = vpop.xlane.xlu0 %608 }
 0x1dd   : > { %3464 = vpow2.f32 %v660_v39  ;;  %v636_v43 = vsub.f32 %v3970_v50, %v609_v41  ;;  %v658_v44 = vmul.f32 1.442695, %v637_v40 }
 0x1de   : > { %v623_v58 = vpop.xlane.xlu1 %622 }
 0x1df   : > { %v656_v46 = vmul.f32 1.442695, %v636_v43  ;;  %v643_v62 = vsub.f32 %v3975_v51, %v623_v58 }
 0x1e0   : > { %v621_v49 = vpop.xlane.xlu0 %620 }
 0x1e1   : > { %3466 = vpow2.f32 %v656_v46  ;;  %v642_v55 = vsub.f32 %v3980_v53, %v621_v49  ;;  %v670_v10 = vmul.f32 1.442695, %v643_v62 }
 0x1e2   : > { %3468 = vpow2.f32 %v658_v44  ;;  %v619_v2 = vpop.xlane.xlu1 %618 }
 0x1e3   : > { %v668_v47 = vmul.f32 1.442695, %v642_v55  ;;  %3470 = vpow2.f32 %v662_v52  ;;  %v641_v53 = vsub.f32 %v3985_v54, %v619_v2 }
 0x1e4   : > { %v617_v60 = vpop.xlane.xlu0 %616 }
 0x1e5   : > { %v640_v48 = vsub.f32 %v3990_v56, %v617_v60  ;;  %3472 = vpow2.f32 %v668_v47  ;;  %v666_v14 = vmul.f32 1.442695, %v641_v53 }
 0x1e6   : > { %v918_v35 = vpop.permute.xlu1 %917 }
 0x1e7   : > { %v664_v45 = vmul.f32 1.442695, %v640_v48 }
 0x1e8   : > { %v629_v50 = vpop.xlane.xlu0 %628 }
 0x1e9   : > { %v646_v6 = vsub.f32 %v3995_v57, %v629_v50  ;;  %3474 = vpow2.f32 %v664_v45 }
 0x1ea   : > { %v4046_v9 = vpop.eup %3464  ;;  %v914_v36 = vpop.permute.xlu1 %913 }
 0x1eb   : > { %v676_v11 = vmul.f32 1.442695, %v646_v6  ;;  %692 = vadd.xlane.f32.xlu0 %v4046_v9 }
 0x1ec   : > { %v625_v12 = vpop.xlane.xlu0 %624 }
 0x1ed   : > { %3476 = vpow2.f32 %v676_v11  ;;  %v644_v56 = vsub.f32 %v4000_v59, %v625_v12 }
 0x1ee   : > { %v4051_v51 = vpop.eup %3466  ;;  %3478 = vpow2.f32 %v670_v10 }
 0x1ef   : > { %v672_v16 = vmul.f32 1.442695, %v644_v56  ;;  %688 = vadd.xlane.f32.xlu0 %v4051_v51  ;;  %v4054_v57 = vpop.eup %3468 }
 0x1f0   : > { %v920_v24 = vpop.permute.xlu0 %919  ;;  %v4058_v54 = vpop.eup %3470 }
 0x1f1   : > { %3480 = vpow2.f32 %v672_v16  ;;  %690 = vadd.xlane.f32.xlu1 %v4054_v57  ;;  %3380 = vmatprep.subr.msk.bf16.mxu1 %vm436_vm0, %v920_v24 }
 0x1f2   : > { %3482 = vpow2.f32 %v666_v14  ;;  %v4061_v59 = vpop.eup %3472 }
 0x1f3   : > { %694 = vadd.xlane.f32.xlu0 %v4058_v54 }
 0x1f5   : > { %700 = vadd.xlane.f32.xlu1 %v4061_v59 }
 0x1f6   : > { %v4064_v25 = vpop.eup %3474 }
 0x1f9   : > { %696 = vadd.xlane.f32.xlu1 %v4064_v25 }
 0x1fa   : > { %v4067_v26 = vpop.eup %3476 }
 0x1fb   : > { %708 = vadd.xlane.f32.xlu0 %v4067_v26  ;;  %v4070_v27 = vpop.eup %3478 }
 0x1fd   : > { %702 = vadd.xlane.f32.xlu1 %v4070_v27 }
 0x1fe   : > { %v4073_v28 = vpop.eup %3480 }
 0x1ff   : > { %704 = vadd.xlane.f32.xlu0 %v4073_v28  ;;  %v4076_v29 = vpop.eup %3482 }
 0x201   : > { %698 = vadd.xlane.f32.xlu1 %v4076_v29 }
 0x21b   : > { %v631_v37 = vpop.xlane.xlu1 %630 }
 0x21c   : > { %v647_v38 = vsub.f32 %v4015_v61, %v631_v37 }
 0x21e   : > { %v678_v39 = vmul.f32 1.442695, %v647_v38 }
 0x21f   : > { %v627_v40 = vpop.xlane.xlu1 %626 }
 0x220   : > { %3484 = vpow2.f32 %v678_v39  ;;  %v645_v41 = vsub.f32 %v4020_v63, %v627_v40 }
 0x222   : > { %v674_v42 = vmul.f32 1.442695, %v645_v41 }
 0x224   : > { %3486 = vpow2.f32 %v674_v42 }
 0x22d   : > { %v4081_v43 = vpop.eup %3484 }
 0x22e   : > { %710 = vadd.xlane.f32.xlu0 %v4081_v43 }
 0x231   : > { %v4084_v44 = vpop.eup %3486 }
 0x232   : > { %706 = vadd.xlane.f32.xlu1 %v4084_v44 }
 0x239   : > { %v685_v46 = vpop.xlane.xlu1 %684 }
 0x23d   : > { %v681_v49 = vpop.xlane.xlu1 %680 }
 0x241   : > { %v687_v52 = vpop.xlane.xlu1 %686 }
 0x242   : > { %3488 = vrcp.f32 %v687_v52 }
 0x243   : > { %905 = vrot.lane.b32.xlu1 %v3894_v15, %s3757_s30  ;;  %3490 = vrcp.f32 %v681_v49 }
 0x244   : > { %907 = vrot.lane.b32.xlu0 %v3887_v13, %s3757_s30  ;;  %3492 = vrcp.f32 %v685_v46 }
 0x245   : > { %v683_v61 = vpop.xlane.xlu1 %682 }
 0x246   : > { %3494 = vrcp.f32 %v683_v61 }
 0x247   : > { %891 = vrot.lane.b32.xlu1 %v3901_v17, %s3757_s30 }
 0x248   : > { %889 = vrot.lane.b32.xlu0 %v3859_v7, %s3757_s30 }
 0x249   : > { %v910_v48 = vpop.permute.xlu1 %909 }
 0x24a   : > { %v952_v10 = vsel %vm436_vm0, %v910_v48, 0 }
 0x24b   : > { %895 = vrot.lane.b32.xlu1 %v3911_v19, %s3757_s30 }
 0x24c   : > { %893 = vrot.lane.b32.xlu0 %v3904_v18, %s3757_s30 }
 0x24f   : > { %899 = vrot.lane.b32.xlu1 %v3921_v21, %s3757_s30  ;;  %v3489_v63 = vpop.eup %3488 }
 0x250   : > { %897 = vrot.lane.b32.xlu0 %v3914_v20, %s3757_s30  ;;  %v3491_v55 = vpop.eup %3490  ;;  %v731_v17 = vmul.f32 %v3489_v63, %v4030_v33  ;;  %v967_v20 = vsel %vm436_vm0, %v920_v24, 0  ;;  %v916_v33 = vpop.permute.xlu0 %915 }
 0x251   : > { %v3493_v58 = vpop.eup %3492  ;;  %v728_v7 = vmul.f32 %v3491_v55, %v4027_v32  ;;  %v961_v32 = vsel %vm436_vm0, %v916_v33, 0 }
 0x252   : > { %v730_v18 = vmul.f32 %v3493_v58, %v4024_v30  ;;  %v958_v30 = vsel %vm436_vm0, %v914_v36, 0 }
 0x253   : > { %v3495_v47 = vpop.eup %3494  ;;  %903 = vrot.lane.b32.xlu1 %v3931_v23, %s3757_s30  ;;  %v964_v23 = vsel %vm436_vm0, %v918_v35, 0 }
 0x254   : > { %v729_v19 = vmul.f32 %v3495_v47, %v4033_v34  ;;  %901 = vrot.lane.b32.xlu0 %v3924_v22, %s3757_s30  ;;  %v745_v60 = vpack.c.bf16 %v731_v17, %v730_v18  ;;  %v912_v22 = vpop.permute.xlu0 %911 }
 0x255   : > { %v955_v45 = vsel %vm436_vm0, %v912_v22, 0 }
 0x256   : > { %v744_v21 = vpack.c.bf16 %v729_v19, %v728_v7 }
 0x257   : > { %1246 = vrot.lane.b32.xlu1 %v3826_v1, %s3758_s6 }
 0x258   : > { %3128 = vmatprep.mubr.bf16.mxu1 %v744_v21  ;;  %1248 = vrot.lane.b32.xlu0 %v3823_v0, %s3758_s6 }
 0x259   : > { %3129 = vmatmul.mubr.bf16.vlgmr.msra.gmra.mxu1 %v745_v60 }
 0x25a   : > { %3145 = vmatpush3.bf16.xpose.msra.mxu1 %v967_v20 }
 0x25b   : > { %3381 = vmatprep.subr.msk.bf16.mxu1 %vm436_vm0, %v918_v35  ;;  %1238 = vrot.lane.b32.xlu1 %v3842_v4, %s3758_s6 }
 0x25c   : > { %1244 = vrot.lane.b32.xlu0 %v3839_v3, %s3758_s6 }
 0x25f   : > { %1234 = vrot.lane.b32.xlu1 %v3894_v15, %s3758_s6 }
 0x260   : > { %1242 = vrot.lane.b32.xlu0 %v3852_v5, %s3758_s6 }
 0x262   : > { %3147 = vmatpush3.bf16.xpose.msra.mxu1 %v964_v23 }
 0x263   : > { %3382 = vmatprep.subr.msk.bf16.mxu1 %vm436_vm0, %v916_v33 }
 0x264   : > { %1240 = vrot.lane.b32.xlu0 %v3868_v8, %s3758_s6 }
 0x26a   : > { %3149 = vmatpush3.bf16.xpose.msra.mxu1 %v961_v32 }
 0x26b   : > { %3383 = vmatprep.subr.msk.bf16.mxu1 %vm436_vm0, %v914_v36 }
 0x272   : > { %3151 = vmatpush3.bf16.xpose.msra.mxu1 %v958_v30 }
 0x273   : > { %3384 = vmatprep.subr.msk.bf16.mxu1 %vm436_vm0, %v912_v22 }
 0x274   : > { %v693_v34 = vpop.xlane.xlu0 %692 }
 0x278   : > { %v689_v62 = vpop.xlane.xlu0 %688 }
 0x279   : > { %3496 = vrcp.f32 %v689_v62 }
 0x27a   : > { %3498 = vrcp.f32 %v693_v34  ;;  %3153 = vmatpush3.bf16.xpose.msra.mxu1 %v955_v45  ;;  %v691_v2 = vpop.xlane.xlu1 %690 }
 0x27b   : > { %3385 = vmatprep.subr.msk.bf16.mxu1 %vm436_vm0, %v910_v48  ;;  %3500 = vrcp.f32 %v691_v2 }
 0x27c   : > { %v695_v50 = vpop.xlane.xlu0 %694 }
 0x27d   : > { %3502 = vrcp.f32 %v695_v50 }
 0x27e   : > { %v701_v6 = vpop.xlane.xlu1 %700 }
 0x282   : > { %3155 = vmatpush3.bf16.xpose.msra.mxu1 %v952_v10  ;;  %v697_v53 = vpop.xlane.xlu1 %696 }
 0x286   : > { %v3497_v11 = vpop.eup %3496  ;;  %v703_v12 = vpop.xlane.xlu1 %702 }
 0x287   : > { %v3499_v56 = vpop.eup %3498  ;;  %3504 = vrcp.f32 %v703_v12  ;;  %v732_v16 = vmul.f32 %v3497_v11, %v4051_v51 }
 0x288   : > { %v3501_v14 = vpop.eup %3500  ;;  %3506 = vrcp.f32 %v697_v53  ;;  %v734_v38 = vmul.f32 %v3499_v56, %v4046_v9  ;;  %v709_v9 = vpop.xlane.xlu0 %708 }
 0x289   : > { %v733_v24 = vmul.f32 %v3501_v14, %v4054_v57  ;;  %3508 = vrcp.f32 %v701_v6 }
 0x28a   : > { %v3503_v35 = vpop.eup %3502  ;;  %v699_v36 = vpop.xlane.xlu1 %698 }
 0x28b   : > { %3510 = vrcp.f32 %v699_v36  ;;  %v746_v37 = vpack.c.bf16 %v733_v24, %v732_v16  ;;  %v735_v39 = vmul.f32 %v3503_v35, %v4058_v54 }
 0x28c   : > { %v705_v54 = vpop.xlane.xlu0 %704 }
 0x28d   : > { %3132 = vmatprep.mubr.bf16.mxu1 %v746_v37  ;;  %v747_v40 = vpack.c.bf16 %v735_v39, %v734_v38 }
 0x28f   : > { %3133 = vmatmul.mubr.bf16.gmra.mxu1 %v747_v40 }
 0x294   : > { %v3505_v41 = vpop.eup %3504 }
 0x295   : > { %v3507_v42 = vpop.eup %3506  ;;  %v739_v51 = vmul.f32 %v3505_v41, %v4070_v27 }
 0x296   : > { %v3509_v46 = vpop.eup %3508  ;;  %v736_v57 = vmul.f32 %v3507_v42, %v4064_v25 }
 0x297   : > { %v738_v61 = vmul.f32 %v3509_v46, %v4061_v59 }
 0x298   : > { %v3511_v49 = vpop.eup %3510 }
 0x299   : > { %v737_v52 = vmul.f32 %v3511_v49, %v4076_v29  ;;  %v749_v55 = vpack.c.bf16 %v739_v51, %v738_v61 }
 0x29b   : > { %v748_v63 = vpack.c.bf16 %v737_v52, %v736_v57 }
 0x29d   : > { %3136 = vmatprep.mubr.bf16.mxu1 %v748_v63 }
 0x29e   : > { %3137 = vmatmul.mubr.bf16.gmra.mxu1 %v749_v55 }
 0x2b7   : > { %v711_v58 = vpop.xlane.xlu0 %710 }
 0x2b8   : > { %3512 = vrcp.f32 %v711_v58 }
 0x2b9   : > { %3514 = vrcp.f32 %v705_v54 }
 0x2ba   : > { %3516 = vrcp.f32 %v709_v9 }
 0x2bb   : > { %v707_v47 = vpop.xlane.xlu1 %706  ;;  %v908_v17 = vpop.permute.xlu0 %907 }
 0x2bc   : > { %3518 = vrcp.f32 %v707_v47  ;;  %3386 = vmatprep.subr.msk.bf16.mxu1 %vm436_vm0, %v908_v17  ;;  %v949_v25 = vsel %vm436_vm0, %v908_v17, 0 }
 0x2bd   : > { %3157 = vmatpush3.bf16.xpose.msra.mxu1 %v949_v25 }
 0x2bf   : > { %v906_v27 = vpop.permute.xlu1 %905  ;;  %v890_v22 = vpop.permute.xlu0 %889 }
 0x2c0   : > { %3387 = vmatprep.subr.msk.bf16.mxu1 %vm436_vm0, %v906_v27  ;;  %v946_v59 = vsel %vm436_vm0, %v906_v27, 0 }
 0x2c3   : > { %v892_v30 = vpop.permute.xlu1 %891  ;;  %v894_v34 = vpop.permute.xlu0 %893 }
 0x2c5   : > { %3159 = vmatpush3.bf16.xpose.msra.mxu1 %v946_v59  ;;  %v3513_v29 = vpop.eup %3512 }
 0x2c6   : > { %v3515_v7 = vpop.eup %3514  ;;  %v743_v21 = vmul.f32 %v3513_v29, %v4081_v43 }
 0x2c7   : > { %v3517_v19 = vpop.eup %3516  ;;  %v740_v60 = vmul.f32 %v3515_v7, %v4073_v28  ;;  %v896_v43 = vpop.permute.xlu1 %895 }
 0x2c8   : > { %v742_v33 = vmul.f32 %v3517_v19, %v4067_v26  ;;  %v898_v48 = vpop.permute.xlu0 %897 }
 0x2c9   : > { %v3519_v18 = vpop.eup %3518 }
 0x2ca   : > { %v741_v20 = vmul.f32 %v3519_v18, %v4084_v44  ;;  %v751_v32 = vpack.c.bf16 %v743_v21, %v742_v33 }
 0x2cb   : > { %v900_v26 = vpop.permute.xlu1 %899 }
 0x2cc   : > { %v750_v23 = vpack.c.bf16 %v741_v20, %v740_v60  ;;  %v902_v28 = vpop.permute.xlu0 %901 }
 0x2ce   : > { %3140 = vmatprep.mubr.bf16.mxu1 %v750_v23 }
 0x2cf   : > { %3141 = vmatmul.mubr.bf16.gmra.mxu1 %v751_v32  ;;  %v904_v44 = vpop.permute.xlu1 %903 }
 0x2d0   : > { %3160 = vmatprep.mubr.msk.bf16.mxu1 %vm436_vm0, %v890_v22  ;;  %v1249_v10 = vpop.permute.xlu0 %1248 }
 0x2d1   : > { %3176 = vmatprep.subr.bf16.mxu0 %v1249_v10 }
 0x2d2   : > { %3177 = vmatpush3.bf16.msra.mxu0 %v1249_v10 }
 0x2d3   : > { %v1247_v11 = vpop.permute.xlu1 %1246 }
 0x2d4   : > { %3178 = vmatprep.subr.bf16.mxu0 %v1247_v11  ;;  %v1245_v12 = vpop.permute.xlu0 %1244 }
 0x2d6   : > { %3179 = vmatpush3.bf16.msra.mxu0 %v1247_v11 }
 0x2d7   : > { %3161 = vmatmul.mubr.msk.bf16.vlgmr.msra.gmra.mxu1 %vm436_vm0, %v892_v30  ;;  %3180 = vmatprep.subr.bf16.mxu0 %v1245_v12  ;;  %v1239_v36 = vpop.permute.xlu1 %1238  ;;  %v4251_v30 = vld [vmem:[%s3820_s25 + $0x38] sm:$0xff]  }
 0x2d8   : > { %3164 = vmatprep.mubr.msk.bf16.mxu1 %vm436_vm0, %v894_v34  ;;  %v1243_v16 = vpop.permute.xlu0 %1242 }
 0x2da   : > { %3181 = vmatpush3.bf16.msra.mxu0 %v1245_v12  ;;  %v4273_v12 = vld [vmem:[%s3820_s25 + $0x10] sm:$0xff]  }
 0x2db   : > { %3182 = vmatprep.subr.bf16.mxu0 %v1243_v16 }
 0x2dc   : > { %v1241_v35 = vpop.permute.xlu0 %1240 }
 0x2de   : > { %3183 = vmatpush3.bf16.msra.mxu0 %v1243_v16 }
 0x2df   : > { %3165 = vmatmul.mubr.msk.bf16.gmra.mxu1 %vm436_vm0, %v896_v43  ;;  %3184 = vmatprep.subr.bf16.mxu0 %v1241_v35 }
 0x2e0   : > { %3168 = vmatprep.mubr.msk.bf16.mxu1 %vm436_vm0, %v898_v48  ;;  %v1235_v48 = vpop.permute.xlu1 %1234 }
 0x2e2   : > { %3185 = vmatpush3.bf16.msra.mxu0 %v1241_v35 }
 0x2e3   : > { %3186 = vmatprep.subr.bf16.mxu0 %v1239_v36 }
 0x2e6   : > { %3187 = vmatpush3.bf16.msra.mxu0 %v1239_v36 }
 0x2e7   : > { %3169 = vmatmul.mubr.msk.bf16.gmra.mxu1 %vm436_vm0, %v900_v26 }
 0x2e8   : > { %3172 = vmatprep.mubr.msk.bf16.mxu1 %vm436_vm0, %v902_v28 }
 0x2ef   : > { %3173 = vmatmul.mubr.msk.bf16.gmra.mxu1 %vm436_vm0, %v904_v44 }
 0x319   : > { %v3130_v0 = vpop.f32.mrf.mxu1 }
 0x31a   : > { %875 = vst.msk [vmem:[#allocation2 + $0x10] sm:$0xff] %vm436_vm0, %v3130_v0 }
 0x31b   : > { %v810_v62 = vpop.f32.mrf.mxu1 }
 0x31c   : > { %873 = vst.msk [vmem:[#allocation2] sm:$0xff] %vm436_vm0, %v810_v62 }
 0x31d   : > { %v3131_v45 = vpop.f32.mrf.mxu1 }
 0x31e   : > { %876 = vst.msk [vmem:[#allocation2 + $0x18] sm:$0xff] %vm436_vm0, %v3131_v45 }
 0x31f   : > { %v813_v4 = vpop.f32.mrf.mxu1 }
 0x320   : > { %874 = vst.msk [vmem:[#allocation2 + $0x8] sm:$0xff] %vm436_vm0, %v813_v4 }
 0x34f   : > { %v3134_v2 = vpop.f32.mrf.mxu1 }
 0x350   : > { %879 = vst.msk [vmem:[#allocation2 + $0x30] sm:$0xff] %vm436_vm0, %v3134_v2 }
 0x351   : > { %v826_v15 = vpop.f32.mrf.mxu1 }
 0x352   : > { %877 = vst.msk [vmem:[#allocation2 + $0x20] sm:$0xff] %vm436_vm0, %v826_v15 }
 0x353   : > { %v3135_v50 = vpop.f32.mrf.mxu1 }
 0x354   : > { %880 = vst.msk [vmem:[#allocation2 + $0x38] sm:$0xff] %vm436_vm0, %v3135_v50 }
 0x355   : > { %v829_v6 = vpop.f32.mrf.mxu1 }
 0x356   : > { %878 = vst.msk [vmem:[#allocation2 + $0x28] sm:$0xff] %vm436_vm0, %v829_v6 }
 0x35e   : > { %v3138_v53 = vpop.f32.mrf.mxu1 }
 0x35f   : > { %883 = vst.msk [vmem:[#allocation2 + $0x50] sm:$0xff] %vm436_vm0, %v3138_v53 }
 0x360   : > { %v842_v56 = vpop.f32.mrf.mxu1 }
 0x361   : > { %881 = vst.msk [vmem:[#allocation2 + $0x40] sm:$0xff] %vm436_vm0, %v842_v56 }
 0x362   : > { %v3139_v14 = vpop.f32.mrf.mxu1 }
 0x363   : > { %884 = vst.msk [vmem:[#allocation2 + $0x58] sm:$0xff] %vm436_vm0, %v3139_v14 }
 0x364   : > { %v845_v24 = vpop.f32.mrf.mxu1 }
 0x365   : > { %882 = vst.msk [vmem:[#allocation2 + $0x48] sm:$0xff] %vm436_vm0, %v845_v24 }
 0x38f   : > { %v3142_v37 = vpop.f32.mrf.mxu1 }
 0x390   : > { %887 = vst.msk [vmem:[#allocation2 + $0x70] sm:$0xff] %vm436_vm0, %v3142_v37 }
 0x391   : > { %v858_v38 = vpop.f32.mrf.mxu1 }
 0x392   : > { %885 = vst.msk [vmem:[#allocation2 + $0x60] sm:$0xff] %vm436_vm0, %v858_v38 }
 0x393   : > { %v3143_v39 = vpop.f32.mrf.mxu1 }
 0x394   : > { %888 = vst.msk [vmem:[#allocation2 + $0x78] sm:$0xff] %vm436_vm0, %v3143_v39 }
 0x395   : > { %v861_v40 = vpop.f32.mrf.mxu1 }
 0x396   : > { %886 = vst.msk [vmem:[#allocation2 + $0x68] sm:$0xff] %vm436_vm0, %v861_v40 }
 0x397   : > { %v3162_v41 = vpop.f32.mrf.mxu1 }
 0x398   : > { %v1068_v42 = vsel %vm355_vm1, %v3162_v41, -1e+30 }
 0x399   : > { %1086 = vmax.xlane.f32.xlu0 %v1068_v42  ;;  %v1003_v46 = vpop.f32.mrf.mxu1 }
 0x39a   : > { %v1066_v51 = vsel %vm355_vm1, %v1003_v46, -1e+30 }
 0x39b   : > { %v3163_v49 = vpop.f32.mrf.mxu1 }
 0x39c   : > { %v1069_v63 = vsel %vm355_vm1, %v3163_v49, -1e+30 }
 0x39d   : > { %1082 = vmax.xlane.f32.xlu0 %v1066_v51  ;;  %v1006_v57 = vpop.f32.mrf.mxu1 }
 0x39e   : > { %v4182_v52 = vsel %vm355_vm1, %v1006_v57, -1e+30 }
 0x39f   : > { %1084 = vmax.xlane.f32.xlu1 %v4182_v52  ;;  %v3166_v61 = vpop.f32.mrf.mxu1 }
 0x3a0   : > { %v1072_v19 = vsel %vm355_vm1, %v3166_v61, -1e+30 }
 0x3a1   : > { %1088 = vmax.xlane.f32.xlu0 %v1069_v63  ;;  %v1019_v55 = vpop.f32.mrf.mxu1 }
 0x3a2   : > { %v4217_v18 = vsel %vm355_vm1, %v1019_v55, -1e+30 }
 0x3a3   : > { %v3167_v9 = vpop.f32.mrf.mxu1 }
 0x3a4   : > { %v4189_v54 = vsel %vm355_vm1, %v3167_v9, -1e+30 }
 0x3a5   : > { %1096 = vmax.xlane.f32.xlu1 %v4189_v54  ;;  %v1022_v58 = vpop.f32.mrf.mxu1 }
 0x3a6   : > { %v4194_v17 = vsel %vm355_vm1, %v1022_v58, -1e+30 }
 0x3a7   : > { %v3170_v47 = vpop.f32.mrf.mxu1 }
 0x3a9   : > { %1092 = vmax.xlane.f32.xlu1 %v4194_v17  ;;  %v1035_v25 = vpop.f32.mrf.mxu1 }
 0x3ab   : > { %v3171_v27 = vpop.f32.mrf.mxu1 }
 0x3ac   : > { %v4199_v59 = vsel %vm355_vm1, %v3171_v27, -1e+30 }
 0x3ad   : > { %1104 = vmax.xlane.f32.xlu1 %v4199_v59  ;;  %v1038_v29 = vpop.f32.mrf.mxu1 }
 0x3ae   : > { %v4204_v7 = vsel %vm355_vm1, %v1038_v29, -1e+30 }
 0x3b1   : > { %1100 = vmax.xlane.f32.xlu1 %v4204_v7 }
 0x3b7   : > { %1236 = vrot.lane.b32.xlu0 %v3887_v13, %s3758_s6  ;;  %v4222_v13 = vsel %vm355_vm1, %v3170_v47, -1e+30 }
 0x3c2   : > { %1464 = vrot.lane.b32.xlu1 %v3826_v1, %s3759_s7  ;;  %v3174_v1 = vpop.f32.mrf.mxu1 }
 0x3c3   : > { %v4232_v60 = vsel %vm355_vm1, %v3174_v1, -1e+30 }
 0x3c4   : > { %v1051_v21 = vpop.f32.mrf.mxu1 }
 0x3c5   : > { %v4237_v33 = vsel %vm355_vm1, %v1051_v21, -1e+30 }
 0x3c6   : > { %1460 = vrot.lane.b32.xlu1 %v3852_v5, %s3759_s7  ;;  %v4227_v5 = vsel %vm355_vm1, %v1035_v25, -1e+30  ;;  %v3175_v20 = vpop.f32.mrf.mxu1 }
 0x3c7   : > { %v4241_v23 = vsel %vm355_vm1, %v3175_v20, -1e+30 }
 0x3c8   : > { %v1054_v32 = vpop.f32.mrf.mxu1 }
 0x3c9   : > { %v4247_v22 = vsel %vm355_vm1, %v1054_v32, -1e+30 }
 0x3d6   : > { %1094 = vmax.xlane.f32.xlu0 %v1072_v19 }
 0x3da   : > { %1090 = vmax.xlane.f32.xlu0 %v4217_v18 }
 0x3de   : > { %1102 = vmax.xlane.f32.xlu0 %v4222_v13 }
 0x3e2   : > { %1098 = vmax.xlane.f32.xlu0 %v4227_v5 }
 0x3e6   : > { %1110 = vmax.xlane.f32.xlu0 %v4232_v60 }
 0x3ea   : > { %1106 = vmax.xlane.f32.xlu0 %v4237_v33  ;;  %1112 = vmax.xlane.f32.xlu1 %v4241_v23 }
 0x3ee   : > { %1108 = vmax.xlane.f32.xlu1 %v4247_v22 }
 0x400   : > { %1466 = vrot.lane.b32.xlu0 %v4251_v30, %s3759_s7 }
 0x404   : > { %1462 = vrot.lane.b32.xlu0 %v3839_v3, %s3759_s7 }
 0x408   : > { %1458 = vrot.lane.b32.xlu0 %v3868_v8, %s3759_s7 }
 0x422   : > { %v1087_v34 = vpop.xlane.xlu0 %1086 }
 0x423   : > { %v1116_v43 = vsub.f32 %v1068_v42, %v1087_v34 }
 0x425   : > { %v1134_v26 = vmul.f32 1.442695, %v1116_v43 }
 0x426   : > { %v1083_v28 = vpop.xlane.xlu0 %1082 }
 0x427   : > { %3520 = vpow2.f32 %v1134_v26  ;;  %v1114_v44 = vsub.f32 %v1066_v51, %v1083_v28 }
 0x428   : > { %v1085_v0 = vpop.xlane.xlu1 %1084 }
 0x429   : > { %v1130_v62 = vmul.f32 1.442695, %v1114_v44  ;;  %v1115_v4 = vsub.f32 %v4182_v52, %v1085_v0 }
 0x42a   : > { %v1089_v45 = vpop.xlane.xlu0 %1088 }
 0x42b   : > { %3522 = vpow2.f32 %v1130_v62  ;;  %v1117_v2 = vsub.f32 %v1069_v63, %v1089_v45  ;;  %v1132_v3 = vmul.f32 1.442695, %v1115_v4  ;;  %v4333_v45 = vld [vmem:[%s3820_s25] sm:$0xff]   ;;  %v4338_v4 = vld [vmem:[%s3847_s29 + $0x8] sm:$0xff]  }
 0x42d   : > { %v1136_v15 = vmul.f32 1.442695, %v1117_v2  ;;  %v4343_v2 = vld [vmem:[%s3820_s25 + $0x8] sm:$0xff]  }
 0x42e   : > { %v1237_v50 = vpop.permute.xlu0 %1236  ;;  %v1097_v11 = vpop.xlane.xlu1 %1096 }
 0x42f   : > { %3524 = vpow2.f32 %v1136_v15  ;;  %3188 = vmatprep.subr.bf16.mxu0 %v1237_v50  ;;  %v1121_v37 = vsub.f32 %v4189_v54, %v1097_v11  ;;  %v4348_v15 = vld [vmem:[%s3847_s29 + $0x18] sm:$0xff]   ;;  %v4363_v11 = vld [vmem:[%s3847_s29 + $0x10] sm:$0xff]  }
 0x430   : > { %3189 = vmatpush3.bf16.msra.mxu0 %v1237_v50  ;;  %3526 = vpow2.f32 %v1132_v3  ;;  %v4353_v50 = vld [vmem:[%s3847_s29] sm:$0xff]   ;;  %v4358_v3 = vld [vmem:[%s3847_s29 + $0x28] sm:$0xff]  }
 0x431   : > { %3190 = vmatprep.subr.bf16.mxu0 %v1235_v48  ;;  %v1144_v46 = vmul.f32 1.442695, %v1121_v37 }
 0x432   : > { %v1093_v56 = vpop.xlane.xlu1 %1092 }
 0x433   : > { %v1119_v16 = vsub.f32 %v4194_v17, %v1093_v56  ;;  %v4368_v56 = vld [vmem:[%s3847_s29 + $0x38] sm:$0xff]  }
 0x434   : > { %v4260_v8 = vpop.eup %3520  ;;  %3191 = vmatpush3.bf16.msra.mxu0 %v1235_v48 }
 0x435   : > { %1166 = vadd.xlane.f32.xlu1 %v4260_v8  ;;  %v1140_v38 = vmul.f32 1.442695, %v1119_v16  ;;  %v4378_v16 = vld [vmem:[%s3847_s29 + $0x30] sm:$0xff]  }
 0x436   : > { %v1105_v14 = vpop.xlane.xlu1 %1104 }
 0x437   : > { %v1125_v61 = vsub.f32 %v4199_v59, %v1105_v14  ;;  %v4373_v14 = vld [vmem:[%s3847_s29 + $0x20] sm:$0xff]   ;;  %s5034_s29 = scalar_lea.vmem %s5112_s5, %s2938_s22 }
 0x438   : > { %v4263_v6 = vpop.eup %3522 }
 0x439   : > { %1162 = vadd.xlane.f32.xlu1 %v4263_v6  ;;  %v1152_v54 = vmul.f32 1.442695, %v1125_v61 }
 0x43a   : > { %v1101_v39 = vpop.xlane.xlu1 %1100 }
 0x43b   : > { %v1123_v58 = vsub.f32 %v4204_v7, %v1101_v39 }
 0x43c   : > { %v4266_v10 = vpop.eup %3524 }
 0x43d   : > { %1168 = vadd.xlane.f32.xlu1 %v4266_v10  ;;  %v4269_v53 = vpop.eup %3526  ;;  %v1148_v59 = vmul.f32 1.442695, %v1123_v58 }
 0x43e   : > { %v4281_v57 = vpop.permute.xlu1 %1464 }
 0x441   : > { %1164 = vadd.xlane.f32.xlu1 %v4269_v53 }
 0x442   : > { %v4286_v47 = vpop.permute.xlu1 %1460 }
 0x452   : > { %1456 = vrot.lane.b32.xlu1 %v4273_v12, %s3759_s7 }
 0x45f   : > { %v1095_v24 = vpop.xlane.xlu0 %1094 }
 0x460   : > { %v1120_v35 = vsub.f32 %v1072_v19, %v1095_v24 }
 0x462   : > { %v1142_v36 = vmul.f32 1.442695, %v1120_v35 }
 0x463   : > { %v1091_v40 = vpop.xlane.xlu0 %1090 }
 0x464   : > { %3528 = vpow2.f32 %v1142_v36  ;;  %v1118_v41 = vsub.f32 %v4217_v18, %v1091_v40 }
 0x465   : > { %3530 = vpow2.f32 %v1140_v38 }
 0x466   : > { %v1138_v42 = vmul.f32 1.442695, %v1118_v41 }
 0x467   : > { %v1103_v49 = vpop.xlane.xlu0 %1102 }
 0x468   : > { %3532 = vpow2.f32 %v1138_v42  ;;  %v1124_v51 = vsub.f32 %v4222_v13, %v1103_v49 }
 0x469   : > { %3534 = vpow2.f32 %v1144_v46 }
 0x46a   : > { %v1150_v52 = vmul.f32 1.442695, %v1124_v51 }
 0x46b   : > { %v1099_v63 = vpop.xlane.xlu0 %1098 }
 0x46c   : > { %3536 = vpow2.f32 %v1150_v52  ;;  %v1122_v55 = vsub.f32 %v4227_v5, %v1099_v63 }
 0x46e   : > { %v1146_v9 = vmul.f32 1.442695, %v1122_v55 }
 0x46f   : > { %v1111_v17 = vpop.xlane.xlu0 %1110 }
 0x470   : > { %3538 = vpow2.f32 %v1146_v9  ;;  %v1128_v25 = vsub.f32 %v4232_v60, %v1111_v17 }
 0x471   : > { %v4289_v27 = vpop.eup %3528  ;;  %3540 = vpow2.f32 %v1152_v54 }
 0x472   : > { %v1158_v29 = vmul.f32 1.442695, %v1128_v25  ;;  %1174 = vadd.xlane.f32.xlu0 %v4289_v27  ;;  %v4292_v13 = vpop.eup %3530 }
 0x473   : > { %v1107_v19 = vpop.xlane.xlu0 %1106  ;;  %v1113_v18 = vpop.xlane.xlu1 %1112 }
 0x474   : > { %3542 = vpow2.f32 %v1158_v29  ;;  %v1126_v7 = vsub.f32 %v4237_v33, %v1107_v19  ;;  %v1129_v1 = vsub.f32 %v4241_v23, %v1113_v18 }
 0x475   : > { %v4296_v5 = vpop.eup %3532  ;;  %3544 = vpow2.f32 %v1148_v59 }
 0x476   : > { %v1154_v21 = vmul.f32 1.442695, %v1126_v7  ;;  %1170 = vadd.xlane.f32.xlu0 %v4296_v5  ;;  %1172 = vadd.xlane.f32.xlu1 %v4292_v13  ;;  %v1160_v60 = vmul.f32 1.442695, %v1129_v1  ;;  %v4302_v34 = vpop.eup %3534 }
 0x477   : > { %v1109_v20 = vpop.xlane.xlu1 %1108  ;;  %v4300_v32 = vpop.permute.xlu0 %1466 }
 0x478   : > { %3546 = vpow2.f32 %v1154_v21  ;;  %v1127_v43 = vsub.f32 %v4247_v22, %v1109_v20  ;;  %3388 = vmatprep.subr.msk.bf16.mxu0 %vm436_vm0, %v4300_v32  ;;  %v1514_v63 = vsel %vm436_vm0, %v4300_v32, 0 }
 0x479   : > { %v4307_v33 = vpop.eup %3536  ;;  %3548 = vpow2.f32 %v1160_v60 }
 0x47a   : > { %v1156_v23 = vmul.f32 1.442695, %v1127_v43  ;;  %1176 = vadd.xlane.f32.xlu0 %v4302_v34  ;;  %1182 = vadd.xlane.f32.xlu1 %v4307_v33 }
 0x47b   : > { %v1463_v55 = vpop.permute.xlu0 %1462 }
 0x47c   : > { %3550 = vpow2.f32 %v1156_v23 }
 0x47d   : > { %v4311_v48 = vpop.eup %3538 }
 0x47e   : > { %1178 = vadd.xlane.f32.xlu1 %v4311_v48  ;;  %v4314_v26 = vpop.eup %3540 }
 0x481   : > { %v4316_v22 = vpop.eup %3542 }
 0x482   : > { %1190 = vadd.xlane.f32.xlu0 %v4316_v22  ;;  %1184 = vadd.xlane.f32.xlu1 %v4314_v26  ;;  %v4320_v28 = vpop.eup %3544 }
 0x485   : > { %v4322_v44 = vpop.eup %3546 }
 0x486   : > { %1186 = vadd.xlane.f32.xlu0 %v4322_v44  ;;  %1180 = vadd.xlane.f32.xlu1 %v4320_v28  ;;  %v4326_v0 = vpop.eup %3548 }
 0x489   : > { %v4328_v62 = vpop.eup %3550 }
 0x48a   : > { %1192 = vadd.xlane.f32.xlu0 %v4326_v0  ;;  %1188 = vadd.xlane.f32.xlu1 %v4328_v62 }
 0x49b   : > { %1452 = vrot.lane.b32.xlu1 %v4333_v45, %s3759_s7 }
 0x49f   : > { %1438 = vrot.lane.b32.xlu1 %v4338_v4, %s3759_s7 }
 0x4a0   : > { %1454 = vrot.lane.b32.xlu0 %v4343_v2, %s3759_s7 }
 0x4a3   : > { %1442 = vrot.lane.b32.xlu1 %v4348_v15, %s3759_s7 }
 0x4a4   : > { %1436 = vrot.lane.b32.xlu0 %v4353_v50, %s3759_s7 }
 0x4a7   : > { %1446 = vrot.lane.b32.xlu1 %v4358_v3, %s3759_s7 }
 0x4a8   : > { %1440 = vrot.lane.b32.xlu0 %v4363_v11, %s3759_s7 }
 0x4ab   : > { %1450 = vrot.lane.b32.xlu1 %v4368_v56, %s3759_s7 }
 0x4ac   : > { %1444 = vrot.lane.b32.xlu0 %v4373_v14, %s3759_s7 }
 0x4b0   : > { %1448 = vrot.lane.b32.xlu0 %v4378_v16, %s3759_s7 }
 0x4b4   : > { %1795 = vrot.lane.b32.xlu0 %v4251_v30, %s3760_s8 }
 0x4be   : > { %v1167_v24 = vpop.xlane.xlu1 %1166 }
 0x4c2   : > { %v1163_v35 = vpop.xlane.xlu1 %1162 }
 0x4c6   : > { %v1169_v36 = vpop.xlane.xlu1 %1168 }
 0x4c7   : > { %3552 = vrcp.f32 %v1169_v36 }
 0x4c8   : > { %3554 = vrcp.f32 %v1163_v35 }
 0x4c9   : > { %3556 = vrcp.f32 %v1167_v24 }
 0x4ca   : > { %v1165_v37 = vpop.xlane.xlu1 %1164 }
 0x4cb   : > { %3558 = vrcp.f32 %v1165_v37 }
 0x4ce   : > { %v1457_v9 = vpop.permute.xlu1 %1456 }
 0x4d4   : > { %v3553_v38 = vpop.eup %3552 }
 0x4d5   : > { %v3555_v39 = vpop.eup %3554  ;;  %v1213_v42 = vmul.f32 %v3553_v38, %v4266_v10  ;;  %v1511_v10 = vsel %vm436_vm0, %v4281_v57, 0 }
 0x4d6   : > { %v3557_v40 = vpop.eup %3556  ;;  %v1210_v46 = vmul.f32 %v3555_v39, %v4263_v6  ;;  %v1505_v6 = vsel %vm436_vm0, %v4286_v47, 0 }
 0x4d7   : > { %v1212_v51 = vmul.f32 %v3557_v40, %v4260_v8  ;;  %v1508_v8 = vsel %vm436_vm0, %v1463_v55, 0 }
 0x4d8   : > { %v3559_v41 = vpop.eup %3558 }
 0x4d9   : > { %v1211_v49 = vmul.f32 %v3559_v41, %v4269_v53  ;;  %v1227_v61 = vpack.c.bf16 %v1213_v42, %v1212_v51  ;;  %v1459_v53 = vpop.permute.xlu0 %1458 }
 0x4db   : > { %v1226_v52 = vpack.c.bf16 %v1211_v49, %v1210_v46 }
 0x4dd   : > { %3192 = vmatprep.mubr.bf16.mxu0 %v1226_v52 }
 0x4de   : > { %3193 = vmatmul.mubr.bf16.vlgmr.msra.gmra.mxu0 %v1227_v61 }
 0x4df   : > { %3209 = vmatpush3.bf16.xpose.msra.mxu0 %v1514_v63 }
 0x4e0   : > { %3389 = vmatprep.subr.msk.bf16.mxu0 %vm436_vm0, %v4281_v57  ;;  %v1502_v57 = vsel %vm436_vm0, %v1459_v53, 0 }
 0x4e7   : > { %3211 = vmatpush3.bf16.xpose.msra.mxu0 %v1511_v10 }
 0x4e8   : > { %3390 = vmatprep.subr.msk.bf16.mxu0 %vm436_vm0, %v1463_v55 }
 0x4ef   : > { %3213 = vmatpush3.bf16.xpose.msra.mxu0 %v1508_v8 }
 0x4f0   : > { %3391 = vmatprep.subr.msk.bf16.mxu0 %vm436_vm0, %v4286_v47  ;;  %v1499_v47 = vsel %vm436_vm0, %v1457_v9, 0 }
 0x4f7   : > { %3215 = vmatpush3.bf16.xpose.msra.mxu0 %v1505_v6 }
 0x4f8   : > { %3392 = vmatprep.subr.msk.bf16.mxu0 %vm436_vm0, %v1459_v53 }
 0x4fb   : > { %v1175_v54 = vpop.xlane.xlu0 %1174 }
 0x4ff   : > { %3217 = vmatpush3.bf16.xpose.msra.mxu0 %v1502_v57  ;;  %v1171_v58 = vpop.xlane.xlu0 %1170  ;;  %v1173_v17 = vpop.xlane.xlu1 %1172 }
 0x500   : > { %3560 = vrcp.f32 %v1171_v58  ;;  %3393 = vmatprep.subr.msk.bf16.mxu0 %vm436_vm0, %v1457_v9  ;;  %v4434_v58 = vld [vmem:[%s3820_s25 + $0x20] sm:$0xff]  }
 0x501   : > { %3562 = vrcp.f32 %v1173_v17 }
 0x502   : > { %3564 = vrcp.f32 %v1175_v54 }
 0x503   : > { %v1177_v25 = vpop.xlane.xlu0 %1176  ;;  %v1183_v29 = vpop.xlane.xlu1 %1182 }
 0x504   : > { %3566 = vrcp.f32 %v1177_v25 }
 0x507   : > { %3219 = vmatpush3.bf16.xpose.msra.mxu0 %v1499_v47  ;;  %v1179_v59 = vpop.xlane.xlu1 %1178 }
 0x50b   : > { %v1191_v19 = vpop.xlane.xlu0 %1190  ;;  %v1185_v18 = vpop.xlane.xlu1 %1184 }
 0x50c   : > { %3568 = vrcp.f32 %v1185_v18 }
 0x50d   : > { %v3561_v7 = vpop.eup %3560  ;;  %3570 = vrcp.f32 %v1179_v59 }
 0x50e   : > { %v3563_v1 = vpop.eup %3562  ;;  %v1214_v21 = vmul.f32 %v3561_v7, %v4296_v5  ;;  %3572 = vrcp.f32 %v1183_v29 }
 0x50f   : > { %v3565_v60 = vpop.eup %3564  ;;  %v1187_v20 = vpop.xlane.xlu0 %1186  ;;  %v1215_v43 = vmul.f32 %v3563_v1, %v4292_v13 }
 0x510   : > { %v1181_v32 = vpop.xlane.xlu1 %1180  ;;  %v1216_v35 = vmul.f32 %v3565_v60, %v4289_v27 }
 0x511   : > { %v3567_v23 = vpop.eup %3566  ;;  %3574 = vrcp.f32 %v1181_v32  ;;  %v1228_v24 = vpack.c.bf16 %v1215_v43, %v1214_v21 }
 0x512   : > { %v1217_v36 = vmul.f32 %v3567_v23, %v4302_v34  ;;  %3576 = vrcp.f32 %v1187_v20 }
 0x513   : > { %3196 = vmatprep.mubr.bf16.mxu0 %v1228_v24  ;;  %v1193_v37 = vpop.xlane.xlu0 %1192 }
 0x514   : > { %v1189_v38 = vpop.xlane.xlu1 %1188  ;;  %v1229_v39 = vpack.c.bf16 %v1217_v36, %v1216_v35 }
 0x515   : > { %3578 = vrcp.f32 %v1189_v38 }
 0x516   : > { %3580 = vrcp.f32 %v1193_v37  ;;  %3197 = vmatmul.mubr.bf16.gmra.mxu0 %v1229_v39 }
 0x517   : > { %v1455_v5 = vpop.permute.xlu0 %1454  ;;  %3582 = vrcp.f32 %v1191_v19 }
 0x518   : > { %v1453_v40 = vpop.permute.xlu1 %1452  ;;  %3394 = vmatprep.subr.msk.bf16.mxu0 %vm436_vm0, %v1455_v5  ;;  %v1496_v13 = vsel %vm436_vm0, %v1455_v5, 0 }
 0x519   : > { %3221 = vmatpush3.bf16.xpose.msra.mxu0 %v1496_v13  ;;  %v3569_v27 = vpop.eup %3568  ;;  %v1493_v49 = vsel %vm436_vm0, %v1453_v40, 0 }
 0x51a   : > { %3395 = vmatprep.subr.msk.bf16.mxu0 %vm436_vm0, %v1453_v40  ;;  %v3571_v34 = vpop.eup %3570  ;;  %v1221_v46 = vmul.f32 %v3569_v27, %v4314_v26 }
 0x51b   : > { %v3573_v41 = vpop.eup %3572  ;;  %v1218_v51 = vmul.f32 %v3571_v34, %v4311_v48  ;;  %v1437_v57 = vpop.permute.xlu0 %1436 }
 0x51c   : > { %v1220_v63 = vmul.f32 %v3573_v41, %v4307_v33  ;;  %v4419_v33 = vld [vmem:[%s3820_s25 + $0x30] sm:$0xff]  }
 0x51d   : > { %1793 = vrot.lane.b32.xlu1 %v4419_v33, %s3760_s8 }
 0x51e   : > { %v3575_v42 = vpop.eup %3574  ;;  %v1231_v8 = vpack.c.bf16 %v1221_v46, %v1220_v63 }
 0x51f   : > { %v1219_v52 = vmul.f32 %v3575_v42, %v4320_v28  ;;  %v3577_v61 = vpop.eup %3576  ;;  %v1441_v17 = vpop.permute.xlu0 %1440 }
 0x520   : > { %v1222_v53 = vmul.f32 %v3577_v61, %v4322_v44 }
 0x521   : > { %v1230_v10 = vpack.c.bf16 %v1219_v52, %v1218_v51  ;;  %3223 = vmatpush3.bf16.xpose.msra.mxu0 %v1493_v49  ;;  %1785 = vrot.lane.b32.xlu1 %v4273_v12, %s3760_s8 }
 0x522   : > { %v3579_v55 = vpop.eup %3578 }
 0x523   : > { %v3581_v6 = vpop.eup %3580  ;;  %3200 = vmatprep.mubr.bf16.mxu0 %v1230_v10  ;;  %v1223_v26 = vmul.f32 %v3579_v55, %v4328_v62  ;;  %v4426_v62 = vld [vmem:[%s3820_s25 + $0x28] sm:$0xff]   ;;  %v1445_v29 = vpop.permute.xlu0 %1444 }
 0x524   : > { %3201 = vmatmul.mubr.bf16.gmra.mxu0 %v1231_v8  ;;  %v3583_v9 = vpop.eup %3582  ;;  %v1225_v28 = vmul.f32 %v3581_v6, %v4326_v0  ;;  %1791 = vrot.lane.b32.xlu0 %v4426_v62, %s3760_s8  ;;  %v4441_v0 = vld [vmem:[%s3820_s25 + $0x18] sm:$0xff]  }
 0x525   : > { %v1232_v48 = vpack.c.bf16 %v1223_v26, %v1222_v53  ;;  %v1224_v44 = vmul.f32 %v3583_v9, %v4316_v22  ;;  %1781 = vrot.lane.b32.xlu1 %v4333_v45, %s3760_s8  ;;  %v1439_v22 = vpop.permute.xlu1 %1438 }
 0x527   : > { %3204 = vmatprep.mubr.bf16.mxu0 %v1232_v48  ;;  %v1233_v54 = vpack.c.bf16 %v1225_v28, %v1224_v44  ;;  %v1449_v59 = vpop.permute.xlu0 %1448 }
 0x528   : > { %1789 = vrot.lane.b32.xlu0 %v4434_v58, %s3760_s8 }
 0x529   : > { %v1443_v25 = vpop.permute.xlu1 %1442 }
 0x52b   : > { %v1796_v18 = vpop.permute.xlu0 %1795 }
 0x52c   : > { %3205 = vmatmul.mubr.bf16.gmra.mxu0 %v1233_v54  ;;  %1787 = vrot.lane.b32.xlu0 %v4441_v0, %s3760_s8 }
 0x52d   : > { %3224 = vmatprep.mubr.msk.bf16.mxu0 %vm436_vm0, %v1437_v57  ;;  %v1447_v47 = vpop.permute.xlu1 %1446  ;;  %3240 = vmatprep.subr.bf16.mxu1 %v1796_v18 }
 0x52e   : > { %3241 = vmatpush3.bf16.msra.mxu1 %v1796_v18 }
 0x531   : > { %v1451_v19 = vpop.permute.xlu1 %1450 }
 0x534   : > { %3225 = vmatmul.mubr.msk.bf16.vlgmr.msra.gmra.mxu0 %vm436_vm0, %v1439_v22 }
 0x535   : > { %3228 = vmatprep.mubr.msk.bf16.mxu0 %vm436_vm0, %v1441_v17 }
 0x53c   : > { %3229 = vmatmul.mubr.msk.bf16.gmra.mxu0 %vm436_vm0, %v1443_v25 }
 0x53d   : > { %3232 = vmatprep.mubr.msk.bf16.mxu0 %vm436_vm0, %v1445_v29 }
 0x544   : > { %3233 = vmatmul.mubr.msk.bf16.gmra.mxu0 %vm436_vm0, %v1447_v47 }
 0x545   : > { %3236 = vmatprep.mubr.msk.bf16.mxu0 %vm436_vm0, %v1449_v59 }
 0x54c   : > { %3237 = vmatmul.mubr.msk.bf16.gmra.mxu0 %vm436_vm0, %v1451_v19 }
 0x58f   : > { %v1794_v7 = vpop.permute.xlu1 %1793 }
 0x590   : > { %3242 = vmatprep.subr.bf16.mxu1 %v1794_v7 }
 0x591   : > { %3243 = vmatpush3.bf16.msra.mxu1 %v1794_v7 }
 0x593   : > { %v1786_v32 = vpop.permute.xlu1 %1785 }
 0x596   : > { %v1792_v1 = vpop.permute.xlu0 %1791 }
 0x597   : > { %3244 = vmatprep.subr.bf16.mxu1 %v1792_v1 }
 0x598   : > { %3245 = vmatpush3.bf16.msra.mxu1 %v1792_v1 }
 0x59a   : > { %v1790_v21 = vpop.permute.xlu0 %1789 }
 0x59b   : > { %3246 = vmatprep.subr.bf16.mxu1 %v1790_v21 }
 0x59c   : > { %3247 = vmatpush3.bf16.msra.mxu1 %v1790_v21 }
 0x59e   : > { %v1788_v60 = vpop.permute.xlu0 %1787  ;;  %v4452_v20 = vpop.f32.mrf.mxu0 }
 0x59f   : > { %3248 = vmatprep.subr.bf16.mxu1 %v1788_v60 }
 0x5a0   : > { %3249 = vmatpush3.bf16.msra.mxu1 %v1788_v60  ;;  %v4454_v43 = vpop.f32.mrf.mxu0 }
 0x5a1   : > { %3250 = vmatprep.subr.bf16.mxu1 %v1786_v32 }
 0x5a2   : > { %v4456_v23 = vpop.f32.mrf.mxu0 }
 0x5a4   : > { %3251 = vmatpush3.bf16.msra.mxu1 %v1786_v32  ;;  %v4458_v24 = vpop.f32.mrf.mxu0 }
 0x5d6   : > { %v4460_v35 = vpop.f32.mrf.mxu0 }
 0x5d8   : > { %v4462_v36 = vpop.f32.mrf.mxu0 }
 0x5da   : > { %v4464_v37 = vpop.f32.mrf.mxu0 }
 0x5dc   : > { %v4466_v38 = vpop.f32.mrf.mxu0 }
 0x5e4   : > { %v4468_v39 = vpop.f32.mrf.mxu0 }
 0x5e6   : > { %v4470_v5 = vpop.f32.mrf.mxu0 }
 0x5e8   : > { %v4472_v40 = vpop.f32.mrf.mxu0 }
 0x5ea   : > { %v4474_v13 = vpop.f32.mrf.mxu0 }
 0x5ec   : > { %v4476_v27 = vpop.f32.mrf.mxu0 }
 0x5ee   : > { %v4478_v34 = vpop.f32.mrf.mxu0 }
 0x5f0   : > { %v4480_v41 = vpop.f32.mrf.mxu0 }
 0x5f2   : > { %v4482_v42 = vpop.f32.mrf.mxu0 }
 0x5f4   : > { %v3226_v46 = vpop.f32.mrf.mxu0 }
 0x5f5   : > { %v1615_v49 = vsel %vm355_vm1, %v3226_v46, -1e+30 }
 0x5f6   : > { %1633 = vmax.xlane.f32.xlu0 %v1615_v49  ;;  %v1550_v51 = vpop.f32.mrf.mxu0 }
 0x5f7   : > { %v1613_v61 = vsel %vm355_vm1, %v1550_v51, -1e+30 }
 0x5f8   : > { %v3227_v52 = vpop.f32.mrf.mxu0 }
 0x5f9   : > { %v1616_v8 = vsel %vm355_vm1, %v3227_v52, -1e+30 }
 0x5fa   : > { %1629 = vmax.xlane.f32.xlu0 %v1613_v61  ;;  %v1553_v63 = vpop.f32.mrf.mxu0 }
 0x5fb   : > { %v1614_v10 = vsel %vm355_vm1, %v1553_v63, -1e+30  ;;  %v1782_v63 = vpop.permute.xlu1 %1781 }
 0x5fc   : > { %1631 = vmax.xlane.f32.xlu1 %v1614_v10  ;;  %v3230_v55 = vpop.f32.mrf.mxu0 }
 0x5fd   : > { %v1619_v25 = vsel %vm355_vm1, %v3230_v55, -1e+30 }
 0x5fe   : > { %1635 = vmax.xlane.f32.xlu0 %v1616_v8  ;;  %v1566_v6 = vpop.f32.mrf.mxu0 }
 0x5ff   : > { %v4522_v29 = vsel %vm355_vm1, %v1566_v6, -1e+30 }
 0x600   : > { %v3231_v53 = vpop.f32.mrf.mxu0 }
 0x601   : > { %v4494_v26 = vsel %vm355_vm1, %v3231_v53, -1e+30 }
 0x602   : > { %1643 = vmax.xlane.f32.xlu1 %v4494_v26  ;;  %v1569_v9 = vpop.f32.mrf.mxu0 }
 0x603   : > { %v4499_v28 = vsel %vm355_vm1, %v1569_v9, -1e+30 }
 0x604   : > { %v3234_v48 = vpop.f32.mrf.mxu0 }
 0x605   : > { %v4527_v47 = vsel %vm355_vm1, %v3234_v48, -1e+30 }
 0x606   : > { %1639 = vmax.xlane.f32.xlu1 %v4499_v28  ;;  %v1582_v44 = vpop.f32.mrf.mxu0 }
 0x607   : > { %v4532_v19 = vsel %vm355_vm1, %v1582_v44, -1e+30 }
 0x608   : > { %v3235_v54 = vpop.f32.mrf.mxu0 }
 0x609   : > { %v4504_v57 = vsel %vm355_vm1, %v3235_v54, -1e+30 }
 0x60a   : > { %1651 = vmax.xlane.f32.xlu1 %v4504_v57  ;;  %v1585_v22 = vpop.f32.mrf.mxu0 }
 0x60b   : > { %v4509_v17 = vsel %vm355_vm1, %v1585_v22, -1e+30 }
 0x60c   : > { %v3238_v59 = vpop.f32.mrf.mxu0 }
 0x60d   : > { %v4537_v7 = vsel %vm355_vm1, %v3238_v59, -1e+30 }
 0x60e   : > { %1647 = vmax.xlane.f32.xlu1 %v4509_v17  ;;  %v1598_v18 = vpop.f32.mrf.mxu0 }
 0x60f   : > { %v4542_v21 = vsel %vm355_vm1, %v1598_v18, -1e+30 }
 0x610   : > { %v3239_v1 = vpop.f32.mrf.mxu0 }
 0x611   : > { %v4546_v60 = vsel %vm355_vm1, %v3239_v1, -1e+30 }
 0x612   : > { %v1601_v32 = vpop.f32.mrf.mxu0 }
 0x613   : > { %v4552_v46 = vsel %vm355_vm1, %v1601_v32, -1e+30 }
 0x614   : > { %1783 = vrot.lane.b32.xlu0 %v4343_v2, %s3760_s8 }
 0x61f   : > { %2011 = vrot.lane.b32.xlu1 %v4419_v33, %s3761_s9 }
 0x623   : > { %2007 = vrot.lane.b32.xlu1 %v4434_v58, %s3761_s9 }
 0x633   : > { %1641 = vmax.xlane.f32.xlu0 %v1619_v25 }
 0x637   : > { %1637 = vmax.xlane.f32.xlu0 %v4522_v29 }
 0x63b   : > { %1649 = vmax.xlane.f32.xlu0 %v4527_v47 }
 0x63f   : > { %1645 = vmax.xlane.f32.xlu0 %v4532_v19 }
 0x643   : > { %1657 = vmax.xlane.f32.xlu0 %v4537_v7 }
 0x647   : > { %1653 = vmax.xlane.f32.xlu0 %v4542_v21  ;;  %1659 = vmax.xlane.f32.xlu1 %v4546_v60 }
 0x64b   : > { %1655 = vmax.xlane.f32.xlu1 %v4552_v46 }
 0x65d   : > { %2013 = vrot.lane.b32.xlu0 %v4251_v30, %s3761_s9 }
 0x661   : > { %2009 = vrot.lane.b32.xlu0 %v4426_v62, %s3761_s9 }
 0x665   : > { %2005 = vrot.lane.b32.xlu0 %v4441_v0, %s3761_s9 }
 0x67f   : > { %v1634_v51 = vpop.xlane.xlu0 %1633 }
 0x680   : > { %v1663_v52 = vsub.f32 %v1615_v49, %v1634_v51 }
 0x682   : > { %v1681_v55 = vmul.f32 1.442695, %v1663_v52 }
 0x683   : > { %v1630_v6 = vpop.xlane.xlu0 %1629 }
 0x684   : > { %3584 = vpow2.f32 %v1681_v55  ;;  %v1661_v53 = vsub.f32 %v1613_v61, %v1630_v6 }
 0x685   : > { %v1632_v9 = vpop.xlane.xlu1 %1631 }
 0x686   : > { %v1677_v48 = vmul.f32 1.442695, %v1661_v53  ;;  %v1662_v54 = vsub.f32 %v1614_v10, %v1632_v9 }
 0x687   : > { %v1636_v44 = vpop.xlane.xlu0 %1635 }
 0x688   : > { %3586 = vpow2.f32 %v1677_v48  ;;  %v1664_v22 = vsub.f32 %v1616_v8, %v1636_v44  ;;  %v1679_v18 = vmul.f32 1.442695, %v1662_v54 }
 0x68a   : > { %v1683_v30 = vmul.f32 1.442695, %v1664_v22 }
 0x68b   : > { %v1784_v59 = vpop.permute.xlu0 %1783  ;;  %v1644_v8 = vpop.xlane.xlu1 %1643 }
 0x68c   : > { %3588 = vpow2.f32 %v1683_v30  ;;  %3252 = vmatprep.subr.bf16.mxu1 %v1784_v59  ;;  %v1668_v53 = vsub.f32 %v4494_v26, %v1644_v8 }
 0x68d   : > { %3253 = vmatpush3.bf16.msra.mxu1 %v1784_v59  ;;  %3590 = vpow2.f32 %v1679_v18 }
 0x68e   : > { %3254 = vmatprep.subr.bf16.mxu1 %v1782_v63  ;;  %v1691_v30 = vmul.f32 1.442695, %v1668_v53 }
 0x68f   : > { %v1640_v32 = vpop.xlane.xlu1 %1639 }
 0x690   : > { %v1666_v52 = vsub.f32 %v4499_v28, %v1640_v32 }
 0x691   : > { %v4561_v49 = vpop.eup %3584  ;;  %3255 = vmatpush3.bf16.msra.mxu1 %v1782_v63 }
 0x692   : > { %1713 = vadd.xlane.f32.xlu1 %v4561_v49  ;;  %v1687_v9 = vmul.f32 1.442695, %v1666_v52 }
 0x693   : > { %v1652_v51 = vpop.xlane.xlu1 %1651 }
 0x695   : > { %v4564_v61 = vpop.eup %3586 }
 0x696   : > { %1709 = vadd.xlane.f32.xlu1 %v4564_v61 }
 0x697   : > { %v1648_v48 = vpop.xlane.xlu1 %1647 }
 0x699   : > { %v4567_v1 = vpop.eup %3588 }
 0x69a   : > { %1715 = vadd.xlane.f32.xlu1 %v4567_v1  ;;  %v4570_v10 = vpop.eup %3590 }
 0x69b   : > { %v4579_v18 = vpop.permute.xlu1 %2011 }
 0x69e   : > { %1711 = vadd.xlane.f32.xlu1 %v4570_v10 }
 0x6af   : > { %2003 = vrot.lane.b32.xlu1 %v4273_v12, %s3761_s9 }
 0x6bc   : > { %v1642_v63 = vpop.xlane.xlu0 %1641 }
 0x6bd   : > { %v1667_v55 = vsub.f32 %v1619_v25, %v1642_v63  ;;  %v1672_v25 = vsub.f32 %v4504_v57, %v1652_v51  ;;  %v4584_v63 = vpop.permute.xlu1 %2007 }
 0x6bf   : > { %v1689_v6 = vmul.f32 1.442695, %v1667_v55  ;;  %v1699_v52 = vmul.f32 1.442695, %v1672_v25 }
 0x6c0   : > { %v1638_v44 = vpop.xlane.xlu0 %1637 }
 0x6c1   : > { %3592 = vpow2.f32 %v1689_v6  ;;  %v1665_v54 = vsub.f32 %v4522_v29, %v1638_v44  ;;  %v1670_v29 = vsub.f32 %v4509_v17, %v1648_v48 }
 0x6c2   : > { %3594 = vpow2.f32 %v1687_v9 }
 0x6c3   : > { %v1685_v22 = vmul.f32 1.442695, %v1665_v54  ;;  %v1695_v57 = vmul.f32 1.442695, %v1670_v29 }
 0x6c4   : > { %v1650_v59 = vpop.xlane.xlu0 %1649 }
 0x6c5   : > { %3596 = vpow2.f32 %v1685_v22  ;;  %v1671_v12 = vsub.f32 %v4527_v47, %v1650_v59 }
 0x6c6   : > { %3598 = vpow2.f32 %v1691_v30 }
 0x6c7   : > { %v1697_v28 = vmul.f32 1.442695, %v1671_v12 }
 0x6c8   : > { %v1646_v26 = vpop.xlane.xlu0 %1645 }
 0x6c9   : > { %3600 = vpow2.f32 %v1697_v28  ;;  %v1669_v8 = vsub.f32 %v4532_v19, %v1646_v26 }
 0x6cb   : > { %v1693_v32 = vmul.f32 1.442695, %v1669_v8 }
 0x6cc   : > { %v1658_v55 = vpop.xlane.xlu0 %1657 }
 0x6cd   : > { %3602 = vpow2.f32 %v1693_v32  ;;  %v1675_v47 = vsub.f32 %v4537_v7, %v1658_v55 }
 0x6ce   : > { %v4587_v6 = vpop.eup %3592  ;;  %3604 = vpow2.f32 %v1699_v52 }
 0x6cf   : > { %v1705_v53 = vmul.f32 1.442695, %v1675_v47  ;;  %1721 = vadd.xlane.f32.xlu0 %v4587_v6  ;;  %v4590_v19 = vpop.eup %3594 }
 0x6d0   : > { %v1654_v51 = vpop.xlane.xlu0 %1653  ;;  %v1660_v9 = vpop.xlane.xlu1 %1659 }
 0x6d1   : > { %3606 = vpow2.f32 %v1705_v53  ;;  %v1673_v17 = vsub.f32 %v4542_v21, %v1654_v51  ;;  %v1676_v48 = vsub.f32 %v4546_v60, %v1660_v9  ;;  %v2058_v51 = vsel %vm436_vm0, %v4579_v18, 0 }
 0x6d2   : > { %v4594_v44 = vpop.eup %3596  ;;  %3608 = vpow2.f32 %v1695_v57 }
 0x6d3   : > { %v1701_v54 = vmul.f32 1.442695, %v1673_v17  ;;  %1717 = vadd.xlane.f32.xlu0 %v4594_v44  ;;  %1719 = vadd.xlane.f32.xlu1 %v4590_v19  ;;  %v1707_v7 = vmul.f32 1.442695, %v1676_v48  ;;  %v4598_v59 = vpop.eup %3598 }
 0x6d4   : > { %v1656_v22 = vpop.xlane.xlu1 %1655  ;;  %v2014_v30 = vpop.permute.xlu0 %2013 }
 0x6d5   : > { %3610 = vpow2.f32 %v1701_v54  ;;  %v1674_v12 = vsub.f32 %v4552_v46, %v1656_v22  ;;  %3396 = vmatprep.subr.msk.bf16.mxu1 %vm436_vm0, %v2014_v30  ;;  %v2061_v57 = vsel %vm436_vm0, %v2014_v30, 0 }
 0x6d6   : > { %v4602_v21 = vpop.eup %3600  ;;  %3612 = vpow2.f32 %v1707_v7 }
 0x6d7   : > { %v1703_v60 = vmul.f32 1.442695, %v1674_v12  ;;  %1723 = vadd.xlane.f32.xlu0 %v4598_v59  ;;  %1729 = vadd.xlane.f32.xlu1 %v4602_v21 }
 0x6d9   : > { %3614 = vpow2.f32 %v1703_v60 }
 0x6da   : > { %v4606_v28 = vpop.eup %3602 }
 0x6db   : > { %1725 = vadd.xlane.f32.xlu1 %v4606_v28  ;;  %v4609_v25 = vpop.eup %3604 }
 0x6de   : > { %v4611_v26 = vpop.eup %3606 }
 0x6df   : > { %1737 = vadd.xlane.f32.xlu0 %v4611_v26  ;;  %1731 = vadd.xlane.f32.xlu1 %v4609_v25  ;;  %v4615_v46 = vpop.eup %3608 }
 0x6e2   : > { %v4617_v8 = vpop.eup %3610 }
 0x6e3   : > { %1733 = vadd.xlane.f32.xlu0 %v4617_v8  ;;  %1727 = vadd.xlane.f32.xlu1 %v4615_v46  ;;  %v4621_v32 = vpop.eup %3612 }
 0x6e6   : > { %v4623_v52 = vpop.eup %3614 }
 0x6e7   : > { %1739 = vadd.xlane.f32.xlu0 %v4621_v32  ;;  %1735 = vadd.xlane.f32.xlu1 %v4623_v52 }
 0x6f8   : > { %1999 = vrot.lane.b32.xlu1 %v4333_v45, %s3761_s9 }
 0x6fc   : > { %1985 = vrot.lane.b32.xlu1 %v4338_v4, %s3761_s9 }
 0x6fd   : > { %2001 = vrot.lane.b32.xlu0 %v4343_v2, %s3761_s9 }
 0x700   : > { %1989 = vrot.lane.b32.xlu1 %v4348_v15, %s3761_s9 }
 0x701   : > { %1983 = vrot.lane.b32.xlu0 %v4353_v50, %s3761_s9 }
 0x704   : > { %1993 = vrot.lane.b32.xlu1 %v4358_v3, %s3761_s9 }
 0x705   : > { %1987 = vrot.lane.b32.xlu0 %v4363_v11, %s3761_s9 }
 0x708   : > { %1997 = vrot.lane.b32.xlu1 %v4368_v56, %s3761_s9 }
 0x709   : > { %1991 = vrot.lane.b32.xlu0 %v4373_v14, %s3761_s9 }
 0x70c   : > { %2340 = vrot.lane.b32.xlu1 %v4419_v33, %s3762_s10 }
 0x70d   : > { %1995 = vrot.lane.b32.xlu0 %v4378_v16, %s3761_s9 }
 0x71b   : > { %v1714_v45 = vpop.xlane.xlu1 %1713 }
 0x71f   : > { %v1710_v4 = vpop.xlane.xlu1 %1709 }
 0x723   : > { %v1716_v2 = vpop.xlane.xlu1 %1715 }
 0x724   : > { %3616 = vrcp.f32 %v1716_v2 }
 0x725   : > { %3618 = vrcp.f32 %v1710_v4 }
 0x726   : > { %3620 = vrcp.f32 %v1714_v45 }
 0x727   : > { %v1712_v15 = vpop.xlane.xlu1 %1711 }
 0x728   : > { %3622 = vrcp.f32 %v1712_v15 }
 0x72b   : > { %v2004_v9 = vpop.permute.xlu1 %2003 }
 0x731   : > { %v3617_v50 = vpop.eup %3616 }
 0x732   : > { %v3619_v3 = vpop.eup %3618  ;;  %v1760_v56 = vmul.f32 %v3617_v50, %v4567_v1  ;;  %v2010_v1 = vpop.permute.xlu0 %2009 }
 0x733   : > { %v3621_v11 = vpop.eup %3620  ;;  %v1757_v55 = vmul.f32 %v3619_v3, %v4564_v61  ;;  %v2055_v61 = vsel %vm436_vm0, %v2010_v1, 0 }
 0x734   : > { %v1759_v16 = vmul.f32 %v3621_v11, %v4561_v49  ;;  %v2052_v49 = vsel %vm436_vm0, %v4584_v63, 0 }
 0x735   : > { %v3623_v29 = vpop.eup %3622 }
 0x736   : > { %v1758_v14 = vmul.f32 %v3623_v29, %v4570_v10  ;;  %v1774_v53 = vpack.c.bf16 %v1760_v56, %v1759_v16  ;;  %v2006_v10 = vpop.permute.xlu0 %2005 }
 0x738   : > { %v1773_v47 = vpack.c.bf16 %v1758_v14, %v1757_v55 }
 0x73a   : > { %3256 = vmatprep.mubr.bf16.mxu1 %v1773_v47 }
 0x73b   : > { %3257 = vmatmul.mubr.bf16.vlgmr.msra.gmra.mxu1 %v1774_v53 }
 0x73c   : > { %3273 = vmatpush3.bf16.xpose.msra.mxu1 %v2061_v57 }
 0x73d   : > { %3397 = vmatprep.subr.msk.bf16.mxu1 %vm436_vm0, %v4579_v18  ;;  %v2049_v18 = vsel %vm436_vm0, %v2006_v10, 0 }
 0x744   : > { %3275 = vmatpush3.bf16.xpose.msra.mxu1 %v2058_v51 }
 0x745   : > { %3398 = vmatprep.subr.msk.bf16.mxu1 %vm436_vm0, %v2010_v1 }
 0x74c   : > { %3277 = vmatpush3.bf16.xpose.msra.mxu1 %v2055_v61 }
 0x74d   : > { %3399 = vmatprep.subr.msk.bf16.mxu1 %vm436_vm0, %v4584_v63  ;;  %v2046_v63 = vsel %vm436_vm0, %v2004_v9, 0 }
 0x754   : > { %3279 = vmatpush3.bf16.xpose.msra.mxu1 %v2052_v49 }
 0x755   : > { %3400 = vmatprep.subr.msk.bf16.mxu1 %vm436_vm0, %v2006_v10 }
 0x758   : > { %v1722_v17 = vpop.xlane.xlu0 %1721 }
 0x75c   : > { %3281 = vmatpush3.bf16.xpose.msra.mxu1 %v2049_v18  ;;  %v1718_v48 = vpop.xlane.xlu0 %1717  ;;  %v1720_v54 = vpop.xlane.xlu1 %1719 }
 0x75d   : > { %3624 = vrcp.f32 %v1718_v48  ;;  %3401 = vmatprep.subr.msk.bf16.mxu1 %vm436_vm0, %v2004_v9 }
 0x75e   : > { %3626 = vrcp.f32 %v1720_v54 }
 0x75f   : > { %3628 = vrcp.f32 %v1722_v17 }
 0x760   : > { %v1724_v7 = vpop.xlane.xlu0 %1723  ;;  %v1730_v22 = vpop.xlane.xlu1 %1729 }
 0x761   : > { %3630 = vrcp.f32 %v1724_v7 }
 0x764   : > { %3283 = vmatpush3.bf16.xpose.msra.mxu1 %v2046_v63  ;;  %v1726_v30 = vpop.xlane.xlu1 %1725 }
 0x768   : > { %v1738_v12 = vpop.xlane.xlu0 %1737  ;;  %v1732_v60 = vpop.xlane.xlu1 %1731 }
 0x769   : > { %3632 = vrcp.f32 %v1732_v60  ;;  %v3728_v60 = vld [vmem:[%s3820_s25 + $0x38] sm:$0xff]  }
 0x76a   : > { %v3625_v45 = vpop.eup %3624  ;;  %3634 = vrcp.f32 %v1726_v30  ;;  %2342 = vrot.lane.b32.xlu0 %v3728_v60, %s3762_s10 }
 0x76b   : > { %v3627_v4 = vpop.eup %3626  ;;  %v1761_v2 = vmul.f32 %v3625_v45, %v4594_v44  ;;  %3636 = vrcp.f32 %v1730_v22 }
 0x76c   : > { %v3629_v15 = vpop.eup %3628  ;;  %v1734_v50 = vpop.xlane.xlu0 %1733  ;;  %v1762_v11 = vmul.f32 %v3627_v4, %v4590_v19 }
 0x76d   : > { %v1728_v3 = vpop.xlane.xlu1 %1727  ;;  %v1763_v55 = vmul.f32 %v3629_v15, %v4587_v6 }
 0x76e   : > { %v3631_v29 = vpop.eup %3630  ;;  %3638 = vrcp.f32 %v1728_v3  ;;  %v1775_v56 = vpack.c.bf16 %v1762_v11, %v1761_v2  ;;  %2338 = vrot.lane.b32.xlu0 %v4426_v62, %s3762_s10 }
 0x76f   : > { %v1764_v14 = vmul.f32 %v3631_v29, %v4598_v59  ;;  %3640 = vrcp.f32 %v1734_v50 }
 0x770   : > { %3260 = vmatprep.mubr.bf16.mxu1 %v1775_v56  ;;  %v1740_v16 = vpop.xlane.xlu0 %1739 }
 0x771   : > { %v1736_v47 = vpop.xlane.xlu1 %1735  ;;  %v1776_v53 = vpack.c.bf16 %v1764_v14, %v1763_v55 }
 0x772   : > { %3642 = vrcp.f32 %v1736_v47 }
 0x773   : > { %3644 = vrcp.f32 %v1740_v16  ;;  %3261 = vmatmul.mubr.bf16.gmra.mxu1 %v1776_v53 }
 0x774   : > { %v2002_v44 = vpop.permute.xlu0 %2001  ;;  %3646 = vrcp.f32 %v1738_v12 }
 0x775   : > { %v2000_v57 = vpop.permute.xlu1 %1999  ;;  %v2043_v19 = vsel %vm436_vm0, %v2002_v44, 0  ;;  %3402 = vmatprep.subr.msk.bf16.mxu1 %vm436_vm0, %v2002_v44 }
 0x776   : > { %3285 = vmatpush3.bf16.xpose.msra.mxu1 %v2043_v19  ;;  %v3633_v6 = vpop.eup %3632  ;;  %v2040_v49 = vsel %vm436_vm0, %v2000_v57, 0 }
 0x777   : > { %3403 = vmatprep.subr.msk.bf16.mxu1 %vm436_vm0, %v2000_v57  ;;  %v3635_v59 = vpop.eup %3634  ;;  %v1768_v61 = vmul.f32 %v3633_v6, %v4609_v25 }
 0x778   : > { %v3637_v51 = vpop.eup %3636  ;;  %v1765_v10 = vmul.f32 %v3635_v59, %v4606_v28 }
 0x779   : > { %v1767_v18 = vmul.f32 %v3637_v51, %v4602_v21 }
 0x77b   : > { %v3639_v1 = vpop.eup %3638  ;;  %v1778_v7 = vpack.c.bf16 %v1768_v61, %v1767_v18 }
 0x77c   : > { %v1766_v9 = vmul.f32 %v3639_v1, %v4615_v46  ;;  %v3641_v17 = vpop.eup %3640 }
 0x77d   : > { %v1769_v63 = vmul.f32 %v3641_v17, %v4617_v8  ;;  %v1984_v8 = vpop.permute.xlu0 %1983 }
 0x77e   : > { %v1777_v48 = vpack.c.bf16 %v1766_v9, %v1765_v10  ;;  %3287 = vmatpush3.bf16.xpose.msra.mxu1 %v2040_v49 }
 0x77f   : > { %v3643_v54 = vpop.eup %3642 }
 0x780   : > { %v3645_v22 = vpop.eup %3644  ;;  %3264 = vmatprep.mubr.bf16.mxu1 %v1777_v48  ;;  %v1770_v25 = vmul.f32 %v3643_v54, %v4623_v52  ;;  %v1986_v52 = vpop.permute.xlu1 %1985 }
 0x781   : > { %3265 = vmatmul.mubr.bf16.gmra.mxu1 %v1778_v7  ;;  %v3647_v30 = vpop.eup %3646  ;;  %v1772_v21 = vmul.f32 %v3645_v22, %v4621_v32  ;;  %v1988_v45 = vpop.permute.xlu0 %1987 }
 0x782   : > { %v1779_v12 = vpack.c.bf16 %v1770_v25, %v1769_v63  ;;  %v1771_v28 = vmul.f32 %v3647_v30, %v4611_v26 }
 0x784   : > { %3268 = vmatprep.mubr.bf16.mxu1 %v1779_v12  ;;  %v1780_v46 = vpack.c.bf16 %v1772_v21, %v1771_v28  ;;  %v1990_v33 = vpop.permute.xlu1 %1989 }
 0x785   : > { %v1992_v4 = vpop.permute.xlu0 %1991 }
 0x788   : > { %v1994_v26 = vpop.permute.xlu1 %1993 }
 0x789   : > { %3269 = vmatmul.mubr.bf16.gmra.mxu1 %v1780_v46  ;;  %v1996_v32 = vpop.permute.xlu0 %1995 }
 0x78a   : > { %3288 = vmatprep.mubr.msk.bf16.mxu1 %vm436_vm0, %v1984_v8 }
 0x78c   : > { %v1998_v62 = vpop.permute.xlu1 %1997 }
 0x790   : > { %v2341_v15 = vpop.permute.xlu1 %2340 }
 0x791   : > { %3289 = vmatmul.mubr.msk.bf16.vlgmr.msra.gmra.mxu1 %vm436_vm0, %v1986_v52 }
 0x792   : > { %3292 = vmatprep.mubr.msk.bf16.mxu1 %vm436_vm0, %v1988_v45 }
 0x799   : > { %3293 = vmatmul.mubr.msk.bf16.gmra.mxu1 %vm436_vm0, %v1990_v33 }
 0x79a   : > { %3296 = vmatprep.mubr.msk.bf16.mxu1 %vm436_vm0, %v1992_v4 }
 0x7a1   : > { %3297 = vmatmul.mubr.msk.bf16.gmra.mxu1 %vm436_vm0, %v1994_v26 }
 0x7a2   : > { %3300 = vmatprep.mubr.msk.bf16.mxu1 %vm436_vm0, %v1996_v32 }
 0x7a9   : > { %3301 = vmatmul.mubr.msk.bf16.gmra.mxu1 %vm436_vm0, %v1998_v62 }
 0x7dc   : > { %v2343_v2 = vpop.permute.xlu0 %2342 }
 0x7dd   : > { %3304 = vmatprep.subr.bf16.mxu0 %v2343_v2  ;;  %3356 = vmatprep.subr.bf16.mxu1 %v2343_v2 }
 0x7de   : > { %3305 = vmatpush3.bf16.msra.mxu0 %v2343_v2  ;;  %3364 = vmatpush3.bf16.msra.mxu1 %v2343_v2 }
 0x7df   : > { %3306 = vmatprep.subr.bf16.mxu0 %v2341_v15  ;;  %3357 = vmatprep.subr.bf16.mxu1 %v2341_v15 }
 0x7e0   : > { %v2339_v50 = vpop.permute.xlu0 %2338 }
 0x7e2   : > { %3307 = vmatpush3.bf16.msra.mxu0 %v2341_v15  ;;  %3365 = vmatpush3.bf16.msra.mxu1 %v2341_v15 }
 0x7e3   : > { %3308 = vmatprep.subr.bf16.mxu0 %v2339_v50  ;;  %3358 = vmatprep.subr.bf16.mxu1 %v2339_v50 }
 0x7e6   : > { %3309 = vmatpush3.bf16.msra.mxu0 %v2339_v50  ;;  %3366 = vmatpush3.bf16.msra.mxu1 %v2339_v50 }
 0x7fb   : > { %v4696_v3 = vpop.f32.mrf.mxu1 }
 0x7fd   : > { %v4698_v11 = vpop.f32.mrf.mxu1 }
 0x7ff   : > { %v4700_v29 = vpop.f32.mrf.mxu1 }
 0x801   : > { %v4702_v56 = vpop.f32.mrf.mxu1 }
 0x833   : > { %v4704_v55 = vpop.f32.mrf.mxu1 }
 0x835   : > { %v4706_v14 = vpop.f32.mrf.mxu1 }
 0x837   : > { %v4708_v16 = vpop.f32.mrf.mxu1 }
 0x839   : > { %v4710_v47 = vpop.f32.mrf.mxu1 }
 0x841   : > { %v4712_v53 = vpop.f32.mrf.mxu1 }
 0x843   : > { %v4714_v44 = vpop.f32.mrf.mxu1 }
 0x845   : > { %v4716_v57 = vpop.f32.mrf.mxu1 }
 0x847   : > { %v4718_v19 = vpop.f32.mrf.mxu1 }
 0x849   : > { %v4720_v6 = vpop.f32.mrf.mxu1 }
 0x84b   : > { %v4722_v59 = vpop.f32.mrf.mxu1 }
 0x84d   : > { %v4724_v51 = vpop.f32.mrf.mxu1 }
 0x84e   : > { %5113 = vst [vmem:[#allocation3_spill] sm:$0xff] %v4724_v51 }
 0x84f   : > { %v4726_v1 = vpop.f32.mrf.mxu1 }
 0x851   : > { %v3290_v61 = vpop.f32.mrf.mxu1 }
 0x852   : > { %v2162_v49 = vsel %vm355_vm1, %v3290_v61, -1e+30 }
 0x853   : > { %2180 = vmax.xlane.f32.xlu0 %v2162_v49  ;;  %v2097_v10 = vpop.f32.mrf.mxu1 }
 0x854   : > { %v2160_v17 = vsel %vm355_vm1, %v2097_v10, -1e+30 }
 0x855   : > { %v3291_v9 = vpop.f32.mrf.mxu1 }
 0x856   : > { %v2163_v7 = vsel %vm355_vm1, %v3291_v9, -1e+30 }
 0x857   : > { %2176 = vmax.xlane.f32.xlu0 %v2160_v17  ;;  %v2100_v18 = vpop.f32.mrf.mxu1 }
 0x858   : > { %v2161_v48 = vsel %vm355_vm1, %v2100_v18, -1e+30  ;;  %v3729_v18 = vld [vmem:[%s3820_s25 + $0x10] sm:$0xff]  }
 0x859   : > { %2178 = vmax.xlane.f32.xlu1 %v2161_v48  ;;  %v3294_v54 = vpop.f32.mrf.mxu1 }
 0x85a   : > { %v2166_v63 = vsel %vm355_vm1, %v3294_v54, -1e+30 }
 0x85b   : > { %2182 = vmax.xlane.f32.xlu0 %v2163_v7  ;;  %v2113_v22 = vpop.f32.mrf.mxu1 }
 0x85c   : > { %v2164_v21 = vsel %vm355_vm1, %v2113_v22, -1e+30 }
 0x85d   : > { %v3295_v25 = vpop.f32.mrf.mxu1 }
 0x85e   : > { %v4740_v30 = vsel %vm355_vm1, %v3295_v25, -1e+30 }
 0x85f   : > { %2188 = vmax.xlane.f32.xlu0 %v2166_v63  ;;  %2190 = vmax.xlane.f32.xlu1 %v4740_v30  ;;  %v2116_v12 = vpop.f32.mrf.mxu1 }
 0x860   : > { %v2165_v28 = vsel %vm355_vm1, %v2116_v12, -1e+30 }
 0x861   : > { %v3298_v60 = vpop.f32.mrf.mxu1 }
 0x862   : > { %v4749_v8 = vsel %vm355_vm1, %v3298_v60, -1e+30 }
 0x863   : > { %2184 = vmax.xlane.f32.xlu0 %v2164_v21  ;;  %2186 = vmax.xlane.f32.xlu1 %v2165_v28  ;;  %v2129_v46 = vpop.f32.mrf.mxu1 }
 0x864   : > { %v4759_v26 = vsel %vm355_vm1, %v2129_v46, -1e+30 }
 0x865   : > { %v3299_v52 = vpop.f32.mrf.mxu1 }
 0x866   : > { %v4753_v45 = vsel %vm355_vm1, %v3299_v52, -1e+30 }
 0x867   : > { %2196 = vmax.xlane.f32.xlu0 %v4749_v8  ;;  %2198 = vmax.xlane.f32.xlu1 %v4753_v45  ;;  %v2132_v33 = vpop.f32.mrf.mxu1 }
 0x868   : > { %v4763_v32 = vsel %vm355_vm1, %v2132_v33, -1e+30 }
 0x869   : > { %v3302_v4 = vpop.f32.mrf.mxu1 }
 0x86a   : > { %v4769_v62 = vsel %vm355_vm1, %v3302_v4, -1e+30 }
 0x86b   : > { %2192 = vmax.xlane.f32.xlu0 %v4759_v26  ;;  %2194 = vmax.xlane.f32.xlu1 %v4763_v32  ;;  %v2145_v2 = vpop.f32.mrf.mxu1 }
 0x86c   : > { %v4774_v15 = vsel %vm355_vm1, %v2145_v2, -1e+30 }
 0x86d   : > { %v3303_v50 = vpop.f32.mrf.mxu1 }
 0x86e   : > { %v4783_v61 = vsel %vm355_vm1, %v3303_v50, -1e+30 }
 0x86f   : > { %2204 = vmax.xlane.f32.xlu0 %v4769_v62  ;;  %v2148_v10 = vpop.f32.mrf.mxu1 }
 0x870   : > { %v4788_v9 = vsel %vm355_vm1, %v2148_v10, -1e+30 }
 0x873   : > { %2200 = vmax.xlane.f32.xlu0 %v4774_v15 }
 0x87c   : > { %2334 = vrot.lane.b32.xlu1 %v4441_v0, %s3762_s10 }
 0x889   : > { %2336 = vrot.lane.b32.xlu0 %v4434_v58, %s3762_s10 }
 0x8a0   : > { %2206 = vmax.xlane.f32.xlu1 %v4783_v61 }
 0x8a4   : > { %2202 = vmax.xlane.f32.xlu1 %v4788_v9 }
 0x8b5   : > { %2332 = vrot.lane.b32.xlu1 %v3729_v18, %s3762_s10 }
 0x8dc   : > { %v2181_v0 = vpop.xlane.xlu0 %2180 }
 0x8dd   : > { %v2210_v54 = vsub.f32 %v2162_v49, %v2181_v0 }
 0x8df   : > { %v2228_v58 = vmul.f32 1.442695, %v2210_v54 }
 0x8e0   : > { %v2177_v22 = vpop.xlane.xlu0 %2176 }
 0x8e1   : > { %3648 = vpow2.f32 %v2228_v58  ;;  %v2208_v25 = vsub.f32 %v2160_v17, %v2177_v22 }
 0x8e2   : > { %v2179_v12 = vpop.xlane.xlu1 %2178 }
 0x8e3   : > { %v2224_v60 = vmul.f32 1.442695, %v2208_v25  ;;  %v2209_v46 = vsub.f32 %v2161_v48, %v2179_v12 }
 0x8e4   : > { %v2183_v52 = vpop.xlane.xlu0 %2182 }
 0x8e5   : > { %3650 = vpow2.f32 %v2224_v60  ;;  %v2211_v33 = vsub.f32 %v2163_v7, %v2183_v52  ;;  %v2226_v4 = vmul.f32 1.442695, %v2209_v46 }
 0x8e7   : > { %v2230_v31 = vmul.f32 1.442695, %v2211_v33 }
 0x8e8   : > { %v2189_v2 = vpop.xlane.xlu0 %2188  ;;  %v2191_v50 = vpop.xlane.xlu1 %2190 }
 0x8e9   : > { %3652 = vpow2.f32 %v2230_v31  ;;  %v2214_v10 = vsub.f32 %v2166_v63, %v2189_v2  ;;  %v2215_v0 = vsub.f32 %v4740_v30, %v2191_v50 }
 0x8ea   : > { %3654 = vpow2.f32 %v2226_v4 }
 0x8eb   : > { %v2236_v51 = vmul.f32 1.442695, %v2214_v10  ;;  %v2238_v12 = vmul.f32 1.442695, %v2215_v0 }
 0x8ec   : > { %v2185_v18 = vpop.xlane.xlu0 %2184  ;;  %v2187_v49 = vpop.xlane.xlu1 %2186 }
 0x8ed   : > { %3656 = vpow2.f32 %v2236_v51  ;;  %v2212_v17 = vsub.f32 %v2164_v21, %v2185_v18  ;;  %v2213_v54 = vsub.f32 %v2165_v28, %v2187_v49 }
 0x8ee   : > { %v4794_v58 = vpop.eup %3648 }
 0x8ef   : > { %v2232_v48 = vmul.f32 1.442695, %v2212_v17  ;;  %v2234_v22 = vmul.f32 1.442695, %v2213_v54  ;;  %2260 = vadd.xlane.f32.xlu1 %v4794_v58 }
 0x8f0   : > { %v2197_v7 = vpop.xlane.xlu0 %2196  ;;  %v2199_v25 = vpop.xlane.xlu1 %2198 }
 0x8f1   : > { %3658 = vpow2.f32 %v2232_v48  ;;  %v2218_v63 = vsub.f32 %v4749_v8, %v2197_v7  ;;  %v2219_v30 = vsub.f32 %v4753_v45, %v2199_v25 }
 0x8f2   : > { %v4798_v60 = vpop.eup %3650  ;;  %3660 = vpow2.f32 %v2234_v22 }
 0x8f3   : > { %2256 = vadd.xlane.f32.xlu1 %v4798_v60  ;;  %v2244_v51 = vmul.f32 1.442695, %v2218_v63  ;;  %3662 = vpow2.f32 %v2238_v12  ;;  %v2246_v8 = vmul.f32 1.442695, %v2219_v30  ;;  %v3731_v30 = vld [vmem:[%s3820_s25 + $0x8] sm:$0xff]  }
 0x8f4   : > { %v2193_v21 = vpop.xlane.xlu0 %2192  ;;  %v2195_v46 = vpop.xlane.xlu1 %2194 }
 0x8f5   : > { %v2216_v28 = vsub.f32 %v4759_v26, %v2193_v21  ;;  %3664 = vpow2.f32 %v2244_v51  ;;  %v2217_v31 = vsub.f32 %v4763_v32, %v2195_v46  ;;  %v3730_v51 = vld [vmem:[%s3820_s25] sm:$0xff]   ;;  %s5022_s25 = scalar_lea.vmem %s5107_s0, %s2938_s22 }
 0x8f6   : > { %v4803_v52 = vpop.eup %3652 }
 0x8f7   : > { %v2240_v33 = vmul.f32 1.442695, %v2216_v28  ;;  %2262 = vadd.xlane.f32.xlu1 %v4803_v52  ;;  %v4807_v2 = vpop.eup %3654  ;;  %v2242_v26 = vmul.f32 1.442695, %v2217_v31 }
 0x8f8   : > { %v2205_v4 = vpop.xlane.xlu0 %2204  ;;  %v2335_v48 = vpop.permute.xlu1 %2334 }
 0x8f9   : > { %3666 = vpow2.f32 %v2240_v33  ;;  %v2222_v45 = vsub.f32 %v4769_v62, %v2205_v4 }
 0x8fa   : > { %v4810_v50 = vpop.eup %3656  ;;  %3668 = vpow2.f32 %v2246_v8 }
 0x8fb   : > { %v2252_v10 = vmul.f32 1.442695, %v2222_v45  ;;  %2268 = vadd.xlane.f32.xlu0 %v4810_v50  ;;  %2258 = vadd.xlane.f32.xlu1 %v4807_v2 }
 0x8fc   : > { %v2201_v18 = vpop.xlane.xlu0 %2200 }
 0x8fd   : > { %3670 = vpow2.f32 %v2252_v10  ;;  %v2220_v49 = vsub.f32 %v4774_v15, %v2201_v18 }
 0x8fe   : > { %v4815_v32 = vpop.eup %3658  ;;  %3672 = vpow2.f32 %v2242_v26 }
 0x8ff   : > { %v4817_v0 = vpop.eup %3660  ;;  %v2248_v17 = vmul.f32 1.442695, %v2220_v49  ;;  %2264 = vadd.xlane.f32.xlu0 %v4815_v32 }
 0x900   : > { %2266 = vadd.xlane.f32.xlu1 %v4817_v0  ;;  %v2337_v62 = vpop.permute.xlu0 %2336  ;;  %v4821_v54 = vpop.eup %3662 }
 0x901   : > { %3674 = vpow2.f32 %v2248_v17  ;;  %3310 = vmatprep.subr.bf16.mxu0 %v2337_v62  ;;  %3359 = vmatprep.subr.bf16.mxu1 %v2337_v62 }
 0x902   : > { %3311 = vmatpush3.bf16.msra.mxu0 %v2337_v62  ;;  %3367 = vmatpush3.bf16.msra.mxu1 %v2337_v62  ;;  %v4824_v15 = vpop.eup %3664 }
 0x903   : > { %2270 = vadd.xlane.f32.xlu0 %v4821_v54  ;;  %3312 = vmatprep.subr.bf16.mxu0 %v2335_v48 }
 0x904   : > { %3360 = vmatprep.subr.bf16.mxu1 %v2335_v48 }
 0x906   : > { %v4826_v22 = vpop.eup %3666  ;;  %3313 = vmatpush3.bf16.msra.mxu0 %v2335_v48  ;;  %3368 = vmatpush3.bf16.msra.mxu1 %v2335_v48 }
 0x907   : > { %2276 = vadd.xlane.f32.xlu0 %v4824_v15  ;;  %2272 = vadd.xlane.f32.xlu1 %v4826_v22  ;;  %v4830_v7 = vpop.eup %3668 }
 0x90a   : > { %v4832_v25 = vpop.eup %3670 }
 0x90b   : > { %2284 = vadd.xlane.f32.xlu1 %v4832_v25  ;;  %2278 = vadd.xlane.f32.xlu0 %v4830_v7  ;;  %v4836_v12 = vpop.eup %3672 }
 0x90e   : > { %v4838_v63 = vpop.eup %3674 }
 0x90f   : > { %2280 = vadd.xlane.f32.xlu1 %v4838_v63  ;;  %2274 = vadd.xlane.f32.xlu0 %v4836_v12 }
 0x920   : > { %2328 = vrot.lane.b32.xlu1 %v3730_v51, %s3762_s10 }
 0x924   : > { %1373 = vrot.lane.b32.xlu1 %v4458_v24, %s3763_s11 }
 0x925   : > { %2330 = vrot.lane.b32.xlu0 %v3731_v30, %s3762_s10 }
 0x928   : > { %1375 = vrot.lane.b32.xlu1 %v4452_v20, %s3763_s11 }
 0x929   : > { %v2207_v21 = vpop.xlane.xlu1 %2206 }
 0x92a   : > { %v2223_v24 = vsub.f32 %v4783_v61, %v2207_v21 }
 0x92c   : > { %1377 = vrot.lane.b32.xlu1 %v4456_v23, %s3763_s11  ;;  %v2254_v20 = vmul.f32 1.442695, %v2223_v24 }
 0x92d   : > { %v2203_v28 = vpop.xlane.xlu1 %2202 }
 0x92e   : > { %v2221_v46 = vsub.f32 %v4788_v9, %v2203_v28 }
 0x930   : > { %1920 = vrot.lane.b32.xlu1 %v4702_v56, %s3764_s12  ;;  %v2250_v8 = vmul.f32 1.442695, %v2221_v46 }
 0x931   : > { %v2333_v33 = vpop.permute.xlu1 %2332 }
 0x932   : > { %3314 = vmatprep.subr.bf16.mxu0 %v2333_v33  ;;  %3361 = vmatprep.subr.bf16.mxu1 %v2333_v33  ;;  %3676 = vpow2.f32 %v2250_v8 }
 0x933   : > { %3315 = vmatpush3.bf16.msra.mxu0 %v2333_v33  ;;  %3369 = vmatpush3.bf16.msra.mxu1 %v2333_v33  ;;  %3678 = vpow2.f32 %v2254_v20 }
 0x934   : > { %1924 = vrot.lane.b32.xlu1 %v4700_v29, %s3764_s12 }
 0x938   : > { %1381 = vrot.lane.b32.xlu1 %v4466_v38, %s3763_s11 }
 0x93c   : > { %1385 = vrot.lane.b32.xlu1 %v4464_v37, %s3763_s11 }
 0x93f   : > { %v4864_v23 = vpop.eup %3676 }
 0x940   : > { %1928 = vrot.lane.b32.xlu1 %v4710_v47, %s3764_s12  ;;  %v4869_v29 = vpop.eup %3678 }
 0x944   : > { %1932 = vrot.lane.b32.xlu1 %v4708_v16, %s3764_s12  ;;  %2282 = vadd.xlane.f32.xlu0 %v4864_v23 }
 0x948   : > { %1389 = vrot.lane.b32.xlu1 %v4474_v13, %s3763_s11  ;;  %2286 = vadd.xlane.f32.xlu0 %v4869_v29 }
 0x94c   : > { %1393 = vrot.lane.b32.xlu1 %v4472_v40, %s3763_s11 }
 0x950   : > { %1936 = vrot.lane.b32.xlu1 %v4718_v19, %s3764_s12 }
 0x954   : > { %1940 = vrot.lane.b32.xlu1 %v4716_v57, %s3764_s12 }
 0x958   : > { %1397 = vrot.lane.b32.xlu1 %v4482_v42, %s3763_s11 }
 0x95c   : > { %1401 = vrot.lane.b32.xlu1 %v4480_v41, %s3763_s11 }
 0x95e   : > { %1371 = vrot.lane.b32.xlu0 %v4454_v43, %s3763_s11 }
 0x960   : > { %1944 = vrot.lane.b32.xlu1 %v4726_v1, %s3764_s12 }
 0x962   : > { %1918 = vrot.lane.b32.xlu0 %v4698_v11, %s3764_s12 }
 0x966   : > { %1922 = vrot.lane.b32.xlu0 %v4696_v3, %s3764_s12 }
 0x96a   : > { %1379 = vrot.lane.b32.xlu0 %v4462_v36, %s3763_s11 }
 0x96e   : > { %1383 = vrot.lane.b32.xlu0 %v4460_v35, %s3763_s11 }
 0x972   : > { %1926 = vrot.lane.b32.xlu0 %v4706_v14, %s3764_s12 }
 0x976   : > { %1930 = vrot.lane.b32.xlu0 %v4704_v55, %s3764_s12 }
 0x978   : > { %v2261_v43 = vpop.xlane.xlu1 %2260 }
 0x97a   : > { %1387 = vrot.lane.b32.xlu0 %v4470_v5, %s3763_s11 }
 0x97c   : > { %v2257_v37 = vpop.xlane.xlu1 %2256 }
 0x97d   : > { %3680 = vrcp.f32 %v2257_v37 }
 0x97e   : > { %1391 = vrot.lane.b32.xlu0 %v4468_v39, %s3763_s11 }
 0x980   : > { %v2263_v38 = vpop.xlane.xlu1 %2262 }
 0x982   : > { %1934 = vrot.lane.b32.xlu0 %v4714_v44, %s3764_s12 }
 0x984   : > { %v2269_v35 = vpop.xlane.xlu0 %2268  ;;  %v2259_v36 = vpop.xlane.xlu1 %2258 }
 0x985   : > { %3682 = vrcp.f32 %v2259_v36 }
 0x986   : > { %1938 = vrot.lane.b32.xlu0 %v4712_v53, %s3764_s12  ;;  %3684 = vrcp.f32 %v2263_v38 }
 0x988   : > { %v2265_v40 = vpop.xlane.xlu0 %2264 }
 0x989   : > { %v2267_v5 = vpop.xlane.xlu1 %2266  ;;  %3686 = vrcp.f32 %v2265_v40 }
 0x98a   : > { %1395 = vrot.lane.b32.xlu0 %v4478_v34, %s3763_s11  ;;  %3688 = vrcp.f32 %v2267_v5  ;;  %v3681_v42 = vpop.eup %3680 }
 0x98b   : > { %3690 = vrcp.f32 %v2261_v43  ;;  %v2304_v34 = vmul.f32 %v3681_v42, %v4798_v60 }
 0x98c   : > { %v2271_v13 = vpop.xlane.xlu0 %2270  ;;  %3692 = vrcp.f32 %v2269_v35 }
 0x98d   : > { %3694 = vrcp.f32 %v2271_v13 }
 0x98e   : > { %1399 = vrot.lane.b32.xlu0 %v4476_v27, %s3763_s11 }
 0x990   : > { %v2277_v39 = vpop.xlane.xlu0 %2276  ;;  %v2273_v41 = vpop.xlane.xlu1 %2272 }
 0x992   : > { %1942 = vrot.lane.b32.xlu0 %v4722_v59, %s3764_s12  ;;  %v3683_v3 = vpop.eup %3682 }
 0x993   : > { %v2305_v55 = vmul.f32 %v3683_v3, %v4807_v2  ;;  %v3685_v47 = vpop.eup %3684 }
 0x994   : > { %v2279_v11 = vpop.xlane.xlu0 %2278  ;;  %v4914_v56 = vpop.xlane.xlu1 %2284  ;;  %v2307_v1 = vmul.f32 %v3685_v47, %v4803_v52 }
 0x995   : > { %3696 = vrcp.f32 %v2279_v11  ;;  %v2320_v27 = vpack.c.bf16 %v2305_v55, %v2304_v34 }
 0x996   : > { %3698 = vrcp.f32 %v2273_v41  ;;  %v3687_v53 = vpop.eup %3686 }
 0x997   : > { %3700 = vrcp.f32 %v2277_v39  ;;  %3320 = vmatprep.mubr.bf16.mxu0 %v2320_v27  ;;  %v3689_v19 = vpop.eup %3688  ;;  %v2308_v9 = vmul.f32 %v3687_v53, %v4815_v32 }
 0x998   : > { %v2275_v14 = vpop.xlane.xlu0 %2274  ;;  %v4918_v16 = vpop.xlane.xlu1 %2280  ;;  %v2309_v60 = vmul.f32 %v3689_v19, %v4817_v0 }
 0x999   : > { %3702 = vrcp.f32 %v2275_v14  ;;  %v3691_v59 = vpop.eup %3690 }
 0x99a   : > { %v3693_v31 = vpop.eup %3692  ;;  %v2306_v4 = vmul.f32 %v3691_v59, %v4794_v58  ;;  %v2322_v49 = vpack.c.bf16 %v2309_v60, %v2308_v9  ;;  %3704 = vrcp.f32 %v4918_v16  ;;  %v3455_v9 = vld [vmem:[%s5110_s3] sm:$0xff]  }
 0x99b   : > { %v3695_v2 = vpop.eup %3694  ;;  %v2310_v21 = vmul.f32 %v3693_v31, %v4810_v50 }
 0x99c   : > { %v2331_v44 = vpop.permute.xlu0 %2330  ;;  %v2329_v57 = vpop.permute.xlu1 %2328  ;;  %v2321_v10 = vpack.c.bf16 %v2307_v1, %v2306_v4  ;;  %v2311_v62 = vmul.f32 %v3695_v2, %v4821_v54  ;;  %v3454_v1 = vld [vmem:[%s5110_s3 + $0x8] sm:$0xff]  }
 0x99d   : > { %3316 = vmatprep.subr.bf16.mxu0 %v2331_v44  ;;  %3362 = vmatprep.subr.bf16.mxu1 %v2331_v44 }
 0x99e   : > { %3317 = vmatpush3.bf16.msra.mxu0 %v2331_v44  ;;  %3370 = vmatpush3.bf16.msra.mxu1 %v2331_v44  ;;  %v2323_v46 = vpack.c.bf16 %v2311_v62, %v2310_v21 }
 0x99f   : > { %3318 = vmatprep.subr.bf16.mxu0 %v2329_v57  ;;  %3363 = vmatprep.subr.bf16.mxu1 %v2329_v57 }
 0x9a0   : > { %v1374_v61 = vpop.permute.xlu1 %1373 }
 0x9a1   : > { %1421 = vst.msk [vmem:[#allocation2 + $0x8] sm:$0xff] %vm1419_vm2, %v1374_v61 }
 0x9a2   : > { %3319 = vmatpush3.bf16.msra.mxu0 %v2329_v57  ;;  %3371 = vmatpush3.bf16.msra.mxu1 %v2329_v57  ;;  %v3697_v45 = vpop.eup %3696 }
 0x9a3   : > { %v3699_v26 = vpop.eup %3698  ;;  %v2315_v0 = vmul.f32 %v3697_v45, %v4830_v7  ;;  %3336 = vmatprep.subr.bf16.mxu0 %v3454_v1 }
 0x9a4   : > { %v1376_v18 = vpop.permute.xlu1 %1375  ;;  %v3701_v52 = vpop.eup %3700  ;;  %v2312_v17 = vmul.f32 %v3699_v26, %v4826_v22 }
 0x9a5   : > { %1422 = vst.msk [vmem:[#allocation2 + $0x10] sm:$0xff] %vm1419_vm2, %v1376_v18  ;;  %3321 = vmatmul.mubr.bf16.vlgmr.msra.gmra.mxu0 %v2321_v10  ;;  %v2314_v51 = vmul.f32 %v3701_v52, %v4824_v15 }
 0x9a6   : > { %v3703_v32 = vpop.eup %3702  ;;  %3324 = vmatprep.mubr.bf16.mxu0 %v2322_v49  ;;  %3337 = vmatpush3.bf16.msra.mxu0 %v3454_v1 }
 0x9a7   : > { %v2313_v58 = vmul.f32 %v3703_v32, %v4836_v12  ;;  %v2325_v28 = vpack.c.bf16 %v2315_v0, %v2314_v51  ;;  %v3705_v40 = vpop.eup %3704  ;;  %3338 = vmatprep.subr.bf16.mxu0 %v3455_v9  ;;  %v5114_v0 = vld [vmem:[#allocation3_spill] sm:$0xff] }
 0x9a8   : > { %v1378_v48 = vpop.permute.xlu1 %1377  ;;  %v2316_v41 = vmul.f32 %v3705_v40, %v4838_v63 }
 0x9a9   : > { %1423 = vst.msk [vmem:[#allocation2 + $0x18] sm:$0xff] %vm1419_vm2, %v1378_v48  ;;  %v2324_v30 = vpack.c.bf16 %v2313_v58, %v2312_v17 }
 0x9aa   : > { %3339 = vmatpush3.bf16.msra.mxu0 %v3455_v9  ;;  %v2699_v9 = vld [vmem:[%s5022_s25] sm:$0xff] }
 0x9ab   : > { %3328 = vmatprep.mubr.bf16.mxu1 %v2324_v30 }
 0x9ac   : > { %3329 = vmatmul.mubr.bf16.vlgmr.msra.gmra.mxu1 %v2325_v28  ;;  %v1921_v7 = vpop.permute.xlu1 %1920 }
 0x9ad   : > { %1968 = vst.msk [vmem:[#allocation2 + $0x8] sm:$0xff] %vm1966_vm3, %v1921_v7  ;;  %3325 = vmatmul.mubr.bf16.gmra.mxu0 %v2323_v46 }
 0x9b0   : > { %v1925_v22 = vpop.permute.xlu1 %1924 }
 0x9b1   : > { %1970 = vst.msk [vmem:[#allocation2 + $0x18] sm:$0xff] %vm1966_vm3, %v1925_v22 }
 0x9b4   : > { %v1382_v54 = vpop.permute.xlu1 %1381 }
 0x9b5   : > { %1425 = vst.msk [vmem:[#allocation2 + $0x28] sm:$0xff] %vm1419_vm2, %v1382_v54 }
 0x9b8   : > { %v1386_v15 = vpop.permute.xlu1 %1385 }
 0x9b9   : > { %1427 = vst.msk [vmem:[#allocation2 + $0x38] sm:$0xff] %vm1419_vm2, %v1386_v15 }
 0x9bc   : > { %v1929_v12 = vpop.permute.xlu1 %1928 }
 0x9bd   : > { %1972 = vst.msk [vmem:[#allocation2 + $0x28] sm:$0xff] %vm1966_vm3, %v1929_v12 }
 0x9c0   : > { %v1933_v50 = vpop.permute.xlu1 %1932 }
 0x9c1   : > { %1974 = vst.msk [vmem:[#allocation2 + $0x38] sm:$0xff] %vm1966_vm3, %v1933_v50 }
 0x9c4   : > { %v1390_v33 = vpop.permute.xlu1 %1389 }
 0x9c5   : > { %1429 = vst.msk [vmem:[#allocation2 + $0x48] sm:$0xff] %vm1419_vm2, %v1390_v33 }
 0x9c8   : > { %v1394_v24 = vpop.permute.xlu1 %1393 }
 0x9c9   : > { %1431 = vst.msk [vmem:[#allocation2 + $0x58] sm:$0xff] %vm1419_vm2, %v1394_v24 }
 0x9cc   : > { %v1937_v8 = vpop.permute.xlu1 %1936 }
 0x9cd   : > { %1976 = vst.msk [vmem:[#allocation2 + $0x48] sm:$0xff] %vm1966_vm3, %v1937_v8  ;;  %v2283_v20 = vpop.xlane.xlu0 %2282 }
 0x9ce   : > { %3706 = vrcp.f32 %v2283_v20 }
 0x9cf   : > { %3708 = vrcp.f32 %v4914_v56 }
 0x9d0   : > { %v1941_v43 = vpop.permute.xlu1 %1940 }
 0x9d1   : > { %1978 = vst.msk [vmem:[#allocation2 + $0x58] sm:$0xff] %vm1966_vm3, %v1941_v43  ;;  %v2287_v37 = vpop.xlane.xlu0 %2286 }
 0x9d2   : > { %3710 = vrcp.f32 %v2287_v37 }
 0x9d4   : > { %v1398_v38 = vpop.permute.xlu1 %1397 }
 0x9d5   : > { %1433 = vst.msk [vmem:[#allocation2 + $0x68] sm:$0xff] %vm1419_vm2, %v1398_v38  ;;  %v1372_v35 = vpop.permute.xlu0 %1371 }
 0x9d6   : > { %1420 = vst.msk [vmem:[#allocation2] sm:$0xff] %vm1419_vm2, %v1372_v35 }
 0x9d8   : > { %v1402_v36 = vpop.permute.xlu1 %1401 }
 0x9d9   : > { %1435 = vst.msk [vmem:[#allocation2 + $0x78] sm:$0xff] %vm1419_vm2, %v1402_v36  ;;  %v1919_v5 = vpop.permute.xlu0 %1918 }
 0x9da   : > { %1967 = vst.msk [vmem:[#allocation2] sm:$0xff] %vm1966_vm3, %v1919_v5 }
 0x9db   : > { %v3707_v13 = vpop.eup %3706 }
 0x9dc   : > { %v1945_v39 = vpop.permute.xlu1 %1944  ;;  %v2317_v42 = vmul.f32 %v3707_v13, %v4864_v23  ;;  %v3709_v3 = vpop.eup %3708 }
 0x9dd   : > { %1980 = vst.msk [vmem:[#allocation2 + $0x68] sm:$0xff] %vm1966_vm3, %v1945_v39  ;;  %v1923_v11 = vpop.permute.xlu0 %1922  ;;  %v2318_v55 = vmul.f32 %v3709_v3, %v4832_v25 }
 0x9de   : > { %1969 = vst.msk [vmem:[#allocation2 + $0x10] sm:$0xff] %vm1966_vm3, %v1923_v11  ;;  %v2326_v56 = vpack.c.bf16 %v2317_v42, %v2316_v41 }
 0x9df   : > { %v3711_v34 = vpop.eup %3710 }
 0x9e0   : > { %3332 = vmatprep.mubr.bf16.mxu1 %v2326_v56  ;;  %v2319_v27 = vmul.f32 %v3711_v34, %v4869_v29 }
 0x9e1   : > { %v1380_v14 = vpop.permute.xlu0 %1379 }
 0x9e2   : > { %1424 = vst.msk [vmem:[#allocation2 + $0x20] sm:$0xff] %vm1419_vm2, %v1380_v14  ;;  %v2327_v16 = vpack.c.bf16 %v2319_v27, %v2318_v55 }
 0x9e4   : > { %3333 = vmatmul.mubr.bf16.gmra.mxu1 %v2327_v16 }
 0x9e5   : > { %v1384_v63 = vpop.permute.xlu0 %1383 }
 0x9e6   : > { %1426 = vst.msk [vmem:[#allocation2 + $0x30] sm:$0xff] %vm1419_vm2, %v1384_v63 }
 0x9e9   : > { %v1927_v23 = vpop.permute.xlu0 %1926 }
 0x9ea   : > { %1971 = vst.msk [vmem:[#allocation2 + $0x20] sm:$0xff] %vm1966_vm3, %v1927_v23 }
 0x9ed   : > { %v1931_v47 = vpop.permute.xlu0 %1930 }
 0x9ee   : > { %1973 = vst.msk [vmem:[#allocation2 + $0x30] sm:$0xff] %vm1966_vm3, %v1931_v47 }
 0x9f1   : > { %v1388_v53 = vpop.permute.xlu0 %1387 }
 0x9f2   : > { %1428 = vst.msk [vmem:[#allocation2 + $0x40] sm:$0xff] %vm1419_vm2, %v1388_v53 }
 0x9f5   : > { %v1392_v25 = vpop.permute.xlu0 %1391 }
 0x9f6   : > { %1430 = vst.msk [vmem:[#allocation2 + $0x50] sm:$0xff] %vm1419_vm2, %v1392_v25 }
 0x9f9   : > { %v1935_v29 = vpop.permute.xlu0 %1934 }
 0x9fa   : > { %1975 = vst.msk [vmem:[#allocation2 + $0x40] sm:$0xff] %vm1966_vm3, %v1935_v29 }
 0x9fd   : > { %v1939_v44 = vpop.permute.xlu0 %1938 }
 0x9fe   : > { %1977 = vst.msk [vmem:[#allocation2 + $0x50] sm:$0xff] %vm1966_vm3, %v1939_v44 }
 0xa01   : > { %v1396_v57 = vpop.permute.xlu0 %1395 }
 0xa02   : > { %1432 = vst.msk [vmem:[#allocation2 + $0x60] sm:$0xff] %vm1419_vm2, %v1396_v57  ;;  %v5027_v57 = vld [vmem:[%s5111_s4] ss:$0 sm:$0xff] }
 0xa05   : > { %v1400_v19 = vpop.permute.xlu0 %1399 }
 0xa06   : > { %1434 = vst.msk [vmem:[#allocation2 + $0x70] sm:$0xff] %vm1419_vm2, %v1400_v19 }
 0xa09   : > { %v1943_v59 = vpop.permute.xlu0 %1942 }
 0xa0a   : > { %1979 = vst.msk [vmem:[#allocation2 + $0x60] sm:$0xff] %vm1966_vm3, %v1943_v59  ;;  %v2701_v59 = vld [vmem:[%s5022_s25 + $0x10] sm:$0xff] }
 0xa65   : > { %v3322_v61 = vpop.f32.mrf.mxu0 }
 0xa66   : > { %2469 = vrot.lane.b32.xlu0 %v3322_v61, %s3765_s17 }
 0xa67   : > { %v2386_v60 = vpop.f32.mrf.mxu0 }
 0xa69   : > { %v3323_v31 = vpop.f32.mrf.mxu0 }
 0xa6a   : > { %2465 = vrot.lane.b32.xlu0 %v2386_v60, %s3765_s17  ;;  %2471 = vrot.lane.b32.xlu1 %v3323_v31, %s3765_s17 }
 0xa6b   : > { %v2389_v4 = vpop.f32.mrf.mxu0 }
 0xa6c   : > { %v3330_v10 = vpop.f32.mrf.mxu1 }
 0xa6d   : > { %v3326_v2 = vpop.f32.mrf.mxu0 }
 0xa6e   : > { %2467 = vrot.lane.b32.xlu1 %v2389_v4, %s3765_s17  ;;  %2477 = vrot.lane.b32.xlu0 %v3326_v2, %s3765_s17  ;;  %v2418_v18 = vpop.f32.mrf.mxu1  ;;  %v2702_v2 = vld [vmem:[%s5022_s25 + $0x18] sm:$0xff] }
 0xa6f   : > { %v2402_v45 = vpop.f32.mrf.mxu0 }
 0xa70   : > { %v3331_v52 = vpop.f32.mrf.mxu1 }
 0xa71   : > { %v3327_v26 = vpop.f32.mrf.mxu0 }
 0xa72   : > { %2473 = vrot.lane.b32.xlu0 %v2402_v45, %s3765_s17  ;;  %2479 = vrot.lane.b32.xlu1 %v3327_v26, %s3765_s17  ;;  %v2421_v32 = vpop.f32.mrf.mxu1 }
 0xa73   : > { %v2405_v49 = vpop.f32.mrf.mxu0 }
 0xa76   : > { %2485 = vrot.lane.b32.xlu0 %v3330_v10, %s3765_s17  ;;  %2475 = vrot.lane.b32.xlu1 %v2405_v49, %s3765_s17 }
 0xa7a   : > { %2481 = vrot.lane.b32.xlu0 %v2418_v18, %s3765_s17  ;;  %2487 = vrot.lane.b32.xlu1 %v3331_v52, %s3765_s17  ;;  %v2700_v18 = vld [vmem:[%s5022_s25 + $0x8] sm:$0xff] }
 0xa7e   : > { %1946 = vrot.lane.b32.xlu0 %v4720_v6, %s3764_s12  ;;  %2483 = vrot.lane.b32.xlu1 %v2421_v32, %s3765_s17 }
 0xa82   : > { %1948 = vrot.lane.b32.xlu1 %v5114_v0, %s3764_s12  ;;  %v2705_v0 = vld [vmem:[%s5022_s25 + $0x30] sm:$0xff] }
 0xaa4   : > { %v3334_v17 = vpop.f32.mrf.mxu1 }
 0xaa6   : > { %v2434_v58 = vpop.f32.mrf.mxu1 }
 0xaa7   : > { %2489 = vrot.lane.b32.xlu0 %v2434_v58, %s3765_s17 }
 0xaa8   : > { %v3335_v62 = vpop.f32.mrf.mxu1 }
 0xaaa   : > { %v2437_v48 = vpop.f32.mrf.mxu1 }
 0xaab   : > { %2493 = vrot.lane.b32.xlu0 %v3334_v17, %s3765_s17  ;;  %2491 = vrot.lane.b32.xlu1 %v2437_v48, %s3765_s17  ;;  %v2703_v48 = vld [vmem:[%s5022_s25 + $0x20] sm:$0xff] }
 0xaaf   : > { %2495 = vrot.lane.b32.xlu1 %v3335_v62, %s3765_s17 }
 0xad8   : > { %v2470_v51 = vpop.permute.xlu0 %2469 }
 0xad9   : > { %2516 = vst.msk [vmem:[#allocation2 + $0x10] sm:$0xff] %vm2513_vm4, %v2470_v51 }
 0xadc   : > { %v2466_v6 = vpop.permute.xlu0 %2465  ;;  %v2472_v30 = vpop.permute.xlu1 %2471 }
 0xadd   : > { %2514 = vst.msk [vmem:[#allocation2] sm:$0xff] %vm2513_vm4, %v2466_v6  ;;  %2517 = vst.msk [vmem:[#allocation2 + $0x18] sm:$0xff] %vm2513_vm4, %v2472_v30 }
 0xae0   : > { %v2478_v21 = vpop.permute.xlu0 %2477  ;;  %v2468_v28 = vpop.permute.xlu1 %2467  ;;  %v2532_v24 = vld [vmem:[#allocation2 + $0x10] sm:$0xff] }
 0xae1   : > { %2520 = vst.msk [vmem:[#allocation2 + $0x30] sm:$0xff] %vm2513_vm4, %v2478_v21  ;;  %2515 = vst.msk [vmem:[#allocation2 + $0x8] sm:$0xff] %vm2513_vm4, %v2468_v28  ;;  %v2706_v21 = vld [vmem:[%s5022_s25 + $0x38] sm:$0xff] }
 0xae4   : > { %v2474_v46 = vpop.permute.xlu0 %2473  ;;  %v2480_v7 = vpop.permute.xlu1 %2479  ;;  %v2533_v22 = vld [vmem:[#allocation2 + $0x18] sm:$0xff]  ;;  %v2530_v12 = vld [vmem:[#allocation2] sm:$0xff] }
 0xae5   : > { %2518 = vst.msk [vmem:[#allocation2 + $0x20] sm:$0xff] %vm2513_vm4, %v2474_v46  ;;  %2521 = vst.msk [vmem:[#allocation2 + $0x38] sm:$0xff] %vm2513_vm4, %v2480_v7  ;;  %v2547_v8 = vpack.c.bf16 %v2533_v22, %v2532_v24  ;;  %v2704_v22 = vld [vmem:[%s5022_s25 + $0x28] sm:$0xff] }
 0xae8   : > { %v2486_v54 = vpop.permute.xlu0 %2485  ;;  %v2476_v15 = vpop.permute.xlu1 %2475  ;;  %v2531_v50 = vld [vmem:[#allocation2 + $0x8] sm:$0xff]  ;;  %v2536_v13 = vld [vmem:[#allocation2 + $0x30] sm:$0xff] }
 0xae9   : > { %2524 = vst.msk [vmem:[#allocation2 + $0x50] sm:$0xff] %vm2513_vm4, %v2486_v54  ;;  %2519 = vst.msk [vmem:[#allocation2 + $0x28] sm:$0xff] %vm2513_vm4, %v2476_v15  ;;  %v2546_v33 = vpack.c.bf16 %v2531_v50, %v2530_v12  ;;  %v2709_v50 = vld [vmem:[%s5022_s25 + $0x50] sm:$0xff] }
 0xaeb   : > { %3340 = vmatprep.mubr.msk.bf16.mxu0 %vm2577_vm5, %v2546_v33 }
 0xaec   : > { %v2482_v20 = vpop.permute.xlu0 %2481  ;;  %3341 = vmatmul.mubr.msk.bf16.vlgmr.msra.gmra.mxu0 %vm2577_vm5, %v2547_v8  ;;  %v2488_v43 = vpop.permute.xlu1 %2487  ;;  %v2537_v37 = vld [vmem:[#allocation2 + $0x38] sm:$0xff]  ;;  %v2534_v36 = vld [vmem:[#allocation2 + $0x20] sm:$0xff] }
 0xaed   : > { %2522 = vst.msk [vmem:[#allocation2 + $0x40] sm:$0xff] %vm2513_vm4, %v2482_v20  ;;  %2525 = vst.msk [vmem:[#allocation2 + $0x58] sm:$0xff] %vm2513_vm4, %v2488_v43  ;;  %v2549_v39 = vpack.c.bf16 %v2537_v37, %v2536_v13  ;;  %v2707_v20 = vld [vmem:[%s5022_s25 + $0x40] sm:$0xff]  ;;  %v2708_v13 = vld [vmem:[%s5022_s25 + $0x48] sm:$0xff] }
 0xaf0   : > { %v1947_v38 = vpop.permute.xlu0 %1946  ;;  %v2484_v35 = vpop.permute.xlu1 %2483  ;;  %v2535_v40 = vld [vmem:[#allocation2 + $0x28] sm:$0xff]  ;;  %v2540_v34 = vld [vmem:[#allocation2 + $0x50] sm:$0xff] }
 0xaf1   : > { %1981 = vst.msk [vmem:[#allocation2 + $0x70] sm:$0xff] %vm1966_vm3, %v1947_v38  ;;  %v2548_v5 = vpack.c.bf16 %v2535_v40, %v2534_v36 }
 0xaf2   : > { %2523 = vst.msk [vmem:[#allocation2 + $0x48] sm:$0xff] %vm2513_vm4, %v2484_v35  ;;  %v2710_v35 = vld [vmem:[%s5022_s25 + $0x58] sm:$0xff] }
 0xaf3   : > { %3344 = vmatprep.mubr.msk.bf16.mxu0 %vm2577_vm5, %v2548_v5 }
 0xaf4   : > { %3345 = vmatmul.mubr.msk.bf16.gmra.mxu0 %vm2577_vm5, %v2549_v39  ;;  %v1949_v41 = vpop.permute.xlu1 %1948  ;;  %v2541_v42 = vld [vmem:[#allocation2 + $0x58] sm:$0xff]  ;;  %v2538_v3 = vld [vmem:[#allocation2 + $0x40] sm:$0xff] }
 0xaf5   : > { %1982 = vst.msk [vmem:[#allocation2 + $0x78] sm:$0xff] %vm1966_vm3, %v1949_v41  ;;  %v2551_v55 = vpack.c.bf16 %v2541_v42, %v2540_v34 }
 0xaf9   : > { %v2539_v11 = vld [vmem:[#allocation2 + $0x48] sm:$0xff] }
 0xafa   : > { %v2550_v56 = vpack.c.bf16 %v2539_v11, %v2538_v3  ;;  %v2713_v11 = vld [vmem:[%s5022_s25 + $0x70] sm:$0xff] }
 0xafc   : > { %3348 = vmatprep.mubr.msk.bf16.mxu0 %vm2577_vm5, %v2550_v56 }
 0xafd   : > { %3349 = vmatmul.mubr.msk.bf16.gmra.mxu0 %vm2577_vm5, %v2551_v55  ;;  %v2711_v55 = vld [vmem:[%s5022_s25 + $0x60] sm:$0xff] }
 0xb19   : > { %v2490_v27 = vpop.permute.xlu0 %2489 }
 0xb1a   : > { %2526 = vst.msk [vmem:[#allocation2 + $0x60] sm:$0xff] %vm2513_vm4, %v2490_v27 }
 0xb1d   : > { %v2494_v14 = vpop.permute.xlu0 %2493  ;;  %v2492_v16 = vpop.permute.xlu1 %2491 }
 0xb1e   : > { %2528 = vst.msk [vmem:[#allocation2 + $0x70] sm:$0xff] %vm2513_vm4, %v2494_v14  ;;  %2527 = vst.msk [vmem:[#allocation2 + $0x68] sm:$0xff] %vm2513_vm4, %v2492_v16 }
 0xb21   : > { %v2496_v63 = vpop.permute.xlu1 %2495  ;;  %v2542_v23 = vld [vmem:[#allocation2 + $0x60] sm:$0xff] }
 0xb22   : > { %2529 = vst.msk [vmem:[#allocation2 + $0x78] sm:$0xff] %vm2513_vm4, %v2496_v63  ;;  %v2714_v63 = vld [vmem:[%s5022_s25 + $0x78] sm:$0xff] }
 0xb25   : > { %v2543_v47 = vld [vmem:[#allocation2 + $0x68] sm:$0xff]  ;;  %v2544_v25 = vld [vmem:[#allocation2 + $0x70] sm:$0xff] }
 0xb26   : > { %v2552_v53 = vpack.c.bf16 %v2543_v47, %v2542_v23 }
 0xb28   : > { %3352 = vmatprep.mubr.msk.bf16.mxu0 %vm2577_vm5, %v2552_v53 }
 0xb29   : > { %v2545_v29 = vld [vmem:[#allocation2 + $0x78] sm:$0xff] }
 0xb2a   : > { %v2553_v44 = vpack.c.bf16 %v2545_v29, %v2544_v25  ;;  %v2712_v25 = vld [vmem:[%s5022_s25 + $0x68] sm:$0xff] }
 0xb2c   : > { %3353 = vmatmul.mubr.msk.bf16.gmra.mxu0 %vm2577_vm5, %v2553_v44 }
 0xbac   : > { %v3342_v19 = vpop.f32.mrf.mxu0 }
 0xbad   : > { %v2645_v1 = vadd.f32 %v3342_v19, %v5027_v57 }
 0xbae   : > { %v2636_v61 = vpop.f32.mrf.mxu0 }
 0xbaf   : > { %v2717_v60 = vadd.f32 %v2701_v59, %v2645_v1  ;;  %v2637_v31 = vadd.f32 %v5027_v57, %v2636_v61 }
 0xbb0   : > { %v3343_v4 = vpop.f32.mrf.mxu0 }
 0xbb1   : > { %2733 = vst.msk [vmem:[%s5034_s29 + $0x10] sm:$0xff] %vm2577_vm5, %v2717_v60  ;;  %v2715_v45 = vadd.f32 %v2699_v9, %v2637_v31  ;;  %v2648_v10 = vadd.f32 %v3343_v4, %v5027_v57 }
 0xbb2   : > { %v2639_v26 = vpop.f32.mrf.mxu0 }
 0xbb3   : > { %2731 = vst.msk [vmem:[%s5034_s29] sm:$0xff] %vm2577_vm5, %v2715_v45  ;;  %v2718_v49 = vadd.f32 %v2702_v2, %v2648_v10  ;;  %v2640_v52 = vadd.f32 %v5027_v57, %v2639_v26 }
 0xbb4   : > { %v3346_v32 = vpop.f32.mrf.mxu0 }
 0xbb5   : > { %2734 = vst.msk [vmem:[%s5034_s29 + $0x18] sm:$0xff] %vm2577_vm5, %v2718_v49  ;;  %v2716_v17 = vadd.f32 %v2700_v18, %v2640_v52  ;;  %v2661_v58 = vadd.f32 %v3346_v32, %v5027_v57 }
 0xbb6   : > { %v2652_v62 = vpop.f32.mrf.mxu0 }
 0xbb7   : > { %2732 = vst.msk [vmem:[%s5034_s29 + $0x8] sm:$0xff] %vm2577_vm5, %v2716_v17  ;;  %v2721_v51 = vadd.f32 %v2705_v0, %v2661_v58  ;;  %v2653_v6 = vadd.f32 %v5027_v57, %v2652_v62 }
 0xbb8   : > { %v3347_v30 = vpop.f32.mrf.mxu0 }
 0xbb9   : > { %2737 = vst.msk [vmem:[%s5034_s29 + $0x30] sm:$0xff] %vm2577_vm5, %v2721_v51  ;;  %v2719_v28 = vadd.f32 %v2703_v48, %v2653_v6  ;;  %v2664_v46 = vadd.f32 %v3347_v30, %v5027_v57 }
 0xbba   : > { %v2655_v7 = vpop.f32.mrf.mxu0 }
 0xbbb   : > { %2735 = vst.msk [vmem:[%s5034_s29 + $0x20] sm:$0xff] %vm2577_vm5, %v2719_v28  ;;  %v2722_v54 = vadd.f32 %v2706_v21, %v2664_v46  ;;  %v2656_v15 = vadd.f32 %v5027_v57, %v2655_v7 }
 0xbbd   : > { %v3350_v12 = vpop.f32.mrf.mxu0  ;;  %2738 = vst.msk [vmem:[%s5034_s29 + $0x38] sm:$0xff] %vm2577_vm5, %v2722_v54  ;;  %v2720_v33 = vadd.f32 %v2704_v22, %v2656_v15 }
 0xbbe   : > { %v2677_v24 = vadd.f32 %v3350_v12, %v5027_v57 }
 0xbbf   : > { %v2668_v8 = vpop.f32.mrf.mxu0  ;;  %2736 = vst.msk [vmem:[%s5034_s29 + $0x28] sm:$0xff] %vm2577_vm5, %v2720_v33 }
 0xbc0   : > { %v2725_v43 = vadd.f32 %v2709_v50, %v2677_v24  ;;  %v2669_v37 = vadd.f32 %v5027_v57, %v2668_v8 }
 0xbc1   : > { %v3351_v38 = vpop.f32.mrf.mxu0 }
 0xbc2   : > { %2741 = vst.msk [vmem:[%s5034_s29 + $0x50] sm:$0xff] %vm2577_vm5, %v2725_v43  ;;  %v2723_v36 = vadd.f32 %v2707_v20, %v2669_v37  ;;  %v2680_v40 = vadd.f32 %v3351_v38, %v5027_v57 }
 0xbc3   : > { %v2671_v5 = vpop.f32.mrf.mxu0 }
 0xbc4   : > { %2739 = vst.msk [vmem:[%s5034_s29 + $0x40] sm:$0xff] %vm2577_vm5, %v2723_v36  ;;  %v2726_v39 = vadd.f32 %v2710_v35, %v2680_v40  ;;  %v2672_v41 = vadd.f32 %v5027_v57, %v2671_v5 }
 0xbc6   : > { %2742 = vst.msk [vmem:[%s5034_s29 + $0x58] sm:$0xff] %vm2577_vm5, %v2726_v39  ;;  %v2724_v42 = vadd.f32 %v2708_v13, %v2672_v41 }
 0xbc8   : > { %2740 = vst.msk [vmem:[%s5034_s29 + $0x48] sm:$0xff] %vm2577_vm5, %v2724_v42 }
 0xbec   : > { %v3354_v3 = vpop.f32.mrf.mxu0 }
 0xbed   : > { %v2693_v56 = vadd.f32 %v3354_v3, %v5027_v57 }
 0xbee   : > { %v2684_v34 = vpop.f32.mrf.mxu0 }
 0xbef   : > { %v2729_v27 = vadd.f32 %v2713_v11, %v2693_v56  ;;  %v2685_v14 = vadd.f32 %v5027_v57, %v2684_v34 }
 0xbf0   : > { %v3355_v16 = vpop.f32.mrf.mxu0 }
 0xbf1   : > { %2745 = vst.msk [vmem:[%s5034_s29 + $0x70] sm:$0xff] %vm2577_vm5, %v2729_v27  ;;  %v2727_v23 = vadd.f32 %v2711_v55, %v2685_v14  ;;  %v2696_v47 = vadd.f32 %v3355_v16, %v5027_v57 }
 0xbf2   : > { %v2687_v53 = vpop.f32.mrf.mxu0 }
 0xbf3   : > { %2743 = vst.msk [vmem:[%s5034_s29 + $0x60] sm:$0xff] %vm2577_vm5, %v2727_v23  ;;  %v2730_v29 = vadd.f32 %v2714_v63, %v2696_v47  ;;  %v2688_v44 = vadd.f32 %v5027_v57, %v2687_v53 }
 0xbf5   : > { %2746 = vst.msk [vmem:[%s5034_s29 + $0x78] sm:$0xff] %vm2577_vm5, %v2730_v29  ;;  %v2728_v19 = vadd.f32 %v2712_v25, %v2688_v44 }
 0xbf7   : > { %2744 = vst.msk [vmem:[%s5034_s29 + $0x68] sm:$0xff] %vm2577_vm5, %v2728_v19 }
 0xbf8 PF: > { %s15_s20 = sadd.s32 1, %s3754_s20   ;;  %s5115_s18 = smov %s3750_s19 }
 0xbf9   : > { %p12_p5 = scmp.ge.s32.totalorder %s15_s20, 4   ;;  %s5116_s19 = smov %s5118_s21 }
 0xbfb   :  { %14 = sbr.rel (!%p12_p5) target bundleno = 2 (0x2), region = 76 }

</bundles_post_ra>
